<compile_context>
chip_gen: v6e
topology: v6e:2x2x1
jax: 0.10.0
libtpu: 0.0.40
codegen_flags: <defaults>
</compile_context>

<pallas_src>
import functools

import jax
import jax.numpy as jnp
from jax import lax
from jax.experimental import pallas as pl
from jax.experimental.pallas import tpu as pltpu


# ----------------------------------------------------------------------------
# Fused contextual-attention Pallas kernel (one grid step per batch element).
# ----------------------------------------------------------------------------
def _ca_kernel(fp_ref, bp_ref, mm_ref, rw_ref, yt_ref, off_ref, *,
               scale, n_l, kc):
    fp = fp_ref[0]          # (P, Kc)  foreground 3x3xC patches
    bp = bp_ref[0]          # (L, Kc)  background 3x3xC patches
    mm = mm_ref[0]          # (1, L)   background-patch validity mask
    rw = rw_ref[0]          # (L, Kr)  raw (2*rate)^2 x C background patches

    # Background patch normalisation.  Reference:
    #   max_wi = sqrt(reduce_sum(wi**2 + 1e-4)) == sqrt(sum(wi**2) + Kc*1e-4)
    norm = jnp.sqrt(jnp.sum(bp * bp, axis=-1, keepdims=True) + kc * 1e-4)
    bpn = bp / norm

    # Correlation scores == F.conv2d(same_pad(f), wi_normed):  (P, L)
    scores = lax.dot_general(fp, bpn, (((1,), (1,)), ((), ())),
                             preferred_element_type=jnp.float32)

    # mask -> scaled softmax over background patches (lane axis) -> mask.
    s = (scores * mm) * scale
    smax = jnp.max(s, axis=-1, keepdims=True)
    e = jnp.exp(s - smax)
    attn = e / jnp.sum(e, axis=-1, keepdims=True)
    attn = attn * mm

    # argmax over background patches (first max index, like torch.argmax).
    amax = jnp.max(attn, axis=-1, keepdims=True)
    lane = lax.broadcasted_iota(jnp.int32, attn.shape, 1).astype(jnp.float32)
    idx = jnp.min(jnp.where(attn == amax, lane, float(n_l)),
                  axis=-1, keepdims=True)
    off_ref[0] = idx.astype(jnp.int32)

    # Transposed-conv taps: attention-weighted sum of raw background patches.
    yt_ref[0] = lax.dot_general(attn, rw, (((1,), (0,)), ((), ())),
                                preferred_element_type=jnp.float32)


def ca_attention_pallas(f_patches, b_patches, mm, raw_w_mat, *, scale):
    """f_patches: (B,P,Kc), b_patches: (B,L,Kc), mm: (1,1,L), raw_w: (B,L,Kr)."""
    B, P, Kc = f_patches.shape
    L = b_patches.shape[1]
    Kr = raw_w_mat.shape[-1]
    kern = functools.partial(_ca_kernel, scale=scale, n_l=L, kc=Kc)
    return pl.pallas_call(
        kern,
        out_shape=(jax.ShapeDtypeStruct((B, P, Kr), jnp.float32),
                   jax.ShapeDtypeStruct((B, P, 1), jnp.int32)),
        grid=(B,),
        in_specs=[
            pl.BlockSpec((1, P, Kc), lambda i: (i, 0, 0)),   # foreground patches
            pl.BlockSpec((1, L, Kc), lambda i: (i, 0, 0)),   # background patches
            pl.BlockSpec((1, 1, L), lambda i: (0, 0, 0)),    # shared mask row
            pl.BlockSpec((1, L, Kr), lambda i: (i, 0, 0)),   # raw background patches
        ],
        out_specs=(
            pl.BlockSpec((1, P, Kr), lambda i: (i, 0, 0)),   # deconv taps
            pl.BlockSpec((1, P, 1), lambda i: (i, 0, 0)),    # argmax offsets
        ),
        compiler_params=pltpu.CompilerParams(
            dimension_semantics=("parallel",)),
    )(f_patches, b_patches, mm, raw_w_mat)


# ----------------------------------------------------------------------------
# JAX glue: 'same'-padded patch extraction (torch Unfold + same_padding) and
# the col2im scatter of F.conv_transpose2d.
# ----------------------------------------------------------------------------
def _same_pad_amounts(size, ksize, stride):
    out = -(-size // stride)
    pad = max(0, (out - 1) * stride + ksize - size)
    lo = pad // 2
    return out, lo, pad - lo


def extract_patches_nchw(x, ksize, stride):
    """Returns (B, oh*ow, C*ksize*ksize) with (c, kh, kw) element order."""
    B, C, H, W = x.shape
    oh, pt, pb = _same_pad_amounts(H, ksize, stride)
    ow, pw_lo, pw_hi = _same_pad_amounts(W, ksize, stride)
    xp = jnp.pad(x, ((0, 0), (0, 0), (pt, pb), (pw_lo, pw_hi)))
    taps = []
    for kh in range(ksize):
        for kw in range(ksize):
            taps.append(xp[:, :, kh:kh + stride * oh:stride,
                            kw:kw + stride * ow:stride])
    p = jnp.stack(taps, axis=2)                  # (B, C, k*k, oh, ow)
    p = p.transpose(0, 3, 4, 1, 2)               # (B, oh, ow, C, k*k)
    return p.reshape(B, oh * ow, C * ksize * ksize), (oh, ow)


def col2im_transpose(y_taps, hl, wl, c, kernel, rate, pad):
    """Scatter of F.conv_transpose2d(attn, raw_w, stride=rate, padding=pad)."""
    B = y_taps.shape[0]
    V = y_taps.reshape(B, hl, wl, c, kernel, kernel)
    V = V.transpose(0, 3, 1, 2, 4, 5)            # (B, C, hl, wl, kh, kw)
    h_full = (hl - 1) * rate + kernel
    w_full = (wl - 1) * rate + kernel
    out = jnp.zeros((B, c, h_full, w_full), jnp.float32)
    for kh in range(kernel):
        for kw in range(kernel):
            out = out.at[:, :, kh:kh + rate * hl:rate,
                          kw:kw + rate * wl:rate].add(V[..., kh, kw])
    return out[:, :, pad:h_full - pad, pad:w_full - pad]


# ----------------------------------------------------------------------------
# ContextualAttention forward
# ----------------------------------------------------------------------------
def contextual_attention_forward(f, b, mask=None, *, ksize=3, stride=1, rate=2,
                                 softmax_scale=10.0):
    B, C, Hraw, Wraw = f.shape
    kernel = 2 * rate

    # Raw (2*rate)x(2*rate) background patches, stride = rate*stride.
    raw_w_mat, _ = extract_patches_nchw(b, kernel, rate * stride)   # (B,L,16C)

    # Nearest-neighbour downsample by `rate` (matches F.interpolate nearest
    # for sizes divisible by rate).
    fl = f[:, :, ::rate, ::rate]
    bl = b[:, :, ::rate, ::rate]
    Hf, Wf = fl.shape[2], fl.shape[3]
    Hb, Wb = bl.shape[2], bl.shape[3]

    # 3x3 'same' matching patches.
    f_patches, _ = extract_patches_nchw(fl, ksize, 1)        # (B, P, 9C)
    b_patches, _ = extract_patches_nchw(bl, ksize, stride)   # (B, L, 9C)
    L = Hb * Wb

    # Per-background-patch validity mask mm (shared across batch, like m[0]).
    if mask is None:
        mm = jnp.ones((1, 1, L), jnp.float32)
    else:
        mlow = mask[:, :, ::4 * rate, ::4 * rate]
        m_patches, _ = extract_patches_nchw(mlow, ksize, stride)
        mm = (jnp.mean(m_patches[0], axis=-1) == 0.0).astype(jnp.float32)
        mm = mm.reshape(1, 1, L)

    # Fused Pallas kernel: scores -> softmax -> argmax -> attn @ raw patches.
    y_taps, off_idx = ca_attention_pallas(
        f_patches, b_patches, mm, raw_w_mat, scale=float(softmax_scale))

    # Transposed conv (stride=rate, padding=1) / 4.0 via col2im scatter.
    y = col2im_transpose(y_taps, Hf, Wf, C, kernel, rate, pad=1) / 4.0

    # Offsets -> (row, col) relative to each query pixel.
    off = off_idx.reshape(B, Hf, Wf)
    if (Hb, Wb) != (Hf, Wf):
        times = float(Hf * Wf) / float(Hb * Wb)
        off = ((off + 1).astype(jnp.float32) * times - 1.0).astype(jnp.int32)
    off_h = off // Wf
    off_w = off % Wf
    h_ref = jnp.arange(Hf, dtype=jnp.int32).reshape(1, Hf, 1)
    w_ref = jnp.arange(Wf, dtype=jnp.int32).reshape(1, 1, Wf)
    offsets = jnp.stack([off_h - h_ref, off_w - w_ref], axis=1)  # (B,2,Hf,Wf)

    # TODO(synk): flow_to_image() is an external numpy visualization utility
    # with no Pallas/JAX equivalent; raw pixel offsets are returned instead.
    return y, offsets


if __name__ == "__main__":
    # Small shapes consistent with the module: batch=2, channels=4, 32x32
    # features; rate=2 -> 16x16 matching grid (256 patches, lane-dense).
    batch, channels, spatial = 2, 4, 32
    key = jax.random.PRNGKey(0)
    kf, kb = jax.random.split(key)
    f = jax.random.normal(kf, (batch, channels, spatial, spatial), jnp.float32)
    b = jax.random.normal(kb, (batch, channels, spatial, spatial), jnp.float32)

    fwd = jax.jit(functools.partial(contextual_attention_forward,
                                    ksize=3, stride=1, rate=2,
                                    softmax_scale=10.0))
    y, offsets = fwd(f, b)
    y, offsets = jax.block_until_ready((y, offsets))
    assert y.shape == (batch, channels, spatial, spatial), y.shape
    assert offsets.shape == (batch, 2, spatial // 2, spatial // 2), offsets.shape
    print("KERNEL_OK")
</pallas_src>

<mosaic_0001>
module attributes {stable_mosaic.version = 11 : i64} {
  func.func @_ca_kernel(%arg0: i32, %arg1: memref<1x256x36xf32, #tpu.memory_space<vmem>>, %arg2: memref<1x256x36xf32, #tpu.memory_space<vmem>>, %arg3: memref<1x1x256xf32, #tpu.memory_space<vmem>>, %arg4: memref<1x256x64xf32, #tpu.memory_space<vmem>>, %arg5: memref<1x256x64xf32, #tpu.memory_space<vmem>>, %arg6: memref<1x256x1xi32, #tpu.memory_space<vmem>>) attributes {dimension_semantics = [#tpu.dimension_semantics<parallel>], iteration_bounds = array<i64: 2>, scalar_prefetch = 0 : i64, scratch_operands = 0 : i64, tpu.core_type = #tpu.core_type<tc>, window_params = [{transform_indices = @transform_0, window_bounds = array<i64: 1, 256, 36>}, {transform_indices = @transform_1, window_bounds = array<i64: 1, 256, 36>}, {pipeline_mode = #tpu.pipeline_mode<synchronous>, transform_indices = @transform_2, window_bounds = array<i64: 1, 1, 256>}, {transform_indices = @transform_3, window_bounds = array<i64: 1, 256, 64>}, {transform_indices = @transform_4, window_bounds = array<i64: 1, 256, 64>}, {transform_indices = @transform_5, window_bounds = array<i64: 1, 256, 1>}]} {
    %c0 = arith.constant 0 : index
    %c0_0 = arith.constant 0 : index
    %c0_1 = arith.constant 0 : index
    %0 = vector.load %arg1[%c0, %c0_0, %c0_1] : memref<1x256x36xf32, #tpu.memory_space<vmem>>, vector<1x256x36xf32>
    %1 = vector.shape_cast %0 : vector<1x256x36xf32> to vector<256x36xf32>
    %c0_2 = arith.constant 0 : index
    %c0_3 = arith.constant 0 : index
    %c0_4 = arith.constant 0 : index
    %2 = vector.load %arg2[%c0_2, %c0_3, %c0_4] : memref<1x256x36xf32, #tpu.memory_space<vmem>>, vector<1x256x36xf32>
    %3 = vector.shape_cast %2 : vector<1x256x36xf32> to vector<256x36xf32>
    %c0_5 = arith.constant 0 : index
    %c0_6 = arith.constant 0 : index
    %c0_7 = arith.constant 0 : index
    %4 = vector.load %arg3[%c0_5, %c0_6, %c0_7] : memref<1x1x256xf32, #tpu.memory_space<vmem>>, vector<1x1x256xf32>
    %5 = vector.shape_cast %4 : vector<1x1x256xf32> to vector<1x256xf32>
    %c0_8 = arith.constant 0 : index
    %c0_9 = arith.constant 0 : index
    %c0_10 = arith.constant 0 : index
    %6 = vector.load %arg4[%c0_8, %c0_9, %c0_10] : memref<1x256x64xf32, #tpu.memory_space<vmem>>, vector<1x256x64xf32>
    %7 = vector.shape_cast %6 : vector<1x256x64xf32> to vector<256x64xf32>
    %8 = arith.mulf %3, %3 : vector<256x36xf32>
    %cst = arith.constant dense<0.000000e+00> : vector<256xf32>
    %9 = vector.multi_reduction <add>, %8, %cst [1] : vector<256x36xf32> to vector<256xf32>
    %10 = vector.shape_cast %9 : vector<256xf32> to vector<256x1xf32>
    %cst_11 = arith.constant 3.600000e-03 : f32
    %11 = vector.broadcast %cst_11 : f32 to vector<256x1xf32>
    %12 = arith.addf %10, %11 : vector<256x1xf32>
    %13 = math.sqrt %12 : vector<256x1xf32>
    %14 = vector.broadcast %13 : vector<256x1xf32> to vector<256x36xf32>
    %15 = arith.divf %3, %14 : vector<256x36xf32>
    %cst_12 = arith.constant dense<0.000000e+00> : vector<256x256xf32>
    %16 = tpu.matmul %1, %15, %cst_12 {dimension_numbers = #tpu.dot_dimension_numbers<[1], [1], [0], [0], [0, 0, 1, 0], [], []>} : vector<256x36xf32>, vector<256x36xf32>, vector<256x256xf32> -> vector<256x256xf32>
    %17 = vector.broadcast %5 : vector<1x256xf32> to vector<256x256xf32>
    %18 = arith.mulf %16, %17 : vector<256x256xf32>
    %cst_13 = arith.constant 1.000000e+01 : f32
    %19 = vector.broadcast %cst_13 : f32 to vector<256x256xf32>
    %20 = arith.mulf %18, %19 : vector<256x256xf32>
    %cst_14 = arith.constant dense<0xFF800000> : vector<256xf32>
    %21 = vector.multi_reduction <maximumf>, %20, %cst_14 [1] : vector<256x256xf32> to vector<256xf32>
    %22 = vector.shape_cast %21 : vector<256xf32> to vector<256x1xf32>
    %23 = vector.broadcast %22 : vector<256x1xf32> to vector<256x256xf32>
    %24 = arith.subf %20, %23 : vector<256x256xf32>
    %25 = math.exp %24 : vector<256x256xf32>
    %cst_15 = arith.constant dense<0.000000e+00> : vector<256xf32>
    %26 = vector.multi_reduction <add>, %25, %cst_15 [1] : vector<256x256xf32> to vector<256xf32>
    %27 = vector.shape_cast %26 : vector<256xf32> to vector<256x1xf32>
    %28 = vector.broadcast %27 : vector<256x1xf32> to vector<256x256xf32>
    %29 = arith.divf %25, %28 : vector<256x256xf32>
    %30 = vector.broadcast %5 : vector<1x256xf32> to vector<256x256xf32>
    %31 = arith.mulf %29, %30 : vector<256x256xf32>
    %cst_16 = arith.constant dense<0xFF800000> : vector<256xf32>
    %32 = vector.multi_reduction <maximumf>, %31, %cst_16 [1] : vector<256x256xf32> to vector<256xf32>
    %33 = vector.shape_cast %32 : vector<256xf32> to vector<256x1xf32>
    %34 = tpu.iota {dimensions = array<i32: 1>} : vector<256x256xi32>
    %35 = arith.sitofp %34 : vector<256x256xi32> to vector<256x256xf32>
    %36 = vector.broadcast %33 : vector<256x1xf32> to vector<256x256xf32>
    %37 = arith.cmpf oeq, %31, %36 : vector<256x256xf32>
    %cst_17 = arith.constant 2.560000e+02 : f32
    %38 = vector.broadcast %cst_17 : f32 to vector<256x256xf32>
    %39 = arith.select %37, %35, %38 : vector<256x256xi1>, vector<256x256xf32>
    %cst_18 = arith.constant dense<0x7F800000> : vector<256xf32>
    %40 = vector.multi_reduction <minimumf>, %39, %cst_18 [1] : vector<256x256xf32> to vector<256xf32>
    %41 = vector.shape_cast %40 : vector<256xf32> to vector<256x1xf32>
    %42 = arith.fptosi %41 : vector<256x1xf32> to vector<256x1xi32>
    %c0_19 = arith.constant 0 : index
    %c0_20 = arith.constant 0 : index
    %c0_21 = arith.constant 0 : index
    %43 = vector.load %arg6[%c0_19, %c0_20, %c0_21] : memref<1x256x1xi32, #tpu.memory_space<vmem>>, vector<1x256x1xi32>
    %44 = vector.shape_cast %43 : vector<1x256x1xi32> to vector<256x1xi32>
    %45 = vector.shape_cast %42 : vector<256x1xi32> to vector<1x256x1xi32>
    tpu.vector_store %arg6[%c0_19, %c0_20, %c0_21], %45 {strides = array<i32>} : memref<1x256x1xi32, #tpu.memory_space<vmem>>, vector<1x256x1xi32>,
    %cst_22 = arith.constant dense<0.000000e+00> : vector<256x64xf32>
    %46 = tpu.matmul %31, %7, %cst_22 {dimension_numbers = #tpu.dot_dimension_numbers<[1], [0], [0], [1], [0, 0, 1, 1], [], []>} : vector<256x256xf32>, vector<256x64xf32>, vector<256x64xf32> -> vector<256x64xf32>
    %c0_23 = arith.constant 0 : index
    %c0_24 = arith.constant 0 : index
    %c0_25 = arith.constant 0 : index
    %47 = vector.load %arg5[%c0_23, %c0_24, %c0_25] : memref<1x256x64xf32, #tpu.memory_space<vmem>>, vector<1x256x64xf32>
    %48 = vector.shape_cast %47 : vector<1x256x64xf32> to vector<256x64xf32>
    %49 = vector.shape_cast %46 : vector<256x64xf32> to vector<1x256x64xf32>
    tpu.vector_store %arg5[%c0_23, %c0_24, %c0_25], %49 {strides = array<i32>} : memref<1x256x64xf32, #tpu.memory_space<vmem>>, vector<1x256x64xf32>,
    return
  }
  func.func @transform_0(%arg0: i32) -> (i32, i32, i32) {
    %c0_i32 = arith.constant 0 : i32
    %c0_i32_0 = arith.constant 0 : i32
    %c0_i32_1 = arith.constant 0 : i32
    return %arg0, %c0_i32, %c0_i32_0 : i32, i32, i32
  }
  func.func @transform_1(%arg0: i32) -> (i32, i32, i32) {
    %c0_i32 = arith.constant 0 : i32
    %c0_i32_0 = arith.constant 0 : i32
    %c0_i32_1 = arith.constant 0 : i32
    return %arg0, %c0_i32, %c0_i32_0 : i32, i32, i32
  }
  func.func @transform_2(%arg0: i32) -> (i32, i32, i32) {
    %c0_i32 = arith.constant 0 : i32
    %c0_i32_0 = arith.constant 0 : i32
    %c0_i32_1 = arith.constant 0 : i32
    %c0_i32_2 = arith.constant 0 : i32
    return %c0_i32, %c0_i32_0, %c0_i32_1 : i32, i32, i32
  }
  func.func @transform_3(%arg0: i32) -> (i32, i32, i32) {
    %c0_i32 = arith.constant 0 : i32
    %c0_i32_0 = arith.constant 0 : i32
    %c0_i32_1 = arith.constant 0 : i32
    return %arg0, %c0_i32, %c0_i32_0 : i32, i32, i32
  }
  func.func @transform_4(%arg0: i32) -> (i32, i32, i32) {
    %c0_i32 = arith.constant 0 : i32
    %c0_i32_0 = arith.constant 0 : i32
    %c0_i32_1 = arith.constant 0 : i32
    return %arg0, %c0_i32, %c0_i32_0 : i32, i32, i32
  }
  func.func @transform_5(%arg0: i32) -> (i32, i32, i32) {
    %c0_i32 = arith.constant 0 : i32
    %c0_i32_0 = arith.constant 0 : i32
    %c0_i32_1 = arith.constant 0 : i32
    return %arg0, %c0_i32, %c0_i32_0 : i32, i32, i32
  }
}

</mosaic_0001>

<bundles_post_ra>
// kernel: contextual_attention_forward.1
= control target key start
LH: loop header
LB: loop body
LE: loop exit
PB: predicated region body
PF: predicated region fallthrough
CT: control target
= control target key end

     0   :  { %s3330_s18 = smov 0   ;;  %s5260_s0 = inlined_call_operand.vmem [shape: f32[2,256,36], index: 0, kind: input, shape index: {}]   ;;  %s5261_s1 = inlined_call_operand.vmem [shape: f32[2,256,36], index: 1, kind: input, shape index: {}]   ;;  %s5262_s2 = inlined_call_operand.vmem [shape: f32[1,1,256], index: 2, kind: input, shape index: {}]   ;;  %s5263_s3 = inlined_call_operand.vmem [shape: f32[2,256,64], index: 3, kind: input, shape index: {}]   ;;  %s5264_s4 = inlined_call_operand.vmem [shape: f32[2,256,64], index: 4, kind: output, shape index: {0}]   ;;  %s5265_s5 = inlined_call_operand.vmem [shape: s32[2,256,1], index: 5, kind: output, shape index: {1}]  }
   0x1 LB: > { %s2716_s19 = sadd.s32 4294967295, %s3297_s18   ;;  %p2720_p0 = scmp.ge.s32.totalorder %s3297_s18, 1  ;;  %s3297_s18 = sphi %s3330_s18, %s16_s18  }
   0x2   : > { %p210_p1 = scmp.lt.s32.totalorder %s3297_s18, 3 }
   0x4   : > { %p211_p2 = pnand %p2720_p0, %p210_p1 }
   0x6   : > { %214 = sbr.rel (%p211_p2) target bundleno = 1203 (0x4b3), region = 36 }
   0xb   : > { %p253_p3 = scmp.lt.s32.totalorder %s2716_s19, 1  ;;  %vm407_vm0 = vcmask 293888  }
   0xd   : > { %s5395_s19 = smov (!%p253_p3, %s2716_s19), 1 }
   0xe   : > { %s3338_s20 = sshll.u32 %s5395_s19, 8 }
   0xf   : > { %s3344_s23 = scalar_lea.vmem %s5261_s1, %s3338_s20  ;;  %s3542_s26 = scalar_lea.vmem %s5260_s0, %s3338_s20 }
  0x10   : > { %v3347_v0 = vld [vmem:[%s3344_s23 + $0xf8] sm:$0xff]  ;;  %v3350_v1 = vld [vmem:[%s3344_s23 + $0xf0] sm:$0xff]  ;;  %v3367_v8 = vld [vmem:[%s3344_s23 + $0xe8] sm:$0xff]  ;;  %s4278_s6 = scalar_lea.vmem %s5263_s3, %s3338_s20  ;;  %s5045_s9 = scalar_lea.vmem %s5264_s4, %s3338_s20 }
  0x11   : > { %v3353_v2 = vld [vmem:[%s3344_s23 + $0x78] sm:$0xff]  ;;  %v406_v3 = vmul.f32 %v3347_v0, %v3347_v0  ;;  %v405_v4 = vmul.f32 %v3350_v1, %v3350_v1  ;;  %v3362_v6 = vld [vmem:[%s3344_s23 + $0x70] sm:$0xff]  ;;  %v3370_v9 = vld [vmem:[%s3344_s23 + $0x68] sm:$0xff]  ;;  %v404_v14 = vmul.f32 %v3367_v8, %v3367_v8  ;;  %s5173_s12 = scalar_lea.vmem %s5265_s5, %s3338_s20 }
  0x12   : > { %v390_v5 = vmul.f32 %v3353_v2, %v3353_v2  ;;  %v389_v7 = vmul.f32 %v3362_v6, %v3362_v6  ;;  %v388_v15 = vmul.f32 %v3370_v9, %v3370_v9  ;;  %v3381_v16 = vld [vmem:[%s3344_s23 + $0xe0] sm:$0xff]  ;;  %v3393_v22 = vld [vmem:[%s3344_s23 + $0xd8] sm:$0xff]  ;;  %v3405_v28 = vld [vmem:[%s3344_s23 + $0xd0] sm:$0xff] }
  0x13   : > { %v501_v10 = vsel %vm407_vm0, %v406_v3, 0.0  ;;  %v498_v11 = vsel %vm407_vm0, %v405_v4, 0.0  ;;  %v3384_v17 = vld [vmem:[%s3344_s23 + $0x60] sm:$0xff]  ;;  %v495_v18 = vsel %vm407_vm0, %v404_v14, 0.0  ;;  %v403_v20 = vmul.f32 %v3381_v16, %v3381_v16  ;;  %v3396_v23 = vld [vmem:[%s3344_s23 + $0x58] sm:$0xff]  ;;  %v3408_v29 = vld [vmem:[%s3344_s23 + $0x50] sm:$0xff] }
  0x14   : > { %502 = vadd.xlane.f32.xlu0 %v501_v10  ;;  %499 = vadd.xlane.f32.xlu1 %v498_v11  ;;  %v453_v12 = vsel %vm407_vm0, %v390_v5, 0.0  ;;  %v450_v13 = vsel %vm407_vm0, %v389_v7, 0.0  ;;  %v447_v19 = vsel %vm407_vm0, %v388_v15, 0.0  ;;  %v387_v21 = vmul.f32 %v3384_v17, %v3384_v17  ;;  %v3417_v34 = vld [vmem:[%s3344_s23 + $0xc8] sm:$0xff]  ;;  %v3429_v40 = vld [vmem:[%s3344_s23 + $0xc0] sm:$0xff]  ;;  %v3441_v46 = vld [vmem:[%s3344_s23 + $0xb8] sm:$0xff] }
  0x15   : > { %v492_v24 = vsel %vm407_vm0, %v403_v20, 0.0  ;;  %v402_v26 = vmul.f32 %v3393_v22, %v3393_v22  ;;  %v386_v27 = vmul.f32 %v3396_v23, %v3396_v23  ;;  %v401_v32 = vmul.f32 %v3405_v28, %v3405_v28  ;;  %v3420_v35 = vld [vmem:[%s3344_s23 + $0x48] sm:$0xff]  ;;  %v3432_v41 = vld [vmem:[%s3344_s23 + $0x40] sm:$0xff]  ;;  %v3444_v47 = vld [vmem:[%s3344_s23 + $0x38] sm:$0xff] }
  0x16   : > { %v444_v25 = vsel %vm407_vm0, %v387_v21, 0.0  ;;  %v385_v33 = vmul.f32 %v3408_v29, %v3408_v29  ;;  %v400_v38 = vmul.f32 %v3417_v34, %v3417_v34  ;;  %v384_v39 = vmul.f32 %v3420_v35, %v3420_v35  ;;  %v3453_v52 = vld [vmem:[%s3344_s23 + $0xb0] sm:$0xff]  ;;  %v3465_v58 = vld [vmem:[%s3344_s23 + $0xa8] sm:$0xff]  ;;  %v3477_v3 = vld [vmem:[%s3344_s23 + $0xa0] sm:$0xff] }
  0x17   : > { %v489_v30 = vsel %vm407_vm0, %v402_v26, 0.0  ;;  %v441_v31 = vsel %vm407_vm0, %v386_v27, 0.0  ;;  %v486_v36 = vsel %vm407_vm0, %v401_v32, 0.0  ;;  %v399_v44 = vmul.f32 %v3429_v40, %v3429_v40  ;;  %v3456_v53 = vld [vmem:[%s3344_s23 + $0x30] sm:$0xff]  ;;  %v3468_v59 = vld [vmem:[%s3344_s23 + $0x28] sm:$0xff]  ;;  %v3480_v4 = vld [vmem:[%s3344_s23 + $0x20] sm:$0xff] }
  0x18   : > { %454 = vadd.xlane.f32.xlu0 %v453_v12  ;;  %451 = vadd.xlane.f32.xlu1 %v450_v13  ;;  %v438_v37 = vsel %vm407_vm0, %v385_v33, 0.0  ;;  %v483_v42 = vsel %vm407_vm0, %v400_v38, 0.0  ;;  %v435_v43 = vsel %vm407_vm0, %v384_v39, 0.0  ;;  %v383_v45 = vmul.f32 %v3432_v41, %v3432_v41  ;;  %v3489_v12 = vld [vmem:[%s3344_s23 + $0x98] sm:$0xff]  ;;  %v3501_v20 = vld [vmem:[%s3344_s23 + $0x90] sm:$0xff]  ;;  %v3525_v38 = vld [vmem:[%s3344_s23 + $0x80] sm:$0xff] }
  0x19   : > { %v480_v48 = vsel %vm407_vm0, %v399_v44, 0.0  ;;  %v398_v50 = vmul.f32 %v3441_v46, %v3441_v46  ;;  %v382_v51 = vmul.f32 %v3444_v47, %v3444_v47  ;;  %v397_v56 = vmul.f32 %v3453_v52, %v3453_v52  ;;  %v3492_v13 = vld [vmem:[%s3344_s23 + $0x18] sm:$0xff]  ;;  %v3504_v21 = vld [vmem:[%s3344_s23 + $0x10] sm:$0xff]  ;;  %v3528_v39 = vld [vmem:[%s3344_s23] sm:$0xff] }
  0x1a   : > { %v432_v49 = vsel %vm407_vm0, %v383_v45, 0.0  ;;  %v381_v57 = vmul.f32 %v3456_v53, %v3456_v53  ;;  %v396_v62 = vmul.f32 %v3465_v58, %v3465_v58  ;;  %v380_v63 = vmul.f32 %v3468_v59, %v3468_v59  ;;  %5310 = vst [vmem:[#allocation3_spill] sm:$0xff] %v3528_v39 }
  0x1b   : > { %v477_v54 = vsel %vm407_vm0, %v398_v50, 0.0  ;;  %v429_v55 = vsel %vm407_vm0, %v382_v51, 0.0  ;;  %v474_v60 = vsel %vm407_vm0, %v397_v56, 0.0  ;;  %v395_v10 = vmul.f32 %v3477_v3, %v3477_v3  ;;  %v3545_v50 = vld [vmem:[%s3542_s26] sm:$0xff] }
  0x1c   : > { %496 = vadd.xlane.f32.xlu0 %v495_v18  ;;  %448 = vadd.xlane.f32.xlu1 %v447_v19  ;;  %v426_v61 = vsel %vm407_vm0, %v381_v57, 0.0  ;;  %v471_v5 = vsel %vm407_vm0, %v396_v62, 0.0  ;;  %v423_v7 = vsel %vm407_vm0, %v380_v63, 0.0  ;;  %v379_v11 = vmul.f32 %v3480_v4, %v3480_v4  ;;  %5311 = vst [vmem:[#allocation4_spill] sm:$0xff] %v3545_v50 }
  0x1d   : > { %v468_v14 = vsel %vm407_vm0, %v395_v10, 0.0  ;;  %v394_v18 = vmul.f32 %v3489_v12, %v3489_v12  ;;  %v378_v19 = vmul.f32 %v3492_v13, %v3492_v13  ;;  %v393_v26 = vmul.f32 %v3501_v20, %v3501_v20  ;;  %2834 = vmatprep.mubr.msk.f32.mxu0 %vm407_vm0, %v3545_v50 }
  0x1e   : > { %v420_v15 = vsel %vm407_vm0, %v379_v11, 0.0  ;;  %v377_v27 = vmul.f32 %v3504_v21, %v3504_v21  ;;  %v391_v44 = vmul.f32 %v3525_v38, %v3525_v38  ;;  %v375_v45 = vmul.f32 %v3528_v39, %v3528_v39 }
  0x1f   : > { %v462_v32 = vsel %vm407_vm0, %v393_v26, 0.0 }
  0x20   : > { %493 = vadd.xlane.f32.xlu0 %v492_v24  ;;  %445 = vadd.xlane.f32.xlu1 %v444_v25  ;;  %v465_v24 = vsel %vm407_vm0, %v394_v18, 0.0  ;;  %v417_v25 = vsel %vm407_vm0, %v378_v19, 0.0  ;;  %v414_v33 = vsel %vm407_vm0, %v377_v27, 0.0 }
  0x24   : > { %490 = vadd.xlane.f32.xlu0 %v489_v30  ;;  %442 = vadd.xlane.f32.xlu1 %v441_v31  ;;  %v3513_v30 = vld [vmem:[%s3344_s23 + $0x88] sm:$0xff] }
  0x25   : > { %v3516_v31 = vld [vmem:[%s3344_s23 + $0x8] sm:$0xff] }
  0x26   : > { %5309 = vst [vmem:[#allocation2_spill] sm:$0xff] %v3516_v31 }
  0x28   : > { %487 = vadd.xlane.f32.xlu0 %v486_v36  ;;  %439 = vadd.xlane.f32.xlu1 %v438_v37  ;;  %v392_v36 = vmul.f32 %v3513_v30, %v3513_v30  ;;  %v376_v37 = vmul.f32 %v3516_v31, %v3516_v31 }
  0x2c   : > { %484 = vadd.xlane.f32.xlu0 %v483_v42  ;;  %436 = vadd.xlane.f32.xlu1 %v435_v43  ;;  %v459_v42 = vsel %vm407_vm0, %v392_v36, 0.0  ;;  %v411_v43 = vsel %vm407_vm0, %v376_v37, 0.0 }
  0x30   : > { %481 = vadd.xlane.f32.xlu0 %v480_v48  ;;  %433 = vadd.xlane.f32.xlu1 %v432_v49  ;;  %v456_v48 = vsel %vm407_vm0, %v391_v44, 0.0  ;;  %v408_v49 = vsel %vm407_vm0, %v375_v45, 0.0 }
  0x34   : > { %478 = vadd.xlane.f32.xlu0 %v477_v54  ;;  %430 = vadd.xlane.f32.xlu1 %v429_v55 }
  0x38   : > { %475 = vadd.xlane.f32.xlu0 %v474_v60  ;;  %427 = vadd.xlane.f32.xlu1 %v426_v61 }
  0x3c   : > { %472 = vadd.xlane.f32.xlu0 %v471_v5  ;;  %424 = vadd.xlane.f32.xlu1 %v423_v7 }
  0x40   : > { %469 = vadd.xlane.f32.xlu0 %v468_v14  ;;  %421 = vadd.xlane.f32.xlu1 %v420_v15 }
  0x44   : > { %466 = vadd.xlane.f32.xlu0 %v465_v24  ;;  %418 = vadd.xlane.f32.xlu1 %v417_v25 }
  0x48   : > { %463 = vadd.xlane.f32.xlu0 %v462_v32  ;;  %415 = vadd.xlane.f32.xlu1 %v414_v33 }
  0x4c   : > { %460 = vadd.xlane.f32.xlu0 %v459_v42  ;;  %412 = vadd.xlane.f32.xlu1 %v411_v43 }
  0x50   : > { %457 = vadd.xlane.f32.xlu0 %v456_v48  ;;  %409 = vadd.xlane.f32.xlu1 %v408_v49 }
  0x9d   : > { %v503_v51 = vpop.xlane.xlu0 %502  ;;  %v500_v54 = vpop.xlane.xlu1 %499 }
  0x9e   : > { %v535_v55 = vadd.f32 0.0036, %v503_v51  ;;  %v534_v61 = vadd.f32 0.0036, %v500_v54 }
  0xa0   : > { %2971 = vrsqrt.f32 %v535_v55  ;;  %vm755_vm1 = vcmp.eq.f32.partialorder %v535_v55, inf  ;;  %v758_v45 = vand.u32 2147483648, %v535_v55  ;;  %vm757_vm2 = vcmp.eq.f32.partialorder %v535_v55, 0.0 }
  0xa1   : > { %v455_v56 = vpop.xlane.xlu0 %454  ;;  %v452_v57 = vpop.xlane.xlu1 %451  ;;  %vm748_vm5 = vcmp.eq.f32.partialorder %v534_v61, inf  ;;  %vm750_vm6 = vcmp.eq.f32.partialorder %v534_v61, 0.0 }
  0xa2   : > { %v519_v60 = vadd.f32 0.0036, %v455_v56  ;;  %v3549_v5 = vadd.f32 0.0036, %v452_v57 }
  0xa4   : > { %2973 = vrsqrt.f32 %v519_v60  ;;  %vm643_vm3 = vcmp.eq.f32.partialorder %v519_v60, inf  ;;  %vm645_vm4 = vcmp.eq.f32.partialorder %v519_v60, 0.0  ;;  %vm636_vm7 = vcmp.eq.f32.partialorder %v3549_v5, inf }
  0xa5   : > { %v497_v62 = vpop.xlane.xlu0 %496  ;;  %v449_v63 = vpop.xlane.xlu1 %448  ;;  %2975 = vrsqrt.f32 %v534_v61  ;;  %vm638_vm8 = vcmp.eq.f32.partialorder %v3549_v5, 0.0 }
  0xa6   : > { %2977 = vrsqrt.f32 %v3549_v5  ;;  %v3552_v11 = vadd.f32 0.0036, %v497_v62  ;;  %v3554_v19 = vadd.f32 0.0036, %v449_v63  ;;  %v646_v63 = vand.u32 2147483648, %v519_v60 }
  0xa8   : > { %2979 = vrsqrt.f32 %v3552_v11  ;;  %vm741_vm9 = vcmp.eq.f32.partialorder %v3552_v11, inf  ;;  %vm743_vm10 = vcmp.eq.f32.partialorder %v3552_v11, 0.0  ;;  %vm629_vm11 = vcmp.eq.f32.partialorder %v3554_v19, inf }
  0xa9   : > { %v494_v7 = vpop.xlane.xlu0 %493  ;;  %v446_v10 = vpop.xlane.xlu1 %445  ;;  %2981 = vrsqrt.f32 %v3554_v19  ;;  %vm631_vm12 = vcmp.eq.f32.partialorder %v3554_v19, 0.0 }
  0xaa   : > { %v3558_v32 = vadd.f32 0.0036, %v494_v7  ;;  %v3560_v33 = vadd.f32 0.0036, %v446_v10 }
  0xac   : > { %2983 = vrsqrt.f32 %v3558_v32  ;;  %vm734_vm13 = vcmp.eq.f32.partialorder %v3558_v32, inf  ;;  %vm622_vm14 = vcmp.eq.f32.partialorder %v3560_v33, inf  ;;  %vm736_vm15 = vcmp.eq.f32.partialorder %v3558_v32, 0.0 }
  0xad   : > { %v491_v14 = vpop.xlane.xlu0 %490  ;;  %v443_v15 = vpop.xlane.xlu1 %442  ;;  %2985 = vrsqrt.f32 %v3560_v33 }
  0xae   : > { %v2972_v18 = vpop.eup %2971  ;;  %v3563_v48 = vadd.f32 0.0036, %v491_v14  ;;  %v3567_v7 = vadd.f32 0.0036, %v443_v15 }
  0xaf   : > { %v754_v24 = vmul.f32 %v2972_v18, %v535_v55 }
  0xb0   : > { %2987 = vrsqrt.f32 %v3563_v48 }
  0xb1   : > { %v488_v25 = vpop.xlane.xlu0 %487  ;;  %v440_v26 = vpop.xlane.xlu1 %439  ;;  %v756_v43 = vsel %vm755_vm1, %v535_v55, %v754_v24  ;;  %vm624_vm1 = vcmp.eq.f32.partialorder %v3560_v33, 0.0 }
  0xb2   : > { %v2974_v27 = vpop.eup %2973  ;;  %v759_v49 = vsel %vm757_vm2, %v758_v45, %v756_v43  ;;  %v751_v43 = vand.u32 2147483648, %v534_v61  ;;  %v3572_v15 = vadd.f32 0.0036, %v488_v25  ;;  %vm727_vm2 = vcmp.eq.f32.partialorder %v3563_v48, inf }
  0xb3   : > { %v642_v36 = vmul.f32 %v2974_v27, %v519_v60  ;;  %v2976_v44 = vpop.eup %2975  ;;  %2989 = vrcp.f32 %v759_v49  ;;  %v3576_v49 = vadd.f32 0.0036, %v440_v26  ;;  %v744_v26 = vand.u32 2147483648, %v3552_v11 }
  0xb4   : > { %v747_v51 = vmul.f32 %v2976_v44, %v534_v61  ;;  %v2978_v62 = vpop.eup %2977  ;;  %2991 = vrsqrt.f32 %v3567_v7 }
  0xb5   : > { %v485_v37 = vpop.xlane.xlu0 %484  ;;  %v437_v42 = vpop.xlane.xlu1 %436  ;;  %v644_v54 = vsel %vm643_vm3, %v519_v60, %v642_v36  ;;  %v635_v18 = vmul.f32 %v2978_v62, %v3549_v5  ;;  %vm729_vm3 = vcmp.eq.f32.partialorder %v3563_v48, 0.0 }
  0xb6   : > { %v647_v10 = vsel %vm645_vm4, %v646_v63, %v644_v54  ;;  %v749_v14 = vsel %vm748_vm5, %v534_v61, %v747_v51  ;;  %v2980_v27 = vpop.eup %2979  ;;  %v639_v54 = vand.u32 2147483648, %v3549_v5  ;;  %v3580_v63 = vadd.f32 0.0036, %v485_v37 }
  0xb7   : > { %v2982_v36 = vpop.eup %2981  ;;  %2993 = vrcp.f32 %v647_v10  ;;  %v752_v60 = vsel %vm750_vm6, %v751_v43, %v749_v14  ;;  %v637_v44 = vsel %vm636_vm7, %v3549_v5, %v635_v18  ;;  %v740_v45 = vmul.f32 %v2980_v27, %v3552_v11 }
  0xb8   : > { %v628_v62 = vmul.f32 %v2982_v36, %v3554_v19  ;;  %2995 = vrcp.f32 %v752_v60  ;;  %v3589_v14 = vadd.f32 0.0036, %v437_v42  ;;  %v640_v18 = vsel %vm638_vm8, %v639_v54, %v637_v44 }
  0xb9   : > { %v482_v56 = vpop.xlane.xlu0 %481  ;;  %v434_v57 = vpop.xlane.xlu1 %433  ;;  %2997 = vrsqrt.f32 %v3572_v15  ;;  %v742_v37 = vsel %vm741_vm9, %v3552_v11, %v740_v45  ;;  %v632_v44 = vand.u32 2147483648, %v3554_v19  ;;  %vm615_vm4 = vcmp.eq.f32.partialorder %v3567_v7, inf }
  0xba   : > { %v2984_v10 = vpop.eup %2983  ;;  %2999 = vrsqrt.f32 %v3576_v49  ;;  %v3594_v5 = vadd.f32 0.0036, %v482_v56  ;;  %v630_v43 = vsel %vm629_vm11, %v3554_v19, %v628_v62  ;;  %v3599_v60 = vadd.f32 0.0036, %v434_v57 }
  0xbb   : > { %v2986_v25 = vpop.eup %2985  ;;  %v733_v36 = vmul.f32 %v2984_v10, %v3558_v32  ;;  %3001 = vrsqrt.f32 %v3580_v63  ;;  %v737_v56 = vand.u32 2147483648, %v3558_v32  ;;  %v745_v57 = vsel %vm743_vm10, %v744_v26, %v742_v37 }
  0xbc   : > { %v621_v45 = vmul.f32 %v2986_v25, %v3560_v33  ;;  %3003 = vrcp.f32 %v640_v18  ;;  %v633_v25 = vsel %vm631_vm12, %v632_v44, %v630_v43  ;;  %vm617_vm5 = vcmp.eq.f32.partialorder %v3567_v7, 0.0 }
  0xbd   : > { %v479_v55 = vpop.xlane.xlu0 %478  ;;  %v431_v24 = vpop.xlane.xlu1 %430  ;;  %3005 = vrsqrt.f32 %v3589_v14  ;;  %v735_v18 = vsel %vm734_vm13, %v3558_v32, %v733_v36  ;;  %vm720_vm6 = vcmp.eq.f32.partialorder %v3572_v15, inf  ;;  %vm608_vm7 = vcmp.eq.f32.partialorder %v3576_v49, inf }
  0xbe   : > { %v2988_v42 = vpop.eup %2987  ;;  %3007 = vrsqrt.f32 %v3594_v5  ;;  %v3610_v10 = vadd.f32 0.0036, %v479_v55  ;;  %v3616_v39 = vadd.f32 0.0036, %v431_v24  ;;  %v623_v11 = vsel %vm622_vm14, %v3560_v33, %v621_v45 }
  0xbf   : > { %3009 = vrsqrt.f32 %v3599_v60  ;;  %v726_v26 = vmul.f32 %v2988_v42, %v3563_v48  ;;  %v625_v55 = vand.u32 2147483648, %v3560_v33  ;;  %v738_v36 = vsel %vm736_vm15, %v737_v56, %v735_v18 }
  0xc0   : > { %v2990_v54 = vpop.eup %2989  ;;  %3011 = vrcp.f32 %v745_v57  ;;  %v730_v45 = vand.u32 2147483648, %v3563_v48  ;;  %vm722_vm8 = vcmp.eq.f32.partialorder %v3572_v15, 0.0  ;;  %vm713_vm9 = vcmp.eq.f32.partialorder %v3580_v63, inf }
  0xc1   : > { %v476_v51 = vpop.xlane.xlu0 %475  ;;  %v3582_v61 = vpop.xlane.xlu1 %427  ;;  %v823_v19 = vmul.f32 %v2990_v54, %v3347_v0  ;;  %3013 = vrcp.f32 %v633_v25  ;;  %v626_v32 = vsel %vm624_vm1, %v625_v55, %v623_v11  ;;  %v728_v42 = vsel %vm727_vm2, %v3563_v48, %v726_v26 }
  0xc2   : > { %v2992_v31 = vpop.eup %2991  ;;  %v3620_v37 = vadd.f32 0.0036, %v476_v51  ;;  %3015 = vrsqrt.f32 %v3610_v10  ;;  %v3642_v54 = vadd.f32 0.0036, %v3582_v61  ;;  %v731_v61 = vsel %vm729_vm3, %v730_v45, %v728_v42 }
  0xc3   : > { %2802 = vmatprep.subr.msk.mxu0 %vm407_vm0, %v823_v19  ;;  %3017 = vrsqrt.f32 %v3616_v39  ;;  %v614_v44 = vmul.f32 %v2992_v31, %v3567_v7  ;;  %v618_v31 = vand.u32 2147483648, %v3567_v7  ;;  %v723_v19 = vand.u32 2147483648, %v3572_v15 }
  0xc4   : > { %v2994_v0 = vpop.eup %2993  ;;  %3019 = vrsqrt.f32 %v3620_v37  ;;  %v611_v11 = vand.u32 2147483648, %v3576_v49  ;;  %vm610_vm10 = vcmp.eq.f32.partialorder %v3576_v49, 0.0  ;;  %vm601_vm11 = vcmp.eq.f32.partialorder %v3589_v14, inf }
  0xc5   : > { %v473_v27 = vpop.xlane.xlu0 %472  ;;  %v425_v62 = vpop.xlane.xlu1 %424  ;;  %v791_v24 = vmul.f32 %v2994_v0, %v3353_v2  ;;  %3021 = vrcp.f32 %v738_v36  ;;  %v616_v18 = vsel %vm615_vm4, %v3567_v7, %v614_v44  ;;  %vm715_vm12 = vcmp.eq.f32.partialorder %v3580_v63, 0.0 }
  0xc6   : > { %v3636_v33 = vadd.f32 0.0036, %v473_v27  ;;  %v2996_v2 = vpop.eup %2995  ;;  %3023 = vrcp.f32 %v626_v32  ;;  %vm706_vm13 = vcmp.eq.f32.partialorder %v3594_v5, inf  ;;  %vm594_vm14 = vcmp.eq.f32.partialorder %v3599_v60, inf }
  0xc7   : > { %2803 = vmatpush3.xpose.msk.msra.mxu0 %vm407_vm0, %v791_v24  ;;  %v2998_v56 = vpop.eup %2997  ;;  %v821_v57 = vmul.f32 %v2996_v2, %v3350_v1  ;;  %v3656_v1 = vadd.f32 0.0036, %v425_v62  ;;  %v619_v2 = vsel %vm617_vm5, %v618_v31, %v616_v18  ;;  %vm699_vm15 = vcmp.eq.f32.partialorder %v3610_v10, inf }
  0xc8   : > { %v3000_v27 = vpop.eup %2999  ;;  %3025 = vrsqrt.f32 %v3636_v33  ;;  %v719_v32 = vmul.f32 %v2998_v56, %v3572_v15  ;;  %vm603_vm1 = vcmp.eq.f32.partialorder %v3589_v14, 0.0  ;;  %vm708_vm2 = vcmp.eq.f32.partialorder %v3594_v5, 0.0 }
  0xc9   : > { %v470_v50 = vpop.xlane.xlu0 %469  ;;  %v422_v51 = vpop.xlane.xlu1 %421  ;;  %2804 = vmatprep.subr.msk.mxu0 %vm407_vm0, %v821_v57  ;;  %3027 = vrsqrt.f32 %v3642_v54  ;;  %v607_v56 = vmul.f32 %v3000_v27, %v3576_v49  ;;  %vm596_vm3 = vcmp.eq.f32.partialorder %v3599_v60, 0.0  ;;  %vm701_vm4 = vcmp.eq.f32.partialorder %v3610_v10, 0.0 }
  0xca   : > { %v3002_v25 = vpop.eup %3001  ;;  %v3662_v55 = vadd.f32 0.0036, %v470_v50  ;;  %3029 = vrcp.f32 %v731_v61  ;;  %v721_v27 = vsel %vm720_vm6, %v3572_v15, %v719_v32  ;;  %vm587_vm5 = vcmp.eq.f32.partialorder %v3616_v39, inf }
  0xcb   : > { %v3004_v0 = vpop.eup %3003  ;;  %v712_v57 = vmul.f32 %v3002_v25, %v3580_v63  ;;  %3031 = vrsqrt.f32 %v3656_v1  ;;  %vm589_vm6 = vcmp.eq.f32.partialorder %v3616_v39, 0.0 }
  0xcc   : > { %v3006_v36 = vpop.eup %3005  ;;  %v789_v62 = vmul.f32 %v3004_v0, %v3362_v6  ;;  %v3678_v6 = vadd.f32 0.0036, %v422_v51  ;;  %3033 = vrsqrt.f32 %v3662_v55 }
  0xcd   : > { %v3628_v43 = vpop.xlane.xlu0 %466  ;;  %v419_v24 = vpop.xlane.xlu1 %418  ;;  %v600_v51 = vmul.f32 %v3006_v36, %v3589_v14  ;;  %3035 = vrcp.f32 %v619_v2  ;;  %v609_v36 = vsel %vm608_vm7, %v3576_v49, %v607_v56  ;;  %v724_v56 = vsel %vm722_vm8, %v723_v19, %v721_v27 }
  0xce   : > { %v3008_v42 = vpop.eup %3007  ;;  %2805 = vmatpush3.xpose.msk.msra.mxu0 %vm407_vm0, %v789_v62  ;;  %v3685_v7 = vadd.f32 0.0036, %v3628_v43  ;;  %v702_v43 = vand.u32 2147483648, %v3610_v10  ;;  %v3696_v50 = vadd.f32 0.0036, %v419_v24  ;;  %3037 = vrsqrt.f32 %v3678_v6 }
  0xcf   : > { %v3010_v45 = vpop.eup %3009  ;;  %v705_v0 = vmul.f32 %v3008_v42, %v3594_v5  ;;  %v612_v19 = vsel %vm610_vm10, %v611_v11, %v609_v36  ;;  %vm692_vm7 = vcmp.eq.f32.partialorder %v3620_v37, inf  ;;  %vm694_vm8 = vcmp.eq.f32.partialorder %v3620_v37, 0.0 }
  0xd0   : > { %v3012_v61 = vpop.eup %3011  ;;  %v593_v42 = vmul.f32 %v3010_v45, %v3599_v60  ;;  %3039 = vrsqrt.f32 %v3685_v7  ;;  %vm582_vm10 = vcmp.eq.f32.partialorder %v3642_v54, 0.0 }
  0xd1   : > { %v464_v26 = vpop.xlane.xlu0 %463  ;;  %v3014_v31 = vpop.eup %3013  ;;  %v819_v25 = vmul.f32 %v3012_v61, %v3367_v8  ;;  %v714_v8 = vsel %vm713_vm9, %v3580_v63, %v712_v57  ;;  %v590_v61 = vand.u32 2147483648, %v3616_v39  ;;  %3041 = vrcp.f32 %v724_v56 }
  0xd2   : > { %v3016_v62 = vpop.eup %3015  ;;  %v787_v44 = vmul.f32 %v3014_v31, %v3370_v9  ;;  %v416_v32 = vpop.xlane.xlu1 %415  ;;  %v3709_v24 = vadd.f32 0.0036, %v464_v26  ;;  %v602_v26 = vsel %vm601_vm11, %v3589_v14, %v600_v51  ;;  %3043 = vrsqrt.f32 %v3696_v50 }
  0xd3   : > { %v3018_v48 = vpop.eup %3017  ;;  %2806 = vmatprep.subr.msk.mxu0 %vm407_vm0, %v819_v25  ;;  %v698_v45 = vmul.f32 %v3016_v62, %v3610_v10  ;;  %v5312_v25 = vand.u32 2147483648, %v3580_v63  ;;  %v3754_v62 = vadd.f32 0.0036, %v416_v32  ;;  %vm580_vm9 = vcmp.eq.f32.partialorder %v3642_v54, inf }
  0xd4   : > { %v3020_v9 = vpop.eup %3019  ;;  %2807 = vmatpush3.xpose.msk.msra.mxu0 %vm407_vm0, %v787_v44  ;;  %v707_v44 = vsel %vm706_vm13, %v3594_v5, %v705_v0  ;;  %3045 = vrsqrt.f32 %v3709_v24  ;;  %v586_v11 = vmul.f32 %v3018_v48, %v3616_v39  ;;  %vm685_vm11 = vcmp.eq.f32.partialorder %v3636_v33, inf }
  0xd5   : > { %v461_v18 = vpop.xlane.xlu0 %460  ;;  %v3022_v57 = vpop.eup %3021  ;;  %v691_v27 = vmul.f32 %v3020_v9, %v3620_v37  ;;  %v717_v0 = vsel %vm715_vm12, %v5312_v25, %v714_v8  ;;  %v700_v63 = vsel %vm699_vm15, %v3610_v10, %v698_v45  ;;  %v695_v9 = vand.u32 2147483648, %v3620_v37 }
  0xd6   : > { %v3715_v2 = vadd.f32 0.0036, %v461_v18  ;;  %v3024_v31 = vpop.eup %3023  ;;  %v817_v15 = vmul.f32 %v3022_v57, %v3381_v16  ;;  %v595_v16 = vsel %vm594_vm14, %v3599_v60, %v593_v42  ;;  %v413_v49 = vpop.xlane.xlu1 %412  ;;  %v5313_v42 = vand.u32 2147483648, %v3589_v14 }
  0xd7   : > { %v785_v51 = vmul.f32 %v3024_v31, %v3384_v17  ;;  %v3026_v18 = vpop.eup %3025  ;;  %v5314_v57 = vand.u32 2147483648, %v3594_v5  ;;  %v693_v32 = vsel %vm692_vm7, %v3620_v37, %v691_v27  ;;  %v5315_v14 = vand.u32 2147483648, %v3599_v60 }
  0xd8   : > { %2808 = vmatprep.subr.msk.mxu0 %vm407_vm0, %v817_v15  ;;  %3047 = vrsqrt.f32 %v3715_v2  ;;  %v3028_v17 = vpop.eup %3027  ;;  %v605_v56 = vsel %vm603_vm1, %v5313_v42, %v602_v26  ;;  %v684_v45 = vmul.f32 %v3026_v18, %v3636_v33  ;;  %v703_v5 = vsel %vm701_vm4, %v702_v43, %v700_v63 }
  0xd9   : > { %2809 = vmatpush3.xpose.msk.msra.mxu0 %vm407_vm0, %v785_v51  ;;  %v458_v36 = vpop.xlane.xlu0 %457  ;;  %3049 = vrcp.f32 %v612_v19  ;;  %v3030_v8 = vpop.eup %3029  ;;  %v710_v48 = vsel %vm708_vm2, %v5314_v57, %v707_v44  ;;  %v598_v26 = vsel %vm596_vm3, %v5315_v14, %v595_v16  ;;  %v588_v27 = vsel %vm587_vm5, %v3616_v39, %v586_v11 }
  0xda   : > { %3051 = vrcp.f32 %v717_v0  ;;  %v815_v31 = vmul.f32 %v3030_v8, %v3393_v22  ;;  %v3032_v15 = vpop.eup %3031  ;;  %v3771_v19 = vadd.f32 0.0036, %v458_v36  ;;  %v579_v22 = vmul.f32 %v3028_v17, %v3642_v54  ;;  %v410_v60 = vpop.xlane.xlu1 %409 }
  0xdb   : > { %3053 = vrcp.f32 %v605_v56  ;;  %v3034_v44 = vpop.eup %3033  ;;  %v3785_v51 = vadd.f32 0.0036, %v413_v49  ;;  %v688_v10 = vand.u32 2147483648, %v3636_v33  ;;  %v696_v0 = vsel %vm694_vm8, %v695_v9, %v693_v32 }
  0xdc   : > { %3055 = vrcp.f32 %v710_v48  ;;  %2810 = vmatprep.subr.msk.mxu0 %vm407_vm0, %v815_v31  ;;  %v3036_v25 = vpop.eup %3035  ;;  %v686_v16 = vsel %vm685_vm11, %v3636_v33, %v684_v45  ;;  %v677_v49 = vmul.f32 %v3034_v44, %v3662_v55  ;;  %v591_v17 = vsel %vm589_vm6, %v590_v61, %v588_v27 }
  0xdd   : > { %3057 = vrsqrt.f32 %v3754_v62  ;;  %v783_v43 = vmul.f32 %v3036_v25, %v3396_v23  ;;  %v3038_v18 = vpop.eup %3037  ;;  %v581_v11 = vsel %vm580_vm9, %v3642_v54, %v579_v22  ;;  %v572_v36 = vmul.f32 %v3032_v15, %v3656_v1 }
  0xde   : > { %3059 = vrcp.f32 %v703_v5  ;;  %v3040_v63 = vpop.eup %3039  ;;  %v3803_v23 = vadd.f32 0.0036, %v410_v60  ;;  %v583_v8 = vand.u32 2147483648, %v3642_v54  ;;  %vm687_vm12 = vcmp.eq.f32.partialorder %v3636_v33, 0.0 }
  0xdf   : > { %3061 = vrcp.f32 %v598_v26  ;;  %2811 = vmatpush3.xpose.msk.msra.mxu0 %vm407_vm0, %v783_v43  ;;  %v3042_v37 = vpop.eup %3041  ;;  %vm573_vm13 = vcmp.eq.f32.partialorder %v3656_v1, inf  ;;  %vm678_vm14 = vcmp.eq.f32.partialorder %v3662_v55, inf  ;;  %v689_v9 = vsel %vm687_vm12, %v688_v10, %v686_v16 }
  0xe0   : > { %3063 = vrsqrt.f32 %v3771_v19  ;;  %v3044_v39 = vpop.eup %3043  ;;  %v813_v61 = vmul.f32 %v3042_v37, %v3405_v28  ;;  %vm575_vm15 = vcmp.eq.f32.partialorder %v3656_v1, 0.0  ;;  %v679_v56 = vsel %vm678_vm14, %v3662_v55, %v677_v49 }
  0xe1   : > { %3065 = vrsqrt.f32 %v3785_v51  ;;  %v3046_v42 = vpop.eup %3045  ;;  %v670_v57 = vmul.f32 %v3040_v63, %v3685_v7  ;;  %v584_v33 = vsel %vm582_vm10, %v583_v8, %v581_v11  ;;  %v574_v32 = vsel %vm573_vm13, %v3656_v1, %v572_v36 }
  0xe2   : > { %3067 = vrcp.f32 %v696_v0  ;;  %v681_v45 = vand.u32 2147483648, %v3662_v55  ;;  %v565_v31 = vmul.f32 %v3038_v18, %v3678_v6  ;;  %2812 = vmatprep.subr.msk.mxu0 %vm407_vm0, %v813_v61  ;;  %v576_v15 = vand.u32 2147483648, %v3656_v1 }
  0xe3   : > { %3069 = vrcp.f32 %v591_v17  ;;  %vm680_vm1 = vcmp.eq.f32.partialorder %v3662_v55, 0.0  ;;  %vm566_vm2 = vcmp.eq.f32.partialorder %v3678_v6, inf  ;;  %vm671_vm3 = vcmp.eq.f32.partialorder %v3685_v7, inf }
  0xe4   : > { %3071 = vrsqrt.f32 %v3803_v23  ;;  %v682_v26 = vsel %vm680_vm1, %v681_v45, %v679_v56  ;;  %v672_v44 = vsel %vm671_vm3, %v3685_v7, %v670_v57  ;;  %v663_v27 = vmul.f32 %v3046_v42, %v3709_v24 }
  0xe5   : > { %v3048_v48 = vpop.eup %3047  ;;  %3073 = vrcp.f32 %v689_v9  ;;  %v577_v55 = vsel %vm575_vm15, %v576_v15, %v574_v32  ;;  %v567_v60 = vsel %vm566_vm2, %v3678_v6, %v565_v31  ;;  %vm568_vm4 = vcmp.eq.f32.partialorder %v3678_v6, 0.0 }
  0xe6   : > { %v3050_v28 = vpop.eup %3049  ;;  %3075 = vrcp.f32 %v584_v33  ;;  %v674_v10 = vand.u32 2147483648, %v3685_v7  ;;  %v569_v0 = vand.u32 2147483648, %v3678_v6  ;;  %vm673_vm5 = vcmp.eq.f32.partialorder %v3685_v7, 0.0 }
  0xe7   : > { %v3052_v54 = vpop.eup %3051  ;;  %v781_v14 = vmul.f32 %v3050_v28, %v3408_v29  ;;  %v558_v29 = vmul.f32 %v3044_v39, %v3696_v50  ;;  %3077 = vrcp.f32 %v682_v26  ;;  %vm664_vm6 = vcmp.eq.f32.partialorder %v3709_v24, inf }
  0xe8   : > { %v3054_v5 = vpop.eup %3053  ;;  %v811_v22 = vmul.f32 %v3052_v54, %v3417_v34  ;;  %3079 = vrcp.f32 %v577_v55  ;;  %v675_v16 = vsel %vm673_vm5, %v674_v10, %v672_v44  ;;  %vm559_vm7 = vcmp.eq.f32.partialorder %v3696_v50, inf }
  0xe9   : > { %v3056_v25 = vpop.eup %3055  ;;  %2813 = vmatpush3.xpose.msk.msra.mxu0 %vm407_vm0, %v781_v14  ;;  %v779_v18 = vmul.f32 %v3054_v5, %v3420_v35  ;;  %v665_v17 = vsel %vm664_vm6, %v3709_v24, %v663_v27  ;;  %v656_v63 = vmul.f32 %v3048_v48, %v3715_v2  ;;  %v570_v7 = vsel %vm568_vm4, %v569_v0, %v567_v60 }
  0xea   : > { %v3058_v43 = vpop.eup %3057  ;;  %2814 = vmatprep.subr.msk.mxu0 %vm407_vm0, %v811_v22  ;;  %v809_v34 = vmul.f32 %v3056_v25, %v3429_v40  ;;  %v560_v40 = vsel %vm559_vm7, %v3696_v50, %v558_v29  ;;  %vm561_vm8 = vcmp.eq.f32.partialorder %v3696_v50, 0.0  ;;  %v667_v36 = vand.u32 2147483648, %v3709_v24 }
  0xeb   : > { %v3060_v1 = vpop.eup %3059  ;;  %v551_v35 = vmul.f32 %v3058_v43, %v3754_v62  ;;  %v562_v8 = vand.u32 2147483648, %v3696_v50  ;;  %vm666_vm9 = vcmp.eq.f32.partialorder %v3709_v24, 0.0  ;;  %3081 = vrcp.f32 %v675_v16 }
  0xec   : > { %v3062_v49 = vpop.eup %3061  ;;  %v807_v6 = vmul.f32 %v3060_v1, %v3441_v46  ;;  %vm657_vm10 = vcmp.eq.f32.partialorder %v3715_v2, inf  ;;  %3083 = vrcp.f32 %v570_v7  ;;  %v668_v9 = vsel %vm666_vm9, %v667_v36, %v665_v17  ;;  %v5318_v7 = vld [vmem:[#allocation4_spill] sm:$0xff]  ;;  %v283_v36 = vld [vmem:[%s3542_s26 + $0x28] sm:$0xff] }
  0xed   : > { %v3064_v11 = vpop.eup %3063  ;;  %2815 = vmatpush3.xpose.msk.msra.mxu0 %vm407_vm0, %v779_v18  ;;  %v777_v61 = vmul.f32 %v3062_v49, %v3432_v41  ;;  %vm552_vm11 = vcmp.eq.f32.partialorder %v3754_v62, inf  ;;  %v658_v56 = vsel %vm657_vm10, %v3715_v2, %v656_v63  ;;  %v563_v24 = vsel %vm561_vm8, %v562_v8, %v560_v40  ;;  %v282_v40 = vld [vmem:[%s3542_s26 + $0x20] sm:$0xff] }
  0xee   : > { %v3066_v37 = vpop.eup %3065  ;;  %2816 = vmatprep.subr.msk.mxu0 %vm407_vm0, %v809_v34  ;;  %v649_v57 = vmul.f32 %v3064_v11, %v3771_v19  ;;  %v553_v46 = vsel %vm552_vm11, %v3754_v62, %v551_v35  ;;  %vm554_vm12 = vcmp.eq.f32.partialorder %v3754_v62, 0.0  ;;  %v660_v33 = vand.u32 2147483648, %v3715_v2  ;;  %v281_v11 = vld [vmem:[%s3542_s26 + $0x18] sm:$0xff]  ;;  %v284_v35 = vld [vmem:[%s3542_s26 + $0x30] sm:$0xff]  ;;  %v286_v8 = vld [vmem:[%s3542_s26 + $0x40] sm:$0xff] }
  0xef   : > { %v3068_v39 = vpop.eup %3067  ;;  %v544_v41 = vmul.f32 %v3066_v37, %v3785_v51  ;;  %v555_v32 = vand.u32 2147483648, %v3754_v62  ;;  %vm659_vm13 = vcmp.eq.f32.partialorder %v3715_v2, 0.0  ;;  %3085 = vrcp.f32 %v668_v9  ;;  %v285_v37 = vld [vmem:[%s3542_s26 + $0x38] sm:$0xff]  ;;  %v290_v9 = vld [vmem:[%s3542_s26 + $0x60] sm:$0xff] }
  0xf0   : > { %v3070_v42 = vpop.eup %3069  ;;  %v805_v50 = vmul.f32 %v3068_v39, %v3453_v52  ;;  %vm650_vm14 = vcmp.eq.f32.partialorder %v3771_v19, inf  ;;  %3087 = vrcp.f32 %v563_v24  ;;  %v661_v28 = vsel %vm659_vm13, %v660_v33, %v658_v56  ;;  %v288_v39 = vld [vmem:[%s3542_s26 + $0x50] sm:$0xff]  ;;  %v294_v24 = vld [vmem:[%s3542_s26 + $0x80] sm:$0xff] }
  0xf1   : > { %2817 = vmatpush3.xpose.msk.msra.mxu0 %vm407_vm0, %v777_v61  ;;  %v3072_v48 = vpop.eup %3071  ;;  %v775_v31 = vmul.f32 %v3070_v42, %v3444_v47  ;;  %vm545_vm15 = vcmp.eq.f32.partialorder %v3785_v51, inf  ;;  %v651_v54 = vsel %vm650_vm14, %v3771_v19, %v649_v57  ;;  %v556_v2 = vsel %vm554_vm12, %v555_v32, %v553_v46  ;;  %v289_v61 = vld [vmem:[%s3542_s26 + $0x58] sm:$0xff]  ;;  %v291_v42 = vld [vmem:[%s3542_s26 + $0x68] sm:$0xff]  ;;  %v292_v56 = vld [vmem:[%s3542_s26 + $0x70] sm:$0xff] }
  0xf2   : > { %2818 = vmatprep.subr.msk.mxu0 %vm407_vm0, %v807_v6  ;;  %v3074_v45 = vpop.eup %3073  ;;  %v546_v14 = vsel %vm545_vm15, %v3785_v51, %v544_v41  ;;  %v653_v52 = vand.u32 2147483648, %v3771_v19  ;;  %v537_v26 = vmul.f32 %v3072_v48, %v3803_v23  ;;  %v548_v47 = vand.u32 2147483648, %v3785_v51  ;;  %v287_v6 = vld [vmem:[%s3542_s26 + $0x48] sm:$0xff]  ;;  %v293_v57 = vld [vmem:[%s3542_s26 + $0x78] sm:$0xff]  ;;  %v296_v33 = vld [vmem:[%s3542_s26 + $0x90] sm:$0xff] }
  0xf3   : > { %v3076_v15 = vpop.eup %3075  ;;  %vm652_vm1 = vcmp.eq.f32.partialorder %v3771_v19, 0.0  ;;  %v803_v5 = vmul.f32 %v3074_v45, %v3465_v58  ;;  %3089 = vrcp.f32 %v661_v28  ;;  %vm547_vm2 = vcmp.eq.f32.partialorder %v3785_v51, 0.0  ;;  %v295_v46 = vld [vmem:[%s3542_s26 + $0x88] sm:$0xff]  ;;  %v297_v41 = vld [vmem:[%s3542_s26 + $0x98] sm:$0xff]  ;;  %v298_v48 = vld [vmem:[%s3542_s26 + $0xa0] sm:$0xff] }
  0xf4   : > { %v3078_v44 = vpop.eup %3077  ;;  %v773_v62 = vmul.f32 %v3076_v15, %v3456_v53  ;;  %3091 = vrcp.f32 %v556_v2  ;;  %v654_v27 = vsel %vm652_vm1, %v653_v52, %v651_v54  ;;  %vm538_vm3 = vcmp.eq.f32.partialorder %v3803_v23, inf  ;;  %v299_v32 = vld [vmem:[%s3542_s26 + $0xa8] sm:$0xff]  ;;  %v301_v45 = vld [vmem:[%s3542_s26 + $0xb8] sm:$0xff]  ;;  %v304_v15 = vld [vmem:[%s3542_s26 + $0xd0] sm:$0xff] }
  0xf5   : > { %2819 = vmatpush3.xpose.msk.msra.mxu0 %vm407_vm0, %v775_v31  ;;  %v3080_v22 = vpop.eup %3079  ;;  %v549_v55 = vsel %vm547_vm2, %v548_v47, %v546_v14  ;;  %v539_v25 = vsel %vm538_vm3, %v3803_v23, %v537_v26  ;;  %v541_v19 = vand.u32 2147483648, %v3803_v23  ;;  %v801_v58 = vmul.f32 %v3078_v44, %v3477_v3  ;;  %v302_v31 = vld [vmem:[%s3542_s26 + $0xc0] sm:$0xff]  ;;  %v303_v28 = vld [vmem:[%s3542_s26 + $0xc8] sm:$0xff]  ;;  %v305_v54 = vld [vmem:[%s3542_s26 + $0xd8] sm:$0xff] }
  0xf6   : > { %2820 = vmatprep.subr.msk.mxu0 %vm407_vm0, %v805_v50  ;;  %3093 = vrcp.f32 %v654_v27  ;;  %vm540_vm4 = vcmp.eq.f32.partialorder %v3803_v23, 0.0  ;;  %v771_v53 = vmul.f32 %v3080_v22, %v3468_v59  ;;  %v300_v50 = vld [vmem:[%s3542_s26 + $0xb0] sm:$0xff]  ;;  %v306_v2 = vld [vmem:[%s3542_s26 + $0xe0] sm:$0xff]  ;;  %v307_v14 = vld [vmem:[%s3542_s26 + $0xe8] sm:$0xff]  ;;  %v5269_v47 = vlaneseq }
  0xf7   : > { %3095 = vrcp.f32 %v549_v55  ;;  %v542_v10 = vsel %vm540_vm4, %v541_v19, %v539_v25  ;;  %v308_v52 = vld [vmem:[%s3542_s26 + $0xf0] sm:$0xff]  ;;  %v309_v26 = vld [vmem:[%s3542_s26 + $0xf8] sm:$0xff] }
  0xf8   : > { %v3082_v51 = vpop.eup %3081  ;;  %3097 = vrcp.f32 %v542_v10 }
  0xf9   : > { %2821 = vmatpush3.xpose.msk.msra.mxu0 %vm407_vm0, %v773_v62  ;;  %v3084_v60 = vpop.eup %3083  ;;  %v799_v29 = vmul.f32 %v3082_v51, %v3489_v12  ;;  %v342_v62 = vld [vmem:[%s5262_s2] sm:$0x3] }
  0xfa   : > { %2822 = vmatprep.subr.msk.mxu0 %vm407_vm0, %v803_v5  ;;  %v769_v0 = vmul.f32 %v3084_v60, %v3480_v4  ;;  %v1275_v5 = vshrl.u32 %v5269_v47, 7 }
  0xfc   : > { %v3086_v43 = vpop.eup %3085  ;;  %v1276_v44 = vsub.s32 0, %v1275_v5  ;;  %v1280_v27 = vsub.s32 1, %v1275_v5 }
  0xfd   : > { %2823 = vmatpush3.xpose.msk.msra.mxu0 %vm407_vm0, %v771_v53  ;;  %v3088_v3 = vpop.eup %3087  ;;  %v797_v59 = vmul.f32 %v3086_v43, %v3501_v20  ;;  %v5316_v20 = vld [vmem:[#allocation2_spill] sm:$0xff] }
  0xfe   : > { %2824 = vmatprep.subr.msk.mxu0 %vm407_vm0, %v801_v58  ;;  %v767_v34 = vmul.f32 %v3088_v3, %v3492_v13  ;;  %v4014_v22 = vrot.slane %v342_v62, %v1276_v44  ;;  %v4016_v55 = vrot.slane %v342_v62, %v1280_v27 }
 0x100   : > { %v3090_v23 = vpop.eup %3089  ;;  %5319 = vst [vmem:[#allocation2_spill] sm:$0xff] %v4014_v22 }
 0x101   : > { %2825 = vmatpush3.xpose.msk.msra.mxu0 %vm407_vm0, %v769_v0  ;;  %v3092_v1 = vpop.eup %3091  ;;  %v795_v12 = vmul.f32 %v3090_v23, %v3513_v30  ;;  %v5317_v30 = vld [vmem:[#allocation3_spill] sm:$0xff] }
 0x102   : > { %2826 = vmatprep.subr.msk.mxu0 %vm407_vm0, %v799_v29  ;;  %v765_v18 = vmul.f32 %v3092_v1, %v3504_v21  ;;  %v279_v21 = vld [vmem:[%s3542_s26 + $0x8] sm:$0xff]  ;;  %5320 = vst [vmem:[#allocation3_spill] sm:$0xff] %v4016_v55 }
 0x103   : > { %v3094_v4 = vpop.eup %3093 }
 0x104   : > { %v3096_v16 = vpop.eup %3095  ;;  %v793_v13 = vmul.f32 %v3094_v4, %v3525_v38  ;;  %v280_v38 = vld [vmem:[%s3542_s26 + $0x10] sm:$0xff] }
 0x105   : > { %2827 = vmatpush3.xpose.msk.msra.mxu0 %vm407_vm0, %v767_v34  ;;  %v763_v49 = vmul.f32 %v3096_v16, %v5316_v20  ;;  %v3098_v17 = vpop.eup %3097 }
 0x106   : > { %2828 = vmatprep.subr.msk.mxu0 %vm407_vm0, %v797_v59  ;;  %v761_v63 = vmul.f32 %v3098_v17, %v5317_v30 }
 0x109   : > { %2829 = vmatpush3.xpose.msk.msra.mxu0 %vm407_vm0, %v765_v18 }
 0x10a   : > { %2830 = vmatprep.subr.msk.mxu0 %vm407_vm0, %v795_v12 }
 0x10d   : > { %2831 = vmatpush3.xpose.msk.msra.mxu0 %vm407_vm0, %v763_v49 }
 0x10e   : > { %2832 = vmatprep.subr.msk.mxu0 %vm407_vm0, %v793_v13 }
 0x111   : > { %2833 = vmatpush3.xpose.msk.msra.mxu0 %vm407_vm0, %v761_v63 }
 0x114   : > { %2835 = vmatmul.mubr.msk.f32.vlgmr.msra.gmra.mxu0 %vm407_vm0, %v5318_v7 }
 0x115   : > { %2836 = vmatprep.mubr.msk.f32.mxu0 %vm407_vm0, %v279_v21 }
 0x118   : > { %2837 = vmatmul.mubr.msk.f32.gmra.mxu0 %vm407_vm0, %v279_v21 }
 0x119   : > { %2838 = vmatprep.mubr.msk.f32.mxu0 %vm407_vm0, %v280_v38 }
 0x11c   : > { %2839 = vmatmul.mubr.msk.f32.gmra.mxu0 %vm407_vm0, %v280_v38 }
 0x11d   : > { %2840 = vmatprep.mubr.msk.f32.mxu0 %vm407_vm0, %v281_v11 }
 0x120   : > { %2841 = vmatmul.mubr.msk.f32.gmra.mxu0 %vm407_vm0, %v281_v11 }
 0x121   : > { %2842 = vmatprep.mubr.msk.f32.mxu0 %vm407_vm0, %v282_v40 }
 0x124   : > { %2843 = vmatmul.mubr.msk.f32.gmra.mxu0 %vm407_vm0, %v282_v40 }
 0x125   : > { %2844 = vmatprep.mubr.msk.f32.mxu0 %vm407_vm0, %v283_v36 }
 0x128   : > { %2845 = vmatmul.mubr.msk.f32.gmra.mxu0 %vm407_vm0, %v283_v36 }
 0x129   : > { %2846 = vmatprep.mubr.msk.f32.mxu0 %vm407_vm0, %v284_v35 }
 0x12c   : > { %2847 = vmatmul.mubr.msk.f32.gmra.mxu0 %vm407_vm0, %v284_v35 }
 0x12d   : > { %2848 = vmatprep.mubr.msk.f32.mxu0 %vm407_vm0, %v285_v37 }
 0x130   : > { %2849 = vmatmul.mubr.msk.f32.gmra.mxu0 %vm407_vm0, %v285_v37 }
 0x131   : > { %2850 = vmatprep.mubr.msk.f32.mxu0 %vm407_vm0, %v286_v8 }
 0x134   : > { %2851 = vmatmul.mubr.msk.f32.gmra.mxu0 %vm407_vm0, %v286_v8 }
 0x135   : > { %2852 = vmatprep.mubr.msk.f32.mxu0 %vm407_vm0, %v287_v6 }
 0x138   : > { %2853 = vmatmul.mubr.msk.f32.gmra.mxu0 %vm407_vm0, %v287_v6 }
 0x139   : > { %2854 = vmatprep.mubr.msk.f32.mxu0 %vm407_vm0, %v288_v39 }
 0x13c   : > { %2855 = vmatmul.mubr.msk.f32.gmra.mxu0 %vm407_vm0, %v288_v39 }
 0x13d   : > { %2856 = vmatprep.mubr.msk.f32.mxu0 %vm407_vm0, %v289_v61 }
 0x140   : > { %2857 = vmatmul.mubr.msk.f32.gmra.mxu0 %vm407_vm0, %v289_v61 }
 0x141   : > { %2858 = vmatprep.mubr.msk.f32.mxu0 %vm407_vm0, %v290_v9 }
 0x144   : > { %2859 = vmatmul.mubr.msk.f32.gmra.mxu0 %vm407_vm0, %v290_v9 }
 0x145   : > { %2860 = vmatprep.mubr.msk.f32.mxu0 %vm407_vm0, %v291_v42 }
 0x148   : > { %2861 = vmatmul.mubr.msk.f32.gmra.mxu0 %vm407_vm0, %v291_v42 }
 0x149   : > { %2862 = vmatprep.mubr.msk.f32.mxu0 %vm407_vm0, %v292_v56 }
 0x14c   : > { %2863 = vmatmul.mubr.msk.f32.gmra.mxu0 %vm407_vm0, %v292_v56 }
 0x14d   : > { %2864 = vmatprep.mubr.msk.f32.mxu0 %vm407_vm0, %v293_v57 }
 0x150   : > { %2865 = vmatmul.mubr.msk.f32.gmra.mxu0 %vm407_vm0, %v293_v57 }
 0x151   : > { %2866 = vmatprep.mubr.msk.f32.mxu0 %vm407_vm0, %v294_v24 }
 0x154   : > { %2867 = vmatmul.mubr.msk.f32.gmra.mxu0 %vm407_vm0, %v294_v24 }
 0x155   : > { %2868 = vmatprep.mubr.msk.f32.mxu0 %vm407_vm0, %v295_v46 }
 0x158   : > { %2869 = vmatmul.mubr.msk.f32.gmra.mxu0 %vm407_vm0, %v295_v46 }
 0x159   : > { %2870 = vmatprep.mubr.msk.f32.mxu0 %vm407_vm0, %v296_v33 }
 0x15c   : > { %2871 = vmatmul.mubr.msk.f32.gmra.mxu0 %vm407_vm0, %v296_v33 }
 0x15d   : > { %2872 = vmatprep.mubr.msk.f32.mxu0 %vm407_vm0, %v297_v41 }
 0x160   : > { %2873 = vmatmul.mubr.msk.f32.gmra.mxu0 %vm407_vm0, %v297_v41 }
 0x161   : > { %2874 = vmatprep.mubr.msk.f32.mxu0 %vm407_vm0, %v298_v48 }
 0x164   : > { %2875 = vmatmul.mubr.msk.f32.gmra.mxu0 %vm407_vm0, %v298_v48 }
 0x165   : > { %2876 = vmatprep.mubr.msk.f32.mxu0 %vm407_vm0, %v299_v32 }
 0x168   : > { %2877 = vmatmul.mubr.msk.f32.gmra.mxu0 %vm407_vm0, %v299_v32 }
 0x169   : > { %2878 = vmatprep.mubr.msk.f32.mxu0 %vm407_vm0, %v300_v50 }
 0x16c   : > { %2879 = vmatmul.mubr.msk.f32.gmra.mxu0 %vm407_vm0, %v300_v50 }
 0x16d   : > { %2880 = vmatprep.mubr.msk.f32.mxu0 %vm407_vm0, %v301_v45 }
 0x170   : > { %2881 = vmatmul.mubr.msk.f32.gmra.mxu0 %vm407_vm0, %v301_v45 }
 0x171   : > { %2882 = vmatprep.mubr.msk.f32.mxu0 %vm407_vm0, %v302_v31 }
 0x174   : > { %2883 = vmatmul.mubr.msk.f32.gmra.mxu0 %vm407_vm0, %v302_v31 }
 0x175   : > { %2884 = vmatprep.mubr.msk.f32.mxu0 %vm407_vm0, %v303_v28 }
 0x178   : > { %2885 = vmatmul.mubr.msk.f32.gmra.mxu0 %vm407_vm0, %v303_v28 }
 0x179   : > { %2886 = vmatprep.mubr.msk.f32.mxu0 %vm407_vm0, %v304_v15 }
 0x17c   : > { %2887 = vmatmul.mubr.msk.f32.gmra.mxu0 %vm407_vm0, %v304_v15 }
 0x17d   : > { %2888 = vmatprep.mubr.msk.f32.mxu0 %vm407_vm0, %v305_v54 }
 0x180   : > { %2889 = vmatmul.mubr.msk.f32.gmra.mxu0 %vm407_vm0, %v305_v54 }
 0x181   : > { %2890 = vmatprep.mubr.msk.f32.mxu0 %vm407_vm0, %v306_v2 }
 0x184   : > { %2891 = vmatmul.mubr.msk.f32.gmra.mxu0 %vm407_vm0, %v306_v2 }
 0x185   : > { %2892 = vmatprep.mubr.msk.f32.mxu0 %vm407_vm0, %v307_v14 }
 0x188   : > { %2893 = vmatmul.mubr.msk.f32.gmra.mxu0 %vm407_vm0, %v307_v14 }
 0x189   : > { %2894 = vmatprep.mubr.msk.f32.mxu0 %vm407_vm0, %v308_v52 }
 0x18c   : > { %2895 = vmatmul.mubr.msk.f32.gmra.mxu0 %vm407_vm0, %v308_v52 }
 0x18d   : > { %2896 = vmatprep.mubr.msk.f32.mxu0 %vm407_vm0, %v309_v26 }
 0x190   : > { %2897 = vmatmul.mubr.msk.f32.gmra.mxu0 %vm407_vm0, %v309_v26 }
 0x1d4   : > { %v1082_v25 = vpop.f32.mrf.mxu0 }
 0x1d5   : > { %v1284_v19 = vmul.f32 %v4014_v22, %v1082_v25 }
 0x1d6   : > { %v1084_v58 = vpop.f32.mrf.mxu0 }
 0x1d7   : > { %v1285_v51 = vmul.f32 %v4016_v55, %v1084_v58  ;;  %v4020_v60 = vmul.f32 10.0, %v1284_v19 }
 0x1d8   : > { %v1088_v53 = vpop.f32.mrf.mxu0 }
 0x1d9   : > { %v4022_v10 = vmul.f32 10.0, %v1285_v51  ;;  %v1286_v29 = vmul.f32 %v4014_v22, %v1088_v53 }
 0x1da   : > { %v1090_v43 = vpop.f32.mrf.mxu0 }
 0x1db   : > { %v1287_v0 = vmul.f32 %v4016_v55, %v1090_v43  ;;  %v1412_v3 = vmax.f32 %v4020_v60, %v4022_v10  ;;  %v4028_v23 = vmul.f32 10.0, %v1286_v29 }
 0x1dc   : > { %v1094_v59 = vpop.f32.mrf.mxu0 }
 0x1dd   : > { %v4030_v34 = vmul.f32 10.0, %v1287_v0  ;;  %v1288_v1 = vmul.f32 %v4014_v22, %v1094_v59  ;;  %1413 = vmax.xlane.f32.xlu0 %v1412_v3 }
 0x1de   : > { %v1096_v12 = vpop.f32.mrf.mxu0 }
 0x1df   : > { %v1289_v4 = vmul.f32 %v4016_v55, %v1096_v12  ;;  %v1415_v18 = vmax.f32 %v4028_v23, %v4030_v34  ;;  %v4036_v13 = vmul.f32 10.0, %v1288_v1 }
 0x1e0   : > { %v1100_v16 = vpop.f32.mrf.mxu0 }
 0x1e1   : > { %v4038_v20 = vmul.f32 10.0, %v1289_v4  ;;  %v1290_v49 = vmul.f32 %v4014_v22, %v1100_v16  ;;  %1416 = vmax.xlane.f32.xlu1 %v1415_v18 }
 0x1e2   : > { %v1102_v17 = vpop.f32.mrf.mxu0 }
 0x1e3   : > { %v1291_v30 = vmul.f32 %v4016_v55, %v1102_v17  ;;  %v1418_v63 = vmax.f32 %v4036_v13, %v4038_v20  ;;  %v4044_v7 = vmul.f32 10.0, %v1290_v49 }
 0x1e4   : > { %v1106_v21 = vpop.f32.mrf.mxu0 }
 0x1e5   : > { %v4046_v38 = vmul.f32 10.0, %v1291_v30  ;;  %v1292_v11 = vmul.f32 %v4014_v22, %v1106_v21  ;;  %1419 = vmax.xlane.f32.xlu0 %v1418_v63 }
 0x1e6   : > { %v1108_v40 = vpop.f32.mrf.mxu0 }
 0x1e7   : > { %v1293_v36 = vmul.f32 %v4016_v55, %v1108_v40  ;;  %v1421_v35 = vmax.f32 %v4044_v7, %v4046_v38  ;;  %v4052_v8 = vmul.f32 10.0, %v1292_v11 }
 0x1e8   : > { %v1112_v37 = vpop.f32.mrf.mxu0 }
 0x1e9   : > { %v4054_v6 = vmul.f32 10.0, %v1293_v36  ;;  %v1294_v39 = vmul.f32 %v4014_v22, %v1112_v37  ;;  %1422 = vmax.xlane.f32.xlu1 %v1421_v35 }
 0x1ea   : > { %v1114_v61 = vpop.f32.mrf.mxu0 }
 0x1eb   : > { %v1295_v9 = vmul.f32 %v4016_v55, %v1114_v61  ;;  %v1424_v42 = vmax.f32 %v4052_v8, %v4054_v6  ;;  %v4060_v57 = vmul.f32 10.0, %v1294_v39 }
 0x1ec   : > { %v1118_v56 = vpop.f32.mrf.mxu0 }
 0x1ed   : > { %v4062_v24 = vmul.f32 10.0, %v1295_v9  ;;  %v1296_v46 = vmul.f32 %v4014_v22, %v1118_v56  ;;  %1425 = vmax.xlane.f32.xlu0 %v1424_v42 }
 0x1ee   : > { %v1120_v33 = vpop.f32.mrf.mxu0 }
 0x1ef   : > { %v1297_v41 = vmul.f32 %v4016_v55, %v1120_v33  ;;  %v1427_v48 = vmax.f32 %v4060_v57, %v4062_v24  ;;  %v4068_v50 = vmul.f32 10.0, %v1296_v46 }
 0x1f0   : > { %v1124_v32 = vpop.f32.mrf.mxu0 }
 0x1f1   : > { %v4070_v45 = vmul.f32 10.0, %v1297_v41  ;;  %v1298_v31 = vmul.f32 %v4014_v22, %v1124_v32  ;;  %1428 = vmax.xlane.f32.xlu1 %v1427_v48 }
 0x1f2   : > { %v1126_v28 = vpop.f32.mrf.mxu0 }
 0x1f3   : > { %v1299_v15 = vmul.f32 %v4016_v55, %v1126_v28  ;;  %v1430_v54 = vmax.f32 %v4068_v50, %v4070_v45  ;;  %v4076_v14 = vmul.f32 10.0, %v1298_v31 }
 0x1f4   : > { %v1130_v2 = vpop.f32.mrf.mxu0 }
 0x1f5   : > { %v4078_v52 = vmul.f32 10.0, %v1299_v15  ;;  %v1300_v26 = vmul.f32 %v4014_v22, %v1130_v2  ;;  %1431 = vmax.xlane.f32.xlu0 %v1430_v54 }
 0x1f6   : > { %v1132_v5 = vpop.f32.mrf.mxu0 }
 0x1f7   : > { %v1301_v44 = vmul.f32 %v4016_v55, %v1132_v5  ;;  %v1433_v62 = vmax.f32 %v4076_v14, %v4078_v52  ;;  %v4084_v25 = vmul.f32 10.0, %v1300_v26 }
 0x1f8   : > { %v1136_v27 = vpop.f32.mrf.mxu0 }
 0x1f9   : > { %v4086_v19 = vmul.f32 10.0, %v1301_v44  ;;  %v1302_v58 = vmul.f32 %v4014_v22, %v1136_v27  ;;  %1434 = vmax.xlane.f32.xlu1 %v1433_v62 }
 0x1fa   : > { %v1138_v51 = vpop.f32.mrf.mxu0 }
 0x1fb   : > { %v1303_v53 = vmul.f32 %v4016_v55, %v1138_v51  ;;  %v1436_v29 = vmax.f32 %v4084_v25, %v4086_v19  ;;  %v4092_v0 = vmul.f32 10.0, %v1302_v58 }
 0x1fc   : > { %v1142_v43 = vpop.f32.mrf.mxu0 }
 0x1fd   : > { %v4094_v3 = vmul.f32 10.0, %v1303_v53  ;;  %v1304_v59 = vmul.f32 %v4014_v22, %v1142_v43  ;;  %1437 = vmax.xlane.f32.xlu0 %v1436_v29 }
 0x1fe   : > { %v1144_v1 = vpop.f32.mrf.mxu0 }
 0x1ff   : > { %v1305_v12 = vmul.f32 %v4016_v55, %v1144_v1  ;;  %v1439_v4 = vmax.f32 %v4092_v0, %v4094_v3  ;;  %v4100_v16 = vmul.f32 10.0, %v1304_v59 }
 0x200   : > { %v1148_v18 = vpop.f32.mrf.mxu0 }
 0x201   : > { %v4102_v49 = vmul.f32 10.0, %v1305_v12  ;;  %v1306_v17 = vmul.f32 %v4014_v22, %v1148_v18  ;;  %1440 = vmax.xlane.f32.xlu1 %v1439_v4 }
 0x202   : > { %v1150_v30 = vpop.f32.mrf.mxu0 }
 0x203   : > { %v1307_v63 = vmul.f32 %v4016_v55, %v1150_v30  ;;  %v1442_v21 = vmax.f32 %v4100_v16, %v4102_v49  ;;  %v4108_v40 = vmul.f32 10.0, %v1306_v17 }
 0x204   : > { %v1154_v11 = vpop.f32.mrf.mxu0 }
 0x205   : > { %v4110_v36 = vmul.f32 10.0, %v1307_v63  ;;  %v1308_v35 = vmul.f32 %v4014_v22, %v1154_v11  ;;  %1443 = vmax.xlane.f32.xlu0 %v1442_v21 }
 0x206   : > { %v1156_v37 = vpop.f32.mrf.mxu0 }
 0x207   : > { %v1309_v39 = vmul.f32 %v4016_v55, %v1156_v37  ;;  %v1445_v61 = vmax.f32 %v4108_v40, %v4110_v36  ;;  %v4116_v42 = vmul.f32 10.0, %v1308_v35 }
 0x208   : > { %v1160_v9 = vpop.f32.mrf.mxu0 }
 0x209   : > { %v4118_v56 = vmul.f32 10.0, %v1309_v39  ;;  %v1310_v46 = vmul.f32 %v4014_v22, %v1160_v9  ;;  %1446 = vmax.xlane.f32.xlu1 %v1445_v61 }
 0x20a   : > { %v1162_v33 = vpop.f32.mrf.mxu0 }
 0x20b   : > { %v1311_v41 = vmul.f32 %v4016_v55, %v1162_v33  ;;  %v1448_v48 = vmax.f32 %v4116_v42, %v4118_v56  ;;  %v4124_v31 = vmul.f32 10.0, %v1310_v46 }
 0x20c   : > { %v1166_v32 = vpop.f32.mrf.mxu0 }
 0x20d   : > { %v4126_v28 = vmul.f32 10.0, %v1311_v41  ;;  %v1312_v15 = vmul.f32 %v4014_v22, %v1166_v32  ;;  %1449 = vmax.xlane.f32.xlu0 %v1448_v48 }
 0x20e   : > { %v1168_v54 = vpop.f32.mrf.mxu0 }
 0x20f   : > { %v1313_v2 = vmul.f32 %v4016_v55, %v1168_v54  ;;  %v1451_v26 = vmax.f32 %v4124_v31, %v4126_v28  ;;  %v4132_v44 = vmul.f32 10.0, %v1312_v15 }
 0x210   : > { %v1172_v5 = vpop.f32.mrf.mxu0 }
 0x211   : > { %v4134_v62 = vmul.f32 10.0, %v1313_v2  ;;  %v1314_v27 = vmul.f32 %v4014_v22, %v1172_v5  ;;  %1452 = vmax.xlane.f32.xlu1 %v1451_v26 }
 0x212   : > { %v1174_v58 = vpop.f32.mrf.mxu0 }
 0x213   : > { %v1315_v51 = vmul.f32 %v4016_v55, %v1174_v58  ;;  %v1454_v53 = vmax.f32 %v4132_v44, %v4134_v62  ;;  %v4140_v43 = vmul.f32 10.0, %v1314_v27 }
 0x214   : > { %v1178_v29 = vpop.f32.mrf.mxu0 }
 0x215   : > { %v4142_v59 = vmul.f32 10.0, %v1315_v51  ;;  %v1316_v1 = vmul.f32 %v4014_v22, %v1178_v29  ;;  %1455 = vmax.xlane.f32.xlu0 %v1454_v53 }
 0x216   : > { %v1180_v12 = vpop.f32.mrf.mxu0 }
 0x217   : > { %v1317_v4 = vmul.f32 %v4016_v55, %v1180_v12  ;;  %v1457_v18 = vmax.f32 %v4140_v43, %v4142_v59  ;;  %v4148_v30 = vmul.f32 10.0, %v1316_v1 }
 0x218   : > { %v1184_v17 = vpop.f32.mrf.mxu0 }
 0x219   : > { %v4150_v63 = vmul.f32 10.0, %v1317_v4  ;;  %v1318_v21 = vmul.f32 %v4014_v22, %v1184_v17  ;;  %1458 = vmax.xlane.f32.xlu1 %v1457_v18 }
 0x21a   : > { %v1186_v11 = vpop.f32.mrf.mxu0 }
 0x21b   : > { %v1319_v35 = vmul.f32 %v4016_v55, %v1186_v11  ;;  %v1460_v37 = vmax.f32 %v4148_v30, %v4150_v63  ;;  %v4156_v61 = vmul.f32 10.0, %v1318_v21 }
 0x21c   : > { %v1190_v39 = vpop.f32.mrf.mxu0 }
 0x21d   : > { %v4158_v9 = vmul.f32 10.0, %v1319_v35  ;;  %v1320_v46 = vmul.f32 %v4014_v22, %v1190_v39  ;;  %1461 = vmax.xlane.f32.xlu0 %v1460_v37 }
 0x21e   : > { %v1192_v33 = vpop.f32.mrf.mxu0 }
 0x21f   : > { %v1321_v41 = vmul.f32 %v4016_v55, %v1192_v33  ;;  %v1463_v48 = vmax.f32 %v4156_v61, %v4158_v9  ;;  %v4164_v15 = vmul.f32 10.0, %v1320_v46 }
 0x220   : > { %v1196_v32 = vpop.f32.mrf.mxu0 }
 0x221   : > { %v4166_v54 = vmul.f32 10.0, %v1321_v41  ;;  %v1322_v2 = vmul.f32 %v4014_v22, %v1196_v32  ;;  %1464 = vmax.xlane.f32.xlu1 %v1463_v48 }
 0x222   : > { %v1198_v26 = vpop.f32.mrf.mxu0 }
 0x223   : > { %v1323_v5 = vmul.f32 %v4016_v55, %v1198_v26  ;;  %v1466_v27 = vmax.f32 %v4164_v15, %v4166_v54  ;;  %v4172_v51 = vmul.f32 10.0, %v1322_v2 }
 0x224   : > { %v1202_v58 = vpop.f32.mrf.mxu0 }
 0x225   : > { %v4174_v53 = vmul.f32 10.0, %v1323_v5  ;;  %v1324_v29 = vmul.f32 %v4014_v22, %v1202_v58  ;;  %1467 = vmax.xlane.f32.xlu0 %v1466_v27 }
 0x226   : > { %v1204_v1 = vpop.f32.mrf.mxu0 }
 0x227   : > { %v1325_v12 = vmul.f32 %v4016_v55, %v1204_v1  ;;  %v1469_v4 = vmax.f32 %v4172_v51, %v4174_v53  ;;  %v4180_v17 = vmul.f32 10.0, %v1324_v29 }
 0x228   : > { %v1208_v18 = vpop.f32.mrf.mxu0 }
 0x229   : > { %v4182_v21 = vmul.f32 10.0, %v1325_v12  ;;  %v1326_v11 = vmul.f32 %v4014_v22, %v1208_v18  ;;  %1470 = vmax.xlane.f32.xlu1 %v1469_v4 }
 0x22a   : > { %v1210_v35 = vpop.f32.mrf.mxu0 }
 0x22b   : > { %v1327_v37 = vmul.f32 %v4016_v55, %v1210_v35  ;;  %v1472_v39 = vmax.f32 %v4180_v17, %v4182_v21  ;;  %v4188_v33 = vmul.f32 10.0, %v1326_v11 }
 0x22c   : > { %v1214_v46 = vpop.f32.mrf.mxu0 }
 0x22d   : > { %v4190_v41 = vmul.f32 10.0, %v1327_v37  ;;  %v1328_v48 = vmul.f32 %v4014_v22, %v1214_v46  ;;  %1473 = vmax.xlane.f32.xlu0 %v1472_v39 }
 0x22e   : > { %v1216_v32 = vpop.f32.mrf.mxu0 }
 0x22f   : > { %v1329_v2 = vmul.f32 %v4016_v55, %v1216_v32  ;;  %v1475_v26 = vmax.f32 %v4188_v33, %v4190_v41  ;;  %v4196_v27 = vmul.f32 10.0, %v1328_v48 }
 0x230   : > { %v1220_v5 = vpop.f32.mrf.mxu0 }
 0x231   : > { %v4198_v58 = vmul.f32 10.0, %v1329_v2  ;;  %v1330_v29 = vmul.f32 %v4014_v22, %v1220_v5  ;;  %1476 = vmax.xlane.f32.xlu1 %v1475_v26 }
 0x232   : > { %v1222_v1 = vpop.f32.mrf.mxu0 }
 0x233   : > { %v1331_v12 = vmul.f32 %v4016_v55, %v1222_v1  ;;  %v1478_v4 = vmax.f32 %v4196_v27, %v4198_v58  ;;  %v4204_v11 = vmul.f32 10.0, %v1330_v29 }
 0x234   : > { %v1226_v18 = vpop.f32.mrf.mxu0 }
 0x235   : > { %v4206_v35 = vmul.f32 10.0, %v1331_v12  ;;  %v1332_v37 = vmul.f32 %v4014_v22, %v1226_v18  ;;  %1479 = vmax.xlane.f32.xlu0 %v1478_v4 }
 0x236   : > { %v1228_v39 = vpop.f32.mrf.mxu0 }
 0x237   : > { %5321 = vst [vmem:[#allocation4_spill] sm:$0xff] %v4206_v35  ;;  %v1333_v46 = vmul.f32 %v4016_v55, %v1228_v39  ;;  %v1481_v48 = vmax.f32 %v4204_v11, %v4206_v35  ;;  %v4212_v2 = vmul.f32 10.0, %v1332_v37 }
 0x238   : > { %v1232_v32 = vpop.f32.mrf.mxu0 }
 0x239   : > { %5322 = vst [vmem:[#allocation5_spill] sm:$0xff] %v4212_v2  ;;  %v4214_v26 = vmul.f32 10.0, %v1333_v46  ;;  %v1334_v5 = vmul.f32 %v4014_v22, %v1232_v32  ;;  %1482 = vmax.xlane.f32.xlu0 %v1481_v48 }
 0x23a   : > { %v1234_v29 = vpop.f32.mrf.mxu0 }
 0x23b   : > { %5323 = vst [vmem:[#allocation6_spill] sm:$0xff] %v4214_v26  ;;  %v1335_v1 = vmul.f32 %v4016_v55, %v1234_v29  ;;  %v1484_v12 = vmax.f32 %v4212_v2, %v4214_v26  ;;  %v4220_v18 = vmul.f32 10.0, %v1334_v5 }
 0x23c   : > { %v1238_v4 = vpop.f32.mrf.mxu0 }
 0x23d   : > { %5324 = vst [vmem:[#allocation7_spill] sm:$0xff] %v4220_v18  ;;  %v4222_v39 = vmul.f32 10.0, %v1335_v1  ;;  %v1336_v47 = vmul.f32 %v4014_v22, %v1238_v4  ;;  %1485 = vmax.xlane.f32.xlu0 %v1484_v12 }
 0x23e   : > { %v1240_v37 = vpop.f32.mrf.mxu0 }
 0x23f   : > { %5325 = vst [vmem:[#allocation8_spill] sm:$0xff] %v4222_v39  ;;  %v1337_v46 = vmul.f32 %v4016_v55, %v1240_v37  ;;  %v1487_v48 = vmax.f32 %v4220_v18, %v4222_v39  ;;  %v4228_v35 = vmul.f32 10.0, %v1336_v47 }
 0x240   : > { %v1244_v32 = vpop.f32.mrf.mxu0 }
 0x241   : > { %5326 = vst [vmem:[#allocation9_spill] sm:$0xff] %v4228_v35  ;;  %v4230_v29 = vmul.f32 10.0, %v1337_v46  ;;  %v1338_v26 = vmul.f32 %v4014_v22, %v1244_v32  ;;  %1488 = vmax.xlane.f32.xlu0 %v1487_v48 }
 0x242   : > { %v1246_v5 = vpop.f32.mrf.mxu0 }
 0x243   : > { %5327 = vst [vmem:[#allocation10_spill] sm:$0xff] %v4230_v29  ;;  %v1339_v1 = vmul.f32 %v4016_v55, %v1246_v5  ;;  %v1490_v12 = vmax.f32 %v4228_v35, %v4230_v29  ;;  %v4236_v2 = vmul.f32 10.0, %v1338_v26 }
 0x244   : > { %v1250_v4 = vpop.f32.mrf.mxu0 }
 0x245   : > { %5328 = vst [vmem:[#allocation11_spill] sm:$0xff] %v4236_v2  ;;  %v4238_v37 = vmul.f32 10.0, %v1339_v1  ;;  %v1340_v39 = vmul.f32 %v4014_v22, %v1250_v4  ;;  %1491 = vmax.xlane.f32.xlu0 %v1490_v12 }
 0x246   : > { %v1252_v47 = vpop.f32.mrf.mxu0 }
 0x247   : > { %5329 = vst [vmem:[#allocation12_spill] sm:$0xff] %v4238_v37  ;;  %v1341_v46 = vmul.f32 %v4016_v55, %v1252_v47  ;;  %v1493_v48 = vmax.f32 %v4236_v2, %v4238_v37  ;;  %v4244_v18 = vmul.f32 10.0, %v1340_v39 }
 0x248   : > { %v1256_v32 = vpop.f32.mrf.mxu0 }
 0x249   : > { %v4246_v5 = vmul.f32 10.0, %v1341_v46  ;;  %v1342_v29 = vmul.f32 %v4014_v22, %v1256_v32  ;;  %1494 = vmax.xlane.f32.xlu0 %v1493_v48 }
 0x24a   : > { %v1258_v26 = vpop.f32.mrf.mxu0 }
 0x24b   : > { %5330 = vst [vmem:[#allocation13_spill] sm:$0xff] %v4246_v5  ;;  %v1343_v1 = vmul.f32 %v4016_v55, %v1258_v26  ;;  %v1496_v12 = vmax.f32 %v4244_v18, %v4246_v5  ;;  %v4252_v35 = vmul.f32 10.0, %v1342_v29 }
 0x24c   : > { %v1262_v4 = vpop.f32.mrf.mxu0 }
 0x24d   : > { %v4254_v47 = vmul.f32 10.0, %v1343_v1  ;;  %v1344_v37 = vmul.f32 %v4014_v22, %v1262_v4  ;;  %1497 = vmax.xlane.f32.xlu0 %v1496_v12 }
 0x24e   : > { %v1264_v39 = vpop.f32.mrf.mxu0 }
 0x24f   : > { %v1345_v46 = vmul.f32 %v4016_v55, %v1264_v39  ;;  %v1499_v48 = vmax.f32 %v4252_v35, %v4254_v47  ;;  %v4260_v26 = vmul.f32 10.0, %v1344_v37 }
 0x250   : > { %v1268_v32 = vpop.f32.mrf.mxu0 }
 0x251   : > { %v4262_v2 = vmul.f32 10.0, %v1345_v46  ;;  %v1346_v29 = vmul.f32 %v4014_v22, %v1268_v32  ;;  %1500 = vmax.xlane.f32.xlu0 %v1499_v48  ;;  %v3299_v46 = vmov 0.0   ;;  %v357_v48 = vld [vmem:[%s4278_s6 + $0x70] sm:$0xff]  ;;  %v356_v32 = vld [vmem:[%s4278_s6 + $0x68] sm:$0xff]  ;;  %v351_v22 = vld [vmem:[%s4278_s6 + $0x40] sm:$0xff] }
 0x252   : > { %v1270_v1 = vpop.f32.mrf.mxu0  ;;  %2346 = vmatprep.subr.mxu1 %v3299_v46 }
 0x253   : > { %v1347_v5 = vmul.f32 %v4016_v55, %v1270_v1  ;;  %v1502_v12 = vmax.f32 %v4260_v26, %v4262_v2  ;;  %v4268_v4 = vmul.f32 10.0, %v1346_v29  ;;  %v355_v29 = vld [vmem:[%s4278_s6 + $0x60] sm:$0xff]  ;;  %v354_v1 = vld [vmem:[%s4278_s6 + $0x58] sm:$0xff] }
 0x255   : > { %5331 = vst [vmem:[#allocation14_spill] sm:$0xff] %v4268_v4  ;;  %v4270_v39 = vmul.f32 10.0, %v1347_v5  ;;  %1503 = vmax.xlane.f32.xlu0 %v1502_v12  ;;  %v358_v5 = vld [vmem:[%s4278_s6 + $0x78] sm:$0xff] }
 0x256   : > { %2347 = vmatpush1.msra.mxu1 %v358_v5 }
 0x257   : > { %5332 = vst [vmem:[#allocation15_spill] sm:$0xff] %v4270_v39  ;;  %v1505_v37 = vmax.f32 %v4268_v4, %v4270_v39  ;;  %2348 = vmatprep.subr.mxu1 %v3299_v46 }
 0x258   : > { %2349 = vmatpush1.msra.mxu1 %v357_v48 }
 0x259   : > { %1506 = vmax.xlane.f32.xlu0 %v1505_v37  ;;  %2350 = vmatprep.subr.mxu1 %v3299_v46  ;;  %v353_v37 = vld [vmem:[%s4278_s6 + $0x50] sm:$0xff] }
 0x25a   : > { %2351 = vmatpush1.msra.mxu1 %v356_v32  ;;  %v352_v32 = vld [vmem:[%s4278_s6 + $0x48] sm:$0xff] }
 0x25b   : > { %2352 = vmatprep.subr.mxu1 %v3299_v46 }
 0x25c   : > { %2353 = vmatpush1.msra.mxu1 %v355_v29 }
 0x25d   : > { %2354 = vmatprep.subr.mxu1 %v3299_v46 }
 0x25e   : > { %2355 = vmatpush1.msra.mxu1 %v354_v1  ;;  %v350_v1 = vld [vmem:[%s4278_s6 + $0x38] sm:$0xff] }
 0x25f   : > { %2356 = vmatprep.subr.mxu1 %v3299_v46 }
 0x260   : > { %2357 = vmatpush1.msra.mxu1 %v353_v37 }
 0x261   : > { %2358 = vmatprep.subr.mxu1 %v3299_v46 }
 0x262   : > { %2359 = vmatpush1.msra.mxu1 %v352_v32 }
 0x263   : > { %2360 = vmatprep.subr.mxu1 %v3299_v46 }
 0x264   : > { %2361 = vmatpush1.msra.mxu1 %v351_v22  ;;  %v347_v22 = vld [vmem:[%s4278_s6 + $0x20] sm:$0xff] }
 0x265   : > { %2362 = vmatprep.subr.mxu1 %v3299_v46 }
 0x266   : > { %v1414_v12 = vpop.xlane.xlu0 %1413  ;;  %2363 = vmatpush1.msra.mxu1 %v350_v1 }
 0x267   : > { %v1508_v5 = vsub.f32 %v4020_v60, %v1414_v12  ;;  %v1509_v48 = vsub.f32 %v4022_v10, %v1414_v12  ;;  %v349_v10 = vld [vmem:[%s4278_s6 + $0x30] sm:$0xff]  ;;  %2364 = vmatprep.subr.mxu1 %v3299_v46 }
 0x268   : > { %2365 = vmatpush1.msra.mxu1 %v349_v10 }
 0x269   : > { %v1572_v29 = vmul.f32 1.442695, %v1508_v5  ;;  %v1574_v55 = vmul.f32 1.442695, %v1509_v48  ;;  %v348_v48 = vld [vmem:[%s4278_s6 + $0x28] sm:$0xff]  ;;  %2366 = vmatprep.subr.mxu1 %v3299_v46 }
 0x26a   : > { %v1417_v39 = vpop.xlane.xlu1 %1416  ;;  %2367 = vmatpush1.msra.mxu1 %v348_v48 }
 0x26b   : > { %3099 = vpow2.f32 %v1572_v29  ;;  %v1510_v4 = vsub.f32 %v4028_v23, %v1417_v39  ;;  %v1511_v60 = vsub.f32 %v4030_v34, %v1417_v39  ;;  %2368 = vmatprep.subr.mxu1 %v3299_v46  ;;  %v346_v39 = vld [vmem:[%s4278_s6 + $0x18] sm:$0xff] }
 0x26c   : > { %3101 = vpow2.f32 %v1574_v55  ;;  %2369 = vmatpush1.msra.mxu1 %v347_v22 }
 0x26d   : > { %v1576_v12 = vmul.f32 1.442695, %v1510_v4  ;;  %v1578_v37 = vmul.f32 1.442695, %v1511_v60  ;;  %2370 = vmatprep.subr.mxu1 %v3299_v46 }
 0x26e   : > { %v1420_v5 = vpop.xlane.xlu0 %1419  ;;  %2371 = vmatpush1.msra.mxu1 %v346_v39  ;;  %v373_v39 = vld [vmem:[%s4278_s6 + $0xf0] sm:$0xff] }
 0x26f   : > { %3103 = vpow2.f32 %v1576_v12  ;;  %v1512_v32 = vsub.f32 %v4036_v13, %v1420_v5  ;;  %v1513_v23 = vsub.f32 %v4038_v20, %v1420_v5  ;;  %v345_v20 = vld [vmem:[%s4278_s6 + $0x10] sm:$0xff]  ;;  %2372 = vmatprep.subr.mxu1 %v3299_v46  ;;  %v344_v12 = vld [vmem:[%s4278_s6 + $0x8] sm:$0xff]  ;;  %v343_v5 = vld [vmem:[%s4278_s6] sm:$0xff] }
 0x270   : > { %3105 = vpow2.f32 %v1578_v37  ;;  %2373 = vmatpush1.msra.mxu1 %v345_v20 }
 0x271   : > { %v1580_v55 = vmul.f32 1.442695, %v1512_v32  ;;  %v1582_v34 = vmul.f32 1.442695, %v1513_v23  ;;  %2374 = vmatprep.subr.mxu1 %v3299_v46 }
 0x272   : > { %v1423_v4 = vpop.xlane.xlu1 %1422  ;;  %2375 = vmatpush1.msra.mxu1 %v344_v12 }
 0x273   : > { %3107 = vpow2.f32 %v1580_v55  ;;  %v1514_v29 = vsub.f32 %v4044_v7, %v1423_v4  ;;  %v1515_v13 = vsub.f32 %v4046_v38, %v1423_v4  ;;  %2376 = vmatprep.subr.mxu1 %v3299_v46 }
 0x274   : > { %3109 = vpow2.f32 %v1582_v34  ;;  %2377 = vmatpush1.msra.mxu1 %v343_v5 }
 0x275   : > { %v1584_v1 = vmul.f32 1.442695, %v1514_v29  ;;  %v1586_v60 = vmul.f32 1.442695, %v1515_v13  ;;  %2378 = vmatprep.subr.mxu1 %v3299_v46 }
 0x276   : > { %v1426_v10 = vpop.xlane.xlu0 %1425 }
 0x277   : > { %3111 = vpow2.f32 %v1584_v1  ;;  %v1516_v37 = vsub.f32 %v4052_v8, %v1426_v10  ;;  %v1517_v7 = vsub.f32 %v4054_v6, %v1426_v10  ;;  %v374_v8 = vld [vmem:[%s4278_s6 + $0xf8] sm:$0xff] }
 0x278   : > { %v4319_v38 = vpop.eup %3099  ;;  %3113 = vpow2.f32 %v1586_v60  ;;  %2379 = vmatpush2.msra.mxu1 %v374_v8 }
 0x279   : > { %v4323_v48 = vpop.eup %3101  ;;  %v1588_v32 = vmul.f32 1.442695, %v1516_v37  ;;  %v1590_v23 = vmul.f32 1.442695, %v1517_v7  ;;  %2380 = vmatprep.subr.mxu1 %v3299_v46  ;;  %v371_v37 = vld [vmem:[%s4278_s6 + $0xe0] sm:$0xff] }
 0x27a   : > { %v1429_v22 = vpop.xlane.xlu1 %1428  ;;  %v1700_v55 = vadd.f32 %v4323_v48, %v4319_v38  ;;  %2381 = vmatpush2.msra.mxu1 %v373_v39 }
 0x27b   : > { %3115 = vpow2.f32 %v1588_v32  ;;  %v1518_v6 = vsub.f32 %v4060_v57, %v1429_v22  ;;  %v1519_v34 = vsub.f32 %v4062_v24, %v1429_v22  ;;  %v372_v24 = vld [vmem:[%s4278_s6 + $0xe8] sm:$0xff]  ;;  %2382 = vmatprep.subr.mxu1 %v3299_v46 }
 0x27c   : > { %v4331_v4 = vpop.eup %3103  ;;  %3117 = vpow2.f32 %v1590_v23  ;;  %1701 = vadd.xlane.f32.xlu1 %v1700_v55  ;;  %2383 = vmatpush2.msra.mxu1 %v372_v24 }
 0x27d   : > { %v4335_v29 = vpop.eup %3105  ;;  %v1592_v13 = vmul.f32 1.442695, %v1518_v6  ;;  %v1594_v20 = vmul.f32 1.442695, %v1519_v34  ;;  %2384 = vmatprep.subr.mxu1 %v3299_v46  ;;  %v369_v6 = vld [vmem:[%s4278_s6 + $0xd0] sm:$0xff] }
 0x27e   : > { %v1432_v1 = vpop.xlane.xlu0 %1431  ;;  %v1703_v57 = vadd.f32 %v4335_v29, %v4331_v4  ;;  %2385 = vmatpush2.msra.mxu1 %v371_v37 }
 0x27f   : > { %3119 = vpow2.f32 %v1592_v13  ;;  %v1520_v60 = vsub.f32 %v4068_v50, %v1432_v1  ;;  %v1521_v10 = vsub.f32 %v4070_v45, %v1432_v1  ;;  %v370_v45 = vld [vmem:[%s4278_s6 + $0xd8] sm:$0xff]  ;;  %2386 = vmatprep.subr.mxu1 %v3299_v46 }
 0x280   : > { %v4343_v12 = vpop.eup %3107  ;;  %3121 = vpow2.f32 %v1594_v20  ;;  %1704 = vadd.xlane.f32.xlu1 %v1703_v57  ;;  %2387 = vmatpush2.msra.mxu1 %v370_v45 }
 0x281   : > { %v4347_v7 = vpop.eup %3109  ;;  %v1596_v5 = vmul.f32 1.442695, %v1520_v60  ;;  %v1598_v32 = vmul.f32 1.442695, %v1521_v10  ;;  %2388 = vmatprep.subr.mxu1 %v3299_v46  ;;  %v367_v60 = vld [vmem:[%s4278_s6 + $0xc0] sm:$0xff] }
 0x282   : > { %v1435_v23 = vpop.xlane.xlu1 %1434  ;;  %v1706_v50 = vadd.f32 %v4347_v7, %v4343_v12  ;;  %2389 = vmatpush2.msra.mxu1 %v369_v6 }
 0x283   : > { %3123 = vpow2.f32 %v1596_v5  ;;  %v1522_v22 = vsub.f32 %v4076_v14, %v1435_v23  ;;  %v1523_v55 = vsub.f32 %v4078_v52, %v1435_v23  ;;  %v368_v52 = vld [vmem:[%s4278_s6 + $0xc8] sm:$0xff]  ;;  %2390 = vmatprep.subr.mxu1 %v3299_v46 }
 0x284   : > { %v4355_v8 = vpop.eup %3111  ;;  %3125 = vpow2.f32 %v1598_v32  ;;  %1707 = vadd.xlane.f32.xlu1 %v1706_v50  ;;  %2391 = vmatpush2.msra.mxu1 %v368_v52 }
 0x285   : > { %v4359_v34 = vpop.eup %3113  ;;  %v1600_v39 = vmul.f32 1.442695, %v1522_v22  ;;  %v1602_v13 = vmul.f32 1.442695, %v1523_v55  ;;  %2392 = vmatprep.subr.mxu1 %v3299_v46  ;;  %v365_v22 = vld [vmem:[%s4278_s6 + $0xb0] sm:$0xff] }
 0x286   : > { %v1438_v20 = vpop.xlane.xlu0 %1437  ;;  %v1709_v14 = vadd.f32 %v4359_v34, %v4355_v8  ;;  %2393 = vmatpush2.msra.mxu1 %v367_v60 }
 0x287   : > { %3127 = vpow2.f32 %v1600_v39  ;;  %v1524_v1 = vsub.f32 %v4084_v25, %v1438_v20  ;;  %v1525_v57 = vsub.f32 %v4086_v19, %v1438_v20  ;;  %v366_v19 = vld [vmem:[%s4278_s6 + $0xb8] sm:$0xff]  ;;  %2394 = vmatprep.subr.mxu1 %v3299_v46 }
 0x288   : > { %v4367_v24 = vpop.eup %3115  ;;  %3129 = vpow2.f32 %v1602_v13  ;;  %1710 = vadd.xlane.f32.xlu1 %v1709_v14  ;;  %2395 = vmatpush2.msra.mxu1 %v366_v19 }
 0x289   : > { %v4371_v10 = vpop.eup %3117  ;;  %v1604_v37 = vmul.f32 1.442695, %v1524_v1  ;;  %v1606_v5 = vmul.f32 1.442695, %v1525_v57  ;;  %2396 = vmatprep.subr.mxu1 %v3299_v46  ;;  %v363_v1 = vld [vmem:[%s4278_s6 + $0xa0] sm:$0xff] }
 0x28a   : > { %v1441_v32 = vpop.xlane.xlu1 %1440  ;;  %v1712_v25 = vadd.f32 %v4371_v10, %v4367_v24  ;;  %2397 = vmatpush2.msra.mxu1 %v365_v22 }
 0x28b   : > { %3131 = vpow2.f32 %v1604_v37  ;;  %v1526_v23 = vsub.f32 %v4092_v0, %v1441_v32  ;;  %v1527_v50 = vsub.f32 %v4094_v3, %v1441_v32  ;;  %v364_v3 = vld [vmem:[%s4278_s6 + $0xa8] sm:$0xff]  ;;  %2398 = vmatprep.subr.mxu1 %v3299_v46 }
 0x28c   : > { %v4379_v45 = vpop.eup %3119  ;;  %3133 = vpow2.f32 %v1606_v5  ;;  %1713 = vadd.xlane.f32.xlu1 %v1712_v25  ;;  %2399 = vmatpush2.msra.mxu1 %v364_v3 }
 0x28d   : > { %v4383_v55 = vpop.eup %3121  ;;  %v1608_v6 = vmul.f32 1.442695, %v1526_v23  ;;  %v1610_v39 = vmul.f32 1.442695, %v1527_v50  ;;  %2400 = vmatprep.subr.mxu1 %v3299_v46  ;;  %v361_v23 = vld [vmem:[%s4278_s6 + $0x90] sm:$0xff] }
 0x28e   : > { %v1444_v13 = vpop.xlane.xlu0 %1443  ;;  %v1715_v0 = vadd.f32 %v4383_v55, %v4379_v45  ;;  %2401 = vmatpush2.msra.mxu1 %v363_v1 }
 0x28f   : > { %3135 = vpow2.f32 %v1608_v6  ;;  %v1528_v20 = vsub.f32 %v4100_v16, %v1444_v13  ;;  %v1529_v14 = vsub.f32 %v4102_v49, %v1444_v13  ;;  %v362_v49 = vld [vmem:[%s4278_s6 + $0x98] sm:$0xff]  ;;  %2402 = vmatprep.subr.mxu1 %v3299_v46 }
 0x290   : > { %v4391_v52 = vpop.eup %3123  ;;  %3137 = vpow2.f32 %v1610_v39  ;;  %1716 = vadd.xlane.f32.xlu1 %v1715_v0  ;;  %2403 = vmatpush2.msra.mxu1 %v362_v49 }
 0x291   : > { %v4395_v57 = vpop.eup %3125  ;;  %v1612_v60 = vmul.f32 1.442695, %v1528_v20  ;;  %v1614_v37 = vmul.f32 1.442695, %v1529_v14  ;;  %2404 = vmatprep.subr.mxu1 %v3299_v46  ;;  %v359_v20 = vld [vmem:[%s4278_s6 + $0x80] sm:$0xff] }
 0x292   : > { %v1447_v5 = vpop.xlane.xlu1 %1446  ;;  %v1718_v16 = vadd.f32 %v4395_v57, %v4391_v52  ;;  %2405 = vmatpush2.msra.mxu1 %v361_v23 }
 0x293   : > { %3139 = vpow2.f32 %v1612_v60  ;;  %v1530_v32 = vsub.f32 %v4108_v40, %v1447_v5  ;;  %v1531_v25 = vsub.f32 %v4110_v36, %v1447_v5  ;;  %v360_v36 = vld [vmem:[%s4278_s6 + $0x88] sm:$0xff]  ;;  %2406 = vmatprep.subr.mxu1 %v3299_v46 }
 0x294   : > { %v4403_v19 = vpop.eup %3127  ;;  %3141 = vpow2.f32 %v1614_v37  ;;  %1719 = vadd.xlane.f32.xlu1 %v1718_v16  ;;  %2407 = vmatpush2.msra.mxu1 %v360_v36 }
 0x295   : > { %v4407_v50 = vpop.eup %3129  ;;  %v1616_v22 = vmul.f32 1.442695, %v1530_v32  ;;  %v1618_v6 = vmul.f32 1.442695, %v1531_v25  ;;  %2408 = vmatprep.subr.mxu1 %v3299_v46 }
 0x296   : > { %v1450_v39 = vpop.xlane.xlu0 %1449  ;;  %v1721_v40 = vadd.f32 %v4407_v50, %v4403_v19  ;;  %2409 = vmatpush2.msra.mxu1 %v359_v20 }
 0x297   : > { %3143 = vpow2.f32 %v1616_v22  ;;  %v1532_v13 = vsub.f32 %v4116_v42, %v1450_v39  ;;  %v1533_v0 = vsub.f32 %v4118_v56, %v1450_v39 }
 0x298   : > { %v4415_v3 = vpop.eup %3131  ;;  %3145 = vpow2.f32 %v1618_v6  ;;  %1722 = vadd.xlane.f32.xlu1 %v1721_v40 }
 0x299   : > { %v4419_v14 = vpop.eup %3133  ;;  %v1620_v1 = vmul.f32 1.442695, %v1532_v13  ;;  %v1622_v60 = vmul.f32 1.442695, %v1533_v0 }
 0x29a   : > { %v1453_v37 = vpop.xlane.xlu1 %1452  ;;  %v1724_v5 = vadd.f32 %v4419_v14, %v4415_v3 }
 0x29b   : > { %3147 = vpow2.f32 %v1620_v1  ;;  %v1534_v42 = vsub.f32 %v4124_v31, %v1453_v37  ;;  %v1535_v56 = vsub.f32 %v4126_v28, %v1453_v37 }
 0x29c   : > { %v4426_v16 = vpop.eup %3135  ;;  %3149 = vpow2.f32 %v1622_v60  ;;  %1725 = vadd.xlane.f32.xlu1 %v1724_v5 }
 0x29d   : > { %v4428_v49 = vpop.eup %3137  ;;  %v1624_v32 = vmul.f32 1.442695, %v1534_v42  ;;  %v1626_v25 = vmul.f32 1.442695, %v1535_v56 }
 0x29e   : > { %v1456_v23 = vpop.xlane.xlu0 %1455  ;;  %v1727_v22 = vadd.f32 %v4428_v49, %v4426_v16 }
 0x29f   : > { %3151 = vpow2.f32 %v1624_v32  ;;  %v1536_v46 = vsub.f32 %v4132_v44, %v1456_v23  ;;  %v1537_v31 = vsub.f32 %v4134_v62, %v1456_v23 }
 0x2a0   : > { %v4434_v6 = vpop.eup %3139  ;;  %3153 = vpow2.f32 %v1626_v25  ;;  %1728 = vadd.xlane.f32.xlu1 %v1727_v22 }
 0x2a1   : > { %v4436_v28 = vpop.eup %3141  ;;  %v1628_v39 = vmul.f32 1.442695, %v1536_v46  ;;  %v1630_v40 = vmul.f32 1.442695, %v1537_v31 }
 0x2a2   : > { %v1459_v36 = vpop.xlane.xlu1 %1458  ;;  %v1730_v13 = vadd.f32 %v4436_v28, %v4434_v6 }
 0x2a3   : > { %3155 = vpow2.f32 %v1628_v39  ;;  %v1538_v0 = vsub.f32 %v4140_v43, %v1459_v36  ;;  %v1539_v20 = vsub.f32 %v4142_v59, %v1459_v36 }
 0x2a4   : > { %v4442_v44 = vpop.eup %3143  ;;  %3157 = vpow2.f32 %v1630_v40  ;;  %1731 = vadd.xlane.f32.xlu0 %v1730_v13 }
 0x2a5   : > { %v4444_v62 = vpop.eup %3145  ;;  %v1632_v1 = vmul.f32 1.442695, %v1538_v0  ;;  %v1634_v60 = vmul.f32 1.442695, %v1539_v20 }
 0x2a6   : > { %v1462_v37 = vpop.xlane.xlu0 %1461  ;;  %v1733_v5 = vadd.f32 %v4444_v62, %v4442_v44 }
 0x2a7   : > { %3159 = vpow2.f32 %v1632_v1  ;;  %v1540_v42 = vsub.f32 %v4148_v30, %v1462_v37  ;;  %v1541_v56 = vsub.f32 %v4150_v63, %v1462_v37 }
 0x2a8   : > { %v4450_v43 = vpop.eup %3147  ;;  %3161 = vpow2.f32 %v1634_v60  ;;  %1734 = vadd.xlane.f32.xlu1 %v1733_v5 }
 0x2a9   : > { %v4452_v59 = vpop.eup %3149  ;;  %v1636_v32 = vmul.f32 1.442695, %v1540_v42  ;;  %v1638_v25 = vmul.f32 1.442695, %v1541_v56 }
 0x2aa   : > { %v1465_v23 = vpop.xlane.xlu1 %1464  ;;  %v1736_v22 = vadd.f32 %v4452_v59, %v4450_v43 }
 0x2ab   : > { %3163 = vpow2.f32 %v1636_v32  ;;  %v1542_v46 = vsub.f32 %v4156_v61, %v1465_v23  ;;  %v1543_v31 = vsub.f32 %v4158_v9, %v1465_v23 }
 0x2ac   : > { %v4458_v30 = vpop.eup %3151  ;;  %3165 = vpow2.f32 %v1638_v25  ;;  %1737 = vadd.xlane.f32.xlu0 %v1736_v22 }
 0x2ad   : > { %v4460_v63 = vpop.eup %3153  ;;  %v1640_v39 = vmul.f32 1.442695, %v1542_v46  ;;  %v1642_v40 = vmul.f32 1.442695, %v1543_v31 }
 0x2ae   : > { %v1468_v36 = vpop.xlane.xlu0 %1467  ;;  %v1739_v13 = vadd.f32 %v4460_v63, %v4458_v30 }
 0x2af   : > { %3167 = vpow2.f32 %v1640_v39  ;;  %v1544_v0 = vsub.f32 %v4164_v15, %v1468_v36  ;;  %v1545_v20 = vsub.f32 %v4166_v54, %v1468_v36 }
 0x2b0   : > { %v4466_v61 = vpop.eup %3155  ;;  %3169 = vpow2.f32 %v1642_v40  ;;  %1740 = vadd.xlane.f32.xlu1 %v1739_v13 }
 0x2b1   : > { %v4468_v9 = vpop.eup %3157  ;;  %v1644_v1 = vmul.f32 1.442695, %v1544_v0  ;;  %v1646_v60 = vmul.f32 1.442695, %v1545_v20 }
 0x2b2   : > { %v1471_v37 = vpop.xlane.xlu1 %1470  ;;  %v1742_v5 = vadd.f32 %v4468_v9, %v4466_v61 }
 0x2b3   : > { %3171 = vpow2.f32 %v1644_v1  ;;  %v1546_v42 = vsub.f32 %v4172_v51, %v1471_v37  ;;  %v1547_v56 = vsub.f32 %v4174_v53, %v1471_v37 }
 0x2b4   : > { %v4474_v15 = vpop.eup %3159  ;;  %3173 = vpow2.f32 %v1646_v60  ;;  %1743 = vadd.xlane.f32.xlu0 %v1742_v5 }
 0x2b5   : > { %v4476_v54 = vpop.eup %3161  ;;  %v1648_v32 = vmul.f32 1.442695, %v1546_v42  ;;  %v1650_v25 = vmul.f32 1.442695, %v1547_v56 }
 0x2b6   : > { %v1474_v23 = vpop.xlane.xlu0 %1473  ;;  %v1745_v22 = vadd.f32 %v4476_v54, %v4474_v15 }
 0x2b7   : > { %3175 = vpow2.f32 %v1648_v32  ;;  %v1548_v46 = vsub.f32 %v4180_v17, %v1474_v23  ;;  %v1549_v31 = vsub.f32 %v4182_v21, %v1474_v23 }
 0x2b8   : > { %v4482_v51 = vpop.eup %3163  ;;  %3177 = vpow2.f32 %v1650_v25  ;;  %1746 = vadd.xlane.f32.xlu1 %v1745_v22 }
 0x2b9   : > { %v4484_v53 = vpop.eup %3165  ;;  %v1652_v39 = vmul.f32 1.442695, %v1548_v46  ;;  %v1654_v40 = vmul.f32 1.442695, %v1549_v31  ;;  %v5333_v31 = vld [vmem:[#allocation4_spill] sm:$0xff] }
 0x2ba   : > { %v1477_v36 = vpop.xlane.xlu1 %1476  ;;  %v1748_v13 = vadd.f32 %v4484_v53, %v4482_v51 }
 0x2bb   : > { %3179 = vpow2.f32 %v1652_v39  ;;  %v1550_v0 = vsub.f32 %v4188_v33, %v1477_v36  ;;  %v1551_v20 = vsub.f32 %v4190_v41, %v1477_v36 }
 0x2bc   : > { %v4490_v17 = vpop.eup %3167  ;;  %3181 = vpow2.f32 %v1654_v40  ;;  %1749 = vadd.xlane.f32.xlu0 %v1748_v13 }
 0x2bd   : > { %v4492_v21 = vpop.eup %3169  ;;  %v1656_v1 = vmul.f32 1.442695, %v1550_v0  ;;  %v1658_v60 = vmul.f32 1.442695, %v1551_v20  ;;  %v5334_v20 = vld [vmem:[#allocation5_spill] sm:$0xff] }
 0x2be   : > { %v1480_v37 = vpop.xlane.xlu0 %1479  ;;  %v1751_v5 = vadd.f32 %v4492_v21, %v4490_v17 }
 0x2bf   : > { %3183 = vpow2.f32 %v1656_v1  ;;  %v1552_v42 = vsub.f32 %v4196_v27, %v1480_v37  ;;  %v1553_v56 = vsub.f32 %v4198_v58, %v1480_v37 }
 0x2c0   : > { %v4498_v33 = vpop.eup %3171  ;;  %3185 = vpow2.f32 %v1658_v60  ;;  %1752 = vadd.xlane.f32.xlu1 %v1751_v5  ;;  %v5335_v60 = vld [vmem:[#allocation6_spill] sm:$0xff] }
 0x2c1   : > { %v4500_v41 = vpop.eup %3173  ;;  %v1660_v32 = vmul.f32 1.442695, %v1552_v42  ;;  %v1662_v25 = vmul.f32 1.442695, %v1553_v56 }
 0x2c2   : > { %v1483_v23 = vpop.xlane.xlu0 %1482  ;;  %v1754_v22 = vadd.f32 %v4500_v41, %v4498_v33 }
 0x2c3   : > { %3187 = vpow2.f32 %v1660_v32  ;;  %v1554_v46 = vsub.f32 %v4204_v11, %v1483_v23  ;;  %v1555_v39 = vsub.f32 %v5333_v31, %v1483_v23  ;;  %v5336_v23 = vld [vmem:[#allocation7_spill] sm:$0xff] }
 0x2c4   : > { %v4506_v27 = vpop.eup %3175  ;;  %3189 = vpow2.f32 %v1662_v25  ;;  %1755 = vadd.xlane.f32.xlu0 %v1754_v22 }
 0x2c5   : > { %v4508_v58 = vpop.eup %3177  ;;  %v1664_v40 = vmul.f32 1.442695, %v1554_v46  ;;  %v1666_v36 = vmul.f32 1.442695, %v1555_v39  ;;  %v5337_v46 = vld [vmem:[#allocation8_spill] sm:$0xff] }
 0x2c6   : > { %v1486_v13 = vpop.xlane.xlu0 %1485  ;;  %v1757_v0 = vadd.f32 %v4508_v58, %v4506_v27 }
 0x2c7   : > { %3191 = vpow2.f32 %v1664_v40  ;;  %v1556_v1 = vsub.f32 %v5334_v20, %v1486_v13  ;;  %v1557_v37 = vsub.f32 %v5335_v60, %v1486_v13 }
 0x2c8   : > { %v4514_v11 = vpop.eup %3179  ;;  %3193 = vpow2.f32 %v1666_v36  ;;  %1758 = vadd.xlane.f32.xlu1 %v1757_v0 }
 0x2c9   : > { %v4516_v5 = vpop.eup %3181  ;;  %v1668_v42 = vmul.f32 1.442695, %v1556_v1  ;;  %v1670_v56 = vmul.f32 1.442695, %v1557_v37  ;;  %v5340_v1 = vld [vmem:[#allocation9_spill] sm:$0xff]  ;;  %v5341_v37 = vld [vmem:[#allocation10_spill] sm:$0xff] }
 0x2ca   : > { %v1489_v32 = vpop.xlane.xlu0 %1488  ;;  %v1760_v25 = vadd.f32 %v4516_v5, %v4514_v11 }
 0x2cb   : > { %3195 = vpow2.f32 %v1668_v42  ;;  %v1558_v22 = vsub.f32 %v5336_v23, %v1489_v32  ;;  %v1559_v31 = vsub.f32 %v5337_v46, %v1489_v32 }
 0x2cc   : > { %v4522_v39 = vpop.eup %3183  ;;  %3197 = vpow2.f32 %v1670_v56  ;;  %1761 = vadd.xlane.f32.xlu0 %v1760_v25 }
 0x2cd   : > { %5338 = vst [vmem:[#allocation4_spill] sm:$0xff] %v4522_v39  ;;  %v4524_v40 = vpop.eup %3185  ;;  %v1672_v36 = vmul.f32 1.442695, %v1558_v22  ;;  %v1674_v13 = vmul.f32 1.442695, %v1559_v31  ;;  %v5343_v31 = vld [vmem:[#allocation11_spill] sm:$0xff] }
 0x2ce   : > { %5339 = vst [vmem:[#allocation5_spill] sm:$0xff] %v4524_v40  ;;  %v1492_v0 = vpop.xlane.xlu0 %1491  ;;  %v1763_v20 = vadd.f32 %v4524_v40, %v4522_v39 }
 0x2cf   : > { %3199 = vpow2.f32 %v1672_v36  ;;  %v1560_v60 = vsub.f32 %v5340_v1, %v1492_v0  ;;  %v1561_v42 = vsub.f32 %v5341_v37, %v1492_v0  ;;  %v5344_v36 = vld [vmem:[#allocation12_spill] sm:$0xff] }
 0x2d0   : > { %v4530_v23 = vpop.eup %3187  ;;  %3201 = vpow2.f32 %v1674_v13  ;;  %1764 = vadd.xlane.f32.xlu1 %v1763_v20 }
 0x2d1   : > { %5342 = vst [vmem:[#allocation6_spill] sm:$0xff] %v4530_v23  ;;  %v4532_v32 = vpop.eup %3189  ;;  %v1676_v56 = vmul.f32 1.442695, %v1560_v60  ;;  %v1678_v25 = vmul.f32 1.442695, %v1561_v42 }
 0x2d2   : > { %v1495_v46 = vpop.xlane.xlu0 %1494  ;;  %v1766_v22 = vadd.f32 %v4532_v32, %v4530_v23 }
 0x2d3   : > { %3203 = vpow2.f32 %v1676_v56  ;;  %v1562_v39 = vsub.f32 %v5343_v31, %v1495_v46  ;;  %v1563_v40 = vsub.f32 %v5344_v36, %v1495_v46  ;;  %v5345_v56 = vld [vmem:[#allocation13_spill] sm:$0xff] }
 0x2d4   : > { %v4538_v1 = vpop.eup %3191  ;;  %3205 = vpow2.f32 %v1678_v25  ;;  %1767 = vadd.xlane.f32.xlu0 %v1766_v22 }
 0x2d5   : > { %v4540_v0 = vpop.eup %3193  ;;  %v1680_v13 = vmul.f32 1.442695, %v1562_v39  ;;  %v1682_v20 = vmul.f32 1.442695, %v1563_v40 }
 0x2d6   : > { %v1498_v37 = vpop.xlane.xlu0 %1497  ;;  %v1769_v60 = vadd.f32 %v4540_v0, %v4538_v1 }
 0x2d7   : > { %3207 = vpow2.f32 %v1680_v13  ;;  %v1564_v42 = vsub.f32 %v4244_v18, %v1498_v37  ;;  %v1565_v23 = vsub.f32 %v5345_v56, %v1498_v37 }
 0x2d8   : > { %v4546_v31 = vpop.eup %3195  ;;  %3209 = vpow2.f32 %v1682_v20  ;;  %1770 = vadd.xlane.f32.xlu1 %v1769_v60 }
 0x2d9   : > { %v4548_v46 = vpop.eup %3197  ;;  %v1684_v25 = vmul.f32 1.442695, %v1564_v42  ;;  %v1686_v22 = vmul.f32 1.442695, %v1565_v23 }
 0x2da   : > { %v1501_v36 = vpop.xlane.xlu0 %1500  ;;  %v1772_v39 = vadd.f32 %v4548_v46, %v4546_v31 }
 0x2db   : > { %3211 = vpow2.f32 %v1684_v25  ;;  %v1566_v40 = vsub.f32 %v4252_v35, %v1501_v36  ;;  %v1567_v13 = vsub.f32 %v4254_v47, %v1501_v36 }
 0x2dc   : > { %v4554_v18 = vpop.eup %3199  ;;  %3213 = vpow2.f32 %v1686_v22  ;;  %1773 = vadd.xlane.f32.xlu0 %v1772_v39 }
 0x2dd   : > { %5346 = vst [vmem:[#allocation7_spill] sm:$0xff] %v4554_v18  ;;  %v4556_v37 = vpop.eup %3201  ;;  %v1688_v20 = vmul.f32 1.442695, %v1566_v40  ;;  %v1690_v60 = vmul.f32 1.442695, %v1567_v13  ;;  %v5348_v13 = vld [vmem:[#allocation14_spill] sm:$0xff] }
 0x2de   : > { %5347 = vst [vmem:[#allocation8_spill] sm:$0xff] %v4556_v37  ;;  %v1504_v56 = vpop.xlane.xlu0 %1503  ;;  %v1775_v23 = vadd.f32 %v4556_v37, %v4554_v18 }
 0x2df   : > { %3215 = vpow2.f32 %v1688_v20  ;;  %v1568_v42 = vsub.f32 %v4260_v26, %v1504_v56  ;;  %v1569_v25 = vsub.f32 %v4262_v2, %v1504_v56  ;;  %v5349_v20 = vld [vmem:[#allocation15_spill] sm:$0xff] }
 0x2e0   : > { %v4562_v35 = vpop.eup %3203  ;;  %3217 = vpow2.f32 %v1690_v60  ;;  %1776 = vadd.xlane.f32.xlu1 %v1775_v23 }
 0x2e1   : > { %v4564_v47 = vpop.eup %3205  ;;  %v1692_v22 = vmul.f32 1.442695, %v1568_v42  ;;  %v1694_v36 = vmul.f32 1.442695, %v1569_v25 }
 0x2e2   : > { %v1507_v39 = vpop.xlane.xlu0 %1506  ;;  %v1778_v40 = vadd.f32 %v4564_v47, %v4562_v35 }
 0x2e3   : > { %3219 = vpow2.f32 %v1692_v22  ;;  %v1570_v18 = vsub.f32 %v5348_v13, %v1507_v39  ;;  %v1571_v37 = vsub.f32 %v5349_v20, %v1507_v39 }
 0x2e4   : > { %v4570_v26 = vpop.eup %3207  ;;  %3221 = vpow2.f32 %v1694_v36  ;;  %1779 = vadd.xlane.f32.xlu0 %v1778_v40 }
 0x2e5   : > { %v4572_v2 = vpop.eup %3209  ;;  %v1696_v60 = vmul.f32 1.442695, %v1570_v18  ;;  %v1698_v56 = vmul.f32 1.442695, %v1571_v37 }
 0x2e6   : > { %v1781_v23 = vadd.f32 %v4572_v2, %v4570_v26 }
 0x2e7   : > { %3223 = vpow2.f32 %v1696_v60 }
 0x2e8   : > { %v4576_v42 = vpop.eup %3211  ;;  %3225 = vpow2.f32 %v1698_v56  ;;  %1782 = vadd.xlane.f32.xlu1 %v1781_v23 }
 0x2e9   : > { %5350 = vst [vmem:[#allocation9_spill] sm:$0xff] %v4576_v42  ;;  %v4578_v25 = vpop.eup %3213 }
 0x2ea   : > { %5351 = vst [vmem:[#allocation10_spill] sm:$0xff] %v4578_v25  ;;  %v1784_v22 = vadd.f32 %v4578_v25, %v4576_v42  ;;  %v5357_v42 = vld [vmem:[#allocation3_spill] sm:$0xff] }
 0x2ec   : > { %v4582_v39 = vpop.eup %3215  ;;  %1785 = vadd.xlane.f32.xlu0 %v1784_v22 }
 0x2ed   : > { %5352 = vst [vmem:[#allocation11_spill] sm:$0xff] %v4582_v39  ;;  %v4584_v36 = vpop.eup %3217 }
 0x2ee   : > { %5353 = vst [vmem:[#allocation12_spill] sm:$0xff] %v4584_v36  ;;  %v1787_v18 = vadd.f32 %v4584_v36, %v4582_v39 }
 0x2f0   : > { %v4588_v37 = vpop.eup %3219  ;;  %1788 = vadd.xlane.f32.xlu1 %v1787_v18 }
 0x2f1   : > { %5354 = vst [vmem:[#allocation13_spill] sm:$0xff] %v4588_v37  ;;  %v4590_v40 = vpop.eup %3221 }
 0x2f2   : > { %5355 = vst [vmem:[#allocation14_spill] sm:$0xff] %v4590_v40  ;;  %v1790_v13 = vadd.f32 %v4590_v40, %v4588_v37 }
 0x2f4   : > { %v4594_v20 = vpop.eup %3223  ;;  %1791 = vadd.xlane.f32.xlu0 %v1790_v13 }
 0x2f5   : > { %5356 = vst [vmem:[#allocation15_spill] sm:$0xff] %v4594_v20  ;;  %v4596_v60 = vpop.eup %3225 }
 0x2f6   : > { %v1793_v56 = vadd.f32 %v4596_v60, %v4594_v20  ;;  %v5358_v20 = vld [vmem:[#allocation2_spill] sm:$0xff] }
 0x2f8   : > { %1794 = vadd.xlane.f32.xlu1 %v1793_v56 }
 0x305   : > { %v1702_v23 = vpop.xlane.xlu1 %1701 }
 0x306   : > { %3227 = vrcp.f32 %v1702_v23 }
 0x309   : > { %v1705_v22 = vpop.xlane.xlu1 %1704 }
 0x30a   : > { %3229 = vrcp.f32 %v1705_v22 }
 0x30d   : > { %v1708_v39 = vpop.xlane.xlu1 %1707 }
 0x30e   : > { %3231 = vrcp.f32 %v1708_v39 }
 0x311   : > { %v1711_v18 = vpop.xlane.xlu1 %1710 }
 0x312   : > { %3233 = vrcp.f32 %v1711_v18 }
 0x313   : > { %v3228_v36 = vpop.eup %3227 }
 0x314   : > { %v1798_v37 = vmul.f32 %v3228_v36, %v4323_v48  ;;  %v1797_v40 = vmul.f32 %v3228_v36, %v4319_v38 }
 0x315   : > { %v1714_v13 = vpop.xlane.xlu1 %1713 }
 0x316   : > { %3235 = vrcp.f32 %v1714_v13  ;;  %v4603_v25 = vmul.f32 %v1798_v37, %v5357_v42  ;;  %v4606_v56 = vmul.f32 %v1797_v40, %v5358_v20 }
 0x317   : > { %v3230_v23 = vpop.eup %3229 }
 0x318   : > { %2410 = vmatprep.mubr.f32.mxu1 %v4603_v25  ;;  %v1956_v39 = vmax.f32 %v4606_v56, %v4603_v25  ;;  %v1801_v22 = vmul.f32 %v3230_v23, %v4335_v29  ;;  %v1800_v48 = vmul.f32 %v3230_v23, %v4331_v4 }
 0x319   : > { %2411 = vmatmul.mubr.f32.vlgmr.msra.gmra.mxu1 %v4606_v56  ;;  %v1717_v38 = vpop.xlane.xlu1 %1716 }
 0x31a   : > { %3237 = vrcp.f32 %v1717_v38  ;;  %1957 = vmax.xlane.f32.xlu0 %v1956_v39  ;;  %v4615_v36 = vmul.f32 %v1801_v22, %v5357_v42  ;;  %v4618_v37 = vmul.f32 %v1800_v48, %v5358_v20 }
 0x31b   : > { %v3232_v40 = vpop.eup %3231 }
 0x31c   : > { %2415 = vmatprep.mubr.f32.mxu1 %v4615_v36  ;;  %v1959_v18 = vmax.f32 %v4618_v37, %v4615_v36  ;;  %v1804_v29 = vmul.f32 %v3232_v40, %v4347_v7  ;;  %v1803_v4 = vmul.f32 %v3232_v40, %v4343_v12 }
 0x31d   : > { %2416 = vmatmul.mubr.f32.gmra.mxu1 %v4618_v37  ;;  %v1720_v13 = vpop.xlane.xlu1 %1719 }
 0x31e   : > { %3239 = vrcp.f32 %v1720_v13  ;;  %1960 = vmax.xlane.f32.xlu1 %v1959_v18  ;;  %v4627_v23 = vmul.f32 %v1804_v29, %v5357_v42  ;;  %v4630_v39 = vmul.f32 %v1803_v4, %v5358_v20 }
 0x31f   : > { %v3234_v22 = vpop.eup %3233 }
 0x320   : > { %2420 = vmatprep.mubr.f32.mxu1 %v4627_v23  ;;  %v1962_v48 = vmax.f32 %v4630_v39, %v4627_v23  ;;  %v1807_v7 = vmul.f32 %v3234_v22, %v4359_v34  ;;  %v1806_v12 = vmul.f32 %v3234_v22, %v4355_v8 }
 0x321   : > { %2421 = vmatmul.mubr.f32.gmra.mxu1 %v4630_v39  ;;  %v1723_v38 = vpop.xlane.xlu1 %1722 }
 0x322   : > { %3241 = vrcp.f32 %v1723_v38  ;;  %1963 = vmax.xlane.f32.xlu0 %v1962_v48  ;;  %v4639_v40 = vmul.f32 %v1807_v7, %v5357_v42  ;;  %v4642_v18 = vmul.f32 %v1806_v12, %v5358_v20 }
 0x323   : > { %v3236_v29 = vpop.eup %3235 }
 0x324   : > { %2425 = vmatprep.mubr.f32.mxu1 %v4639_v40  ;;  %v1965_v4 = vmax.f32 %v4642_v18, %v4639_v40  ;;  %v1810_v34 = vmul.f32 %v3236_v29, %v4371_v10  ;;  %v1809_v8 = vmul.f32 %v3236_v29, %v4367_v24 }
 0x325   : > { %2426 = vmatmul.mubr.f32.gmra.mxu1 %v4642_v18  ;;  %v1726_v13 = vpop.xlane.xlu1 %1725 }
 0x326   : > { %3243 = vrcp.f32 %v1726_v13  ;;  %1966 = vmax.xlane.f32.xlu1 %v1965_v4  ;;  %v4651_v22 = vmul.f32 %v1810_v34, %v5357_v42  ;;  %v4654_v48 = vmul.f32 %v1809_v8, %v5358_v20 }
 0x327   : > { %v3238_v7 = vpop.eup %3237 }
 0x328   : > { %2430 = vmatprep.mubr.f32.mxu1 %v4651_v22  ;;  %v1968_v12 = vmax.f32 %v4654_v48, %v4651_v22  ;;  %v1813_v10 = vmul.f32 %v3238_v7, %v4383_v55  ;;  %v1812_v24 = vmul.f32 %v3238_v7, %v4379_v45 }
 0x329   : > { %2431 = vmatmul.mubr.f32.gmra.mxu1 %v4654_v48  ;;  %v1729_v38 = vpop.xlane.xlu1 %1728 }
 0x32a   : > { %3245 = vrcp.f32 %v1729_v38  ;;  %1969 = vmax.xlane.f32.xlu0 %v1968_v12  ;;  %v4663_v29 = vmul.f32 %v1813_v10, %v5357_v42  ;;  %v4666_v4 = vmul.f32 %v1812_v24, %v5358_v20 }
 0x32b   : > { %v3240_v34 = vpop.eup %3239 }
 0x32c   : > { %2435 = vmatprep.mubr.f32.mxu1 %v4663_v29  ;;  %v1971_v8 = vmax.f32 %v4666_v4, %v4663_v29  ;;  %v1816_v55 = vmul.f32 %v3240_v34, %v4395_v57  ;;  %v1815_v45 = vmul.f32 %v3240_v34, %v4391_v52 }
 0x32d   : > { %2436 = vmatmul.mubr.f32.gmra.mxu1 %v4666_v4  ;;  %v1732_v13 = vpop.xlane.xlu0 %1731 }
 0x32e   : > { %3247 = vrcp.f32 %v1732_v13  ;;  %1972 = vmax.xlane.f32.xlu1 %v1971_v8  ;;  %v4675_v7 = vmul.f32 %v1816_v55, %v5357_v42  ;;  %v4678_v12 = vmul.f32 %v1815_v45, %v5358_v20 }
 0x32f   : > { %v3242_v10 = vpop.eup %3241 }
 0x330   : > { %2440 = vmatprep.mubr.f32.mxu1 %v4675_v7  ;;  %v1974_v24 = vmax.f32 %v4678_v12, %v4675_v7  ;;  %v1819_v57 = vmul.f32 %v3242_v10, %v4407_v50  ;;  %v1818_v52 = vmul.f32 %v3242_v10, %v4403_v19 }
 0x331   : > { %2441 = vmatmul.mubr.f32.gmra.mxu1 %v4678_v12  ;;  %v1735_v38 = vpop.xlane.xlu1 %1734 }
 0x332   : > { %3249 = vrcp.f32 %v1735_v38  ;;  %1975 = vmax.xlane.f32.xlu0 %v1974_v24  ;;  %v4687_v34 = vmul.f32 %v1819_v57, %v5357_v42  ;;  %v4690_v8 = vmul.f32 %v1818_v52, %v5358_v20 }
 0x333   : > { %v3244_v55 = vpop.eup %3243 }
 0x334   : > { %2445 = vmatprep.mubr.f32.mxu1 %v4687_v34  ;;  %v1977_v45 = vmax.f32 %v4690_v8, %v4687_v34  ;;  %v1822_v50 = vmul.f32 %v3244_v55, %v4419_v14  ;;  %v1821_v19 = vmul.f32 %v3244_v55, %v4415_v3 }
 0x335   : > { %2446 = vmatmul.mubr.f32.gmra.mxu1 %v4690_v8  ;;  %v1738_v13 = vpop.xlane.xlu0 %1737 }
 0x336   : > { %3251 = vrcp.f32 %v1738_v13  ;;  %1978 = vmax.xlane.f32.xlu1 %v1977_v45  ;;  %v4699_v10 = vmul.f32 %v1822_v50, %v5357_v42  ;;  %v4702_v24 = vmul.f32 %v1821_v19, %v5358_v20 }
 0x337   : > { %v3246_v57 = vpop.eup %3245 }
 0x338   : > { %2450 = vmatprep.mubr.f32.mxu1 %v4699_v10  ;;  %v1980_v52 = vmax.f32 %v4702_v24, %v4699_v10  ;;  %v1825_v14 = vmul.f32 %v3246_v57, %v4428_v49  ;;  %v1824_v3 = vmul.f32 %v3246_v57, %v4426_v16 }
 0x339   : > { %2451 = vmatmul.mubr.f32.gmra.mxu1 %v4702_v24  ;;  %v1741_v38 = vpop.xlane.xlu1 %1740 }
 0x33a   : > { %3253 = vrcp.f32 %v1741_v38  ;;  %1981 = vmax.xlane.f32.xlu0 %v1980_v52  ;;  %v4711_v55 = vmul.f32 %v1825_v14, %v5357_v42  ;;  %v4714_v45 = vmul.f32 %v1824_v3, %v5358_v20 }
 0x33b   : > { %v3248_v50 = vpop.eup %3247 }
 0x33c   : > { %2455 = vmatprep.mubr.f32.mxu1 %v4711_v55  ;;  %v1983_v19 = vmax.f32 %v4714_v45, %v4711_v55  ;;  %v1828_v49 = vmul.f32 %v3248_v50, %v4436_v28  ;;  %v1827_v16 = vmul.f32 %v3248_v50, %v4434_v6 }
 0x33d   : > { %2456 = vmatmul.mubr.f32.gmra.mxu1 %v4714_v45  ;;  %v1744_v13 = vpop.xlane.xlu0 %1743 }
 0x33e   : > { %3255 = vrcp.f32 %v1744_v13  ;;  %1984 = vmax.xlane.f32.xlu1 %v1983_v19  ;;  %v4723_v57 = vmul.f32 %v1828_v49, %v5357_v42  ;;  %v4726_v52 = vmul.f32 %v1827_v16, %v5358_v20 }
 0x33f   : > { %v3250_v14 = vpop.eup %3249 }
 0x340   : > { %2460 = vmatprep.mubr.f32.mxu1 %v4723_v57  ;;  %v1986_v3 = vmax.f32 %v4726_v52, %v4723_v57  ;;  %v1831_v28 = vmul.f32 %v3250_v14, %v4444_v62  ;;  %v1830_v6 = vmul.f32 %v3250_v14, %v4442_v44 }
 0x341   : > { %v1747_v38 = vpop.xlane.xlu1 %1746  ;;  %2461 = vmatmul.mubr.f32.gmra.mxu1 %v4726_v52 }
 0x342   : > { %3257 = vrcp.f32 %v1747_v38  ;;  %1987 = vmax.xlane.f32.xlu0 %v1986_v3  ;;  %v4735_v50 = vmul.f32 %v1831_v28, %v5357_v42  ;;  %v4738_v19 = vmul.f32 %v1830_v6, %v5358_v20 }
 0x343   : > { %v3252_v49 = vpop.eup %3251 }
 0x344   : > { %2465 = vmatprep.mubr.f32.mxu1 %v4735_v50  ;;  %v1989_v16 = vmax.f32 %v4738_v19, %v4735_v50  ;;  %v1834_v62 = vmul.f32 %v3252_v49, %v4452_v59  ;;  %v1833_v44 = vmul.f32 %v3252_v49, %v4450_v43 }
 0x345   : > { %2466 = vmatmul.mubr.f32.gmra.mxu1 %v4738_v19  ;;  %v1750_v13 = vpop.xlane.xlu0 %1749 }
 0x346   : > { %3259 = vrcp.f32 %v1750_v13  ;;  %1990 = vmax.xlane.f32.xlu1 %v1989_v16  ;;  %v4747_v14 = vmul.f32 %v1834_v62, %v5357_v42  ;;  %v4750_v3 = vmul.f32 %v1833_v44, %v5358_v20 }
 0x347   : > { %v3254_v28 = vpop.eup %3253 }
 0x348   : > { %2470 = vmatprep.mubr.f32.mxu1 %v4747_v14  ;;  %v1992_v6 = vmax.f32 %v4750_v3, %v4747_v14  ;;  %v1837_v59 = vmul.f32 %v3254_v28, %v4460_v63  ;;  %v1836_v43 = vmul.f32 %v3254_v28, %v4458_v30 }
 0x349   : > { %v1753_v38 = vpop.xlane.xlu1 %1752  ;;  %2471 = vmatmul.mubr.f32.gmra.mxu1 %v4750_v3 }
 0x34a   : > { %3261 = vrcp.f32 %v1753_v38  ;;  %1993 = vmax.xlane.f32.xlu0 %v1992_v6  ;;  %v4759_v49 = vmul.f32 %v1837_v59, %v5357_v42  ;;  %v4762_v16 = vmul.f32 %v1836_v43, %v5358_v20 }
 0x34b   : > { %v3256_v62 = vpop.eup %3255 }
 0x34c   : > { %2475 = vmatprep.mubr.f32.mxu1 %v4759_v49  ;;  %v1995_v44 = vmax.f32 %v4762_v16, %v4759_v49  ;;  %v1840_v63 = vmul.f32 %v3256_v62, %v4468_v9  ;;  %v1839_v30 = vmul.f32 %v3256_v62, %v4466_v61 }
 0x34d   : > { %2476 = vmatmul.mubr.f32.gmra.mxu1 %v4762_v16  ;;  %v1756_v13 = vpop.xlane.xlu0 %1755 }
 0x34e   : > { %3263 = vrcp.f32 %v1756_v13  ;;  %1996 = vmax.xlane.f32.xlu1 %v1995_v44  ;;  %v4771_v28 = vmul.f32 %v1840_v63, %v5357_v42  ;;  %v4774_v6 = vmul.f32 %v1839_v30, %v5358_v20 }
 0x34f   : > { %v3258_v59 = vpop.eup %3257 }
 0x350   : > { %2480 = vmatprep.mubr.f32.mxu1 %v4771_v28  ;;  %v1998_v43 = vmax.f32 %v4774_v6, %v4771_v28  ;;  %v1843_v9 = vmul.f32 %v3258_v59, %v4476_v54  ;;  %v1842_v61 = vmul.f32 %v3258_v59, %v4474_v15 }
 0x351   : > { %v1759_v38 = vpop.xlane.xlu1 %1758  ;;  %2481 = vmatmul.mubr.f32.gmra.mxu1 %v4774_v6 }
 0x352   : > { %3265 = vrcp.f32 %v1759_v38  ;;  %1999 = vmax.xlane.f32.xlu0 %v1998_v43  ;;  %v4783_v62 = vmul.f32 %v1843_v9, %v5357_v42  ;;  %v4786_v44 = vmul.f32 %v1842_v61, %v5358_v20 }
 0x353   : > { %v3260_v63 = vpop.eup %3259 }
 0x354   : > { %2485 = vmatprep.mubr.f32.mxu1 %v4783_v62  ;;  %v2001_v30 = vmax.f32 %v4786_v44, %v4783_v62  ;;  %v1846_v54 = vmul.f32 %v3260_v63, %v4484_v53  ;;  %v1845_v15 = vmul.f32 %v3260_v63, %v4482_v51 }
 0x355   : > { %2486 = vmatmul.mubr.f32.gmra.mxu1 %v4786_v44  ;;  %v1762_v13 = vpop.xlane.xlu0 %1761 }
 0x356   : > { %3267 = vrcp.f32 %v1762_v13  ;;  %2002 = vmax.xlane.f32.xlu1 %v2001_v30  ;;  %v4795_v59 = vmul.f32 %v1846_v54, %v5357_v42  ;;  %v4798_v43 = vmul.f32 %v1845_v15, %v5358_v20 }
 0x357   : > { %v3262_v9 = vpop.eup %3261 }
 0x358   : > { %2490 = vmatprep.mubr.f32.mxu1 %v4795_v59  ;;  %v2004_v61 = vmax.f32 %v4798_v43, %v4795_v59  ;;  %v1849_v53 = vmul.f32 %v3262_v9, %v4492_v21  ;;  %v1848_v51 = vmul.f32 %v3262_v9, %v4490_v17 }
 0x359   : > { %v1765_v38 = vpop.xlane.xlu1 %1764  ;;  %2491 = vmatmul.mubr.f32.gmra.mxu1 %v4798_v43 }
 0x35a   : > { %3269 = vrcp.f32 %v1765_v38  ;;  %2005 = vmax.xlane.f32.xlu0 %v2004_v61  ;;  %v4807_v63 = vmul.f32 %v1849_v53, %v5357_v42  ;;  %v4810_v30 = vmul.f32 %v1848_v51, %v5358_v20 }
 0x35b   : > { %v3264_v54 = vpop.eup %3263 }
 0x35c   : > { %2495 = vmatprep.mubr.f32.mxu1 %v4807_v63  ;;  %v2007_v15 = vmax.f32 %v4810_v30, %v4807_v63  ;;  %v1852_v21 = vmul.f32 %v3264_v54, %v4500_v41  ;;  %v1851_v17 = vmul.f32 %v3264_v54, %v4498_v33 }
 0x35d   : > { %2496 = vmatmul.mubr.f32.gmra.mxu1 %v4810_v30  ;;  %v1768_v13 = vpop.xlane.xlu0 %1767 }
 0x35e   : > { %3271 = vrcp.f32 %v1768_v13  ;;  %2008 = vmax.xlane.f32.xlu1 %v2007_v15  ;;  %v4819_v9 = vmul.f32 %v1852_v21, %v5357_v42  ;;  %v4822_v61 = vmul.f32 %v1851_v17, %v5358_v20 }
 0x35f   : > { %v3266_v53 = vpop.eup %3265 }
 0x360   : > { %2500 = vmatprep.mubr.f32.mxu1 %v4819_v9  ;;  %v2010_v51 = vmax.f32 %v4822_v61, %v4819_v9  ;;  %v1855_v41 = vmul.f32 %v3266_v53, %v4508_v58  ;;  %v1854_v33 = vmul.f32 %v3266_v53, %v4506_v27 }
 0x361   : > { %v1771_v38 = vpop.xlane.xlu1 %1770  ;;  %2501 = vmatmul.mubr.f32.gmra.mxu1 %v4822_v61 }
 0x362   : > { %3273 = vrcp.f32 %v1771_v38  ;;  %2011 = vmax.xlane.f32.xlu0 %v2010_v51  ;;  %v4831_v54 = vmul.f32 %v1855_v41, %v5357_v42  ;;  %v4834_v15 = vmul.f32 %v1854_v33, %v5358_v20 }
 0x363   : > { %v3268_v21 = vpop.eup %3267 }
 0x364   : > { %5359 = vst [vmem:[#allocation3_spill] sm:$0xff] %v4831_v54  ;;  %2505 = vmatprep.mubr.f32.mxu1 %v4831_v54  ;;  %v2013_v17 = vmax.f32 %v4834_v15, %v4831_v54  ;;  %v1858_v58 = vmul.f32 %v3268_v21, %v4516_v5  ;;  %v1857_v27 = vmul.f32 %v3268_v21, %v4514_v11  ;;  %v5360_v5 = vld [vmem:[#allocation5_spill] sm:$0xff]  ;;  %v5361_v11 = vld [vmem:[#allocation4_spill] sm:$0xff] }
 0x365   : > { %2506 = vmatmul.mubr.f32.gmra.mxu1 %v4834_v15  ;;  %v1774_v13 = vpop.xlane.xlu0 %1773 }
 0x366   : > { %3275 = vrcp.f32 %v1774_v13  ;;  %2014 = vmax.xlane.f32.xlu1 %v2013_v17  ;;  %v4843_v53 = vmul.f32 %v1858_v58, %v5357_v42  ;;  %v4846_v51 = vmul.f32 %v1857_v27, %v5358_v20 }
 0x367   : > { %v3270_v41 = vpop.eup %3269 }
 0x368   : > { %2510 = vmatprep.mubr.f32.mxu1 %v4843_v53  ;;  %v2016_v33 = vmax.f32 %v4846_v51, %v4843_v53  ;;  %v1861_v38 = vmul.f32 %v3270_v41, %v5360_v5  ;;  %v1860_v21 = vmul.f32 %v3270_v41, %v5361_v11  ;;  %v5363_v41 = vld [vmem:[#allocation6_spill] sm:$0xff] }
 0x369   : > { %v1777_v54 = vpop.xlane.xlu1 %1776  ;;  %2511 = vmatmul.mubr.f32.gmra.mxu1 %v4846_v51 }
 0x36a   : > { %3277 = vrcp.f32 %v1777_v54  ;;  %2017 = vmax.xlane.f32.xlu0 %v2016_v33  ;;  %v4855_v17 = vmul.f32 %v1861_v38, %v5357_v42  ;;  %v4858_v58 = vmul.f32 %v1860_v21, %v5358_v20 }
 0x36b   : > { %v3272_v27 = vpop.eup %3271 }
 0x36c   : > { %5362 = vst [vmem:[#allocation2_spill] sm:$0xff] %v4855_v17  ;;  %2515 = vmatprep.mubr.f32.mxu1 %v4855_v17  ;;  %v2019_v13 = vmax.f32 %v4858_v58, %v4855_v17  ;;  %v1864_v5 = vmul.f32 %v3272_v27, %v4532_v32  ;;  %v1863_v11 = vmul.f32 %v3272_v27, %v5363_v41 }
 0x36d   : > { %2516 = vmatmul.mubr.f32.gmra.mxu1 %v4858_v58  ;;  %v1780_v54 = vpop.xlane.xlu0 %1779 }
 0x36e   : > { %3279 = vrcp.f32 %v1780_v54  ;;  %2020 = vmax.xlane.f32.xlu1 %v2019_v13  ;;  %v4867_v33 = vmul.f32 %v1864_v5, %v5357_v42  ;;  %v4870_v38 = vmul.f32 %v1863_v11, %v5358_v20 }
 0x36f   : > { %v3274_v21 = vpop.eup %3273 }
 0x370   : > { %2520 = vmatprep.mubr.f32.mxu1 %v4867_v33  ;;  %v2022_v17 = vmax.f32 %v4870_v38, %v4867_v33  ;;  %v1867_v32 = vmul.f32 %v3274_v21, %v4540_v0  ;;  %v1866_v27 = vmul.f32 %v3274_v21, %v4538_v1 }
 0x371   : > { %v1783_v41 = vpop.xlane.xlu1 %1782  ;;  %2521 = vmatmul.mubr.f32.gmra.mxu1 %v4870_v38 }
 0x372   : > { %3281 = vrcp.f32 %v1783_v41  ;;  %2023 = vmax.xlane.f32.xlu0 %v2022_v17  ;;  %v4879_v13 = vmul.f32 %v1867_v32, %v5357_v42  ;;  %v4882_v5 = vmul.f32 %v1866_v27, %v5358_v20 }
 0x373   : > { %v3276_v11 = vpop.eup %3275 }
 0x374   : > { %5364 = vst [vmem:[#allocation5_spill] sm:$0xff] %v4879_v13  ;;  %5365 = vst [vmem:[#allocation4_spill] sm:$0xff] %v4882_v5  ;;  %2525 = vmatprep.mubr.f32.mxu1 %v4879_v13  ;;  %v2025_v54 = vmax.f32 %v4882_v5, %v4879_v13  ;;  %v1870_v0 = vmul.f32 %v3276_v11, %v4548_v46  ;;  %v1869_v1 = vmul.f32 %v3276_v11, %v4546_v31  ;;  %v5366_v46 = vld [vmem:[#allocation8_spill] sm:$0xff]  ;;  %v5367_v31 = vld [vmem:[#allocation7_spill] sm:$0xff] }
 0x375   : > { %2526 = vmatmul.mubr.f32.gmra.mxu1 %v4882_v5  ;;  %v1786_v21 = vpop.xlane.xlu0 %1785 }
 0x376   : > { %3283 = vrcp.f32 %v1786_v21  ;;  %2026 = vmax.xlane.f32.xlu1 %v2025_v54  ;;  %v4891_v17 = vmul.f32 %v1870_v0, %v5357_v42  ;;  %v4894_v32 = vmul.f32 %v1869_v1, %v5358_v20 }
 0x377   : > { %v3278_v27 = vpop.eup %3277 }
 0x378   : > { %2530 = vmatprep.mubr.f32.mxu1 %v4891_v17  ;;  %v2028_v41 = vmax.f32 %v4894_v32, %v4891_v17  ;;  %v1873_v13 = vmul.f32 %v3278_v27, %v5366_v46  ;;  %v1872_v11 = vmul.f32 %v3278_v27, %v5367_v31 }
 0x379   : > { %v1789_v5 = vpop.xlane.xlu1 %1788  ;;  %2531 = vmatmul.mubr.f32.gmra.mxu1 %v4894_v32 }
 0x37a   : > { %3285 = vrcp.f32 %v1789_v5  ;;  %2029 = vmax.xlane.f32.xlu0 %v2028_v41  ;;  %v4903_v54 = vmul.f32 %v1873_v13, %v5357_v42  ;;  %v4906_v0 = vmul.f32 %v1872_v11, %v5358_v20 }
 0x37b   : > { %v3280_v1 = vpop.eup %3279 }
 0x37c   : > { %5368 = vst [vmem:[#allocation6_spill] sm:$0xff] %v4903_v54  ;;  %2535 = vmatprep.mubr.f32.mxu1 %v4903_v54  ;;  %v2031_v21 = vmax.f32 %v4906_v0, %v4903_v54  ;;  %v1876_v46 = vmul.f32 %v3280_v1, %v4564_v47  ;;  %v1875_v27 = vmul.f32 %v3280_v1, %v4562_v35 }
 0x37d   : > { %2536 = vmatmul.mubr.f32.gmra.mxu1 %v4906_v0  ;;  %v1792_v5 = vpop.xlane.xlu0 %1791 }
 0x37e   : > { %3287 = vrcp.f32 %v1792_v5  ;;  %2032 = vmax.xlane.f32.xlu1 %v2031_v21  ;;  %v4915_v13 = vmul.f32 %v1876_v46, %v5357_v42  ;;  %v4918_v41 = vmul.f32 %v1875_v27, %v5358_v20 }
 0x37f   : > { %v3282_v31 = vpop.eup %3281 }
 0x380   : > { %5369 = vst [vmem:[#allocation8_spill] sm:$0xff] %v4915_v13  ;;  %5370 = vst [vmem:[#allocation7_spill] sm:$0xff] %v4918_v41  ;;  %2540 = vmatprep.mubr.f32.mxu1 %v4915_v13  ;;  %v2034_v11 = vmax.f32 %v4918_v41, %v4915_v13  ;;  %v1879_v47 = vmul.f32 %v3282_v31, %v4572_v2  ;;  %v1878_v35 = vmul.f32 %v3282_v31, %v4570_v26  ;;  %v5373_v2 = vld [vmem:[#allocation10_spill] sm:$0xff]  ;;  %v5374_v26 = vld [vmem:[#allocation9_spill] sm:$0xff] }
 0x381   : > { %v1795_v1 = vpop.xlane.xlu1 %1794  ;;  %2541 = vmatmul.mubr.f32.gmra.mxu1 %v4918_v41 }
 0x382   : > { %3289 = vrcp.f32 %v1795_v1  ;;  %2035 = vmax.xlane.f32.xlu0 %v2034_v11  ;;  %v4927_v21 = vmul.f32 %v1879_v47, %v5357_v42  ;;  %v4930_v46 = vmul.f32 %v1878_v35, %v5358_v20 }
 0x383   : > { %v3284_v27 = vpop.eup %3283 }
 0x384   : > { %5371 = vst [vmem:[#allocation16_spill] sm:$0xff] %v4927_v21  ;;  %5372 = vst [vmem:[#allocation17_spill] sm:$0xff] %v4930_v46  ;;  %2545 = vmatprep.mubr.f32.mxu1 %v4927_v21  ;;  %v2037_v5 = vmax.f32 %v4930_v46, %v4927_v21  ;;  %v1882_v13 = vmul.f32 %v3284_v27, %v5373_v2  ;;  %v1881_v31 = vmul.f32 %v3284_v27, %v5374_v26  ;;  %v5376_v21 = vld [vmem:[#allocation12_spill] sm:$0xff]  ;;  %v5377_v2 = vld [vmem:[#allocation11_spill] sm:$0xff] }
 0x385   : > { %2546 = vmatmul.mubr.f32.gmra.mxu1 %v4930_v46 }
 0x386   : > { %2038 = vmax.xlane.f32.xlu1 %v2037_v5  ;;  %v4939_v11 = vmul.f32 %v1882_v13, %v5357_v42  ;;  %v4942_v47 = vmul.f32 %v1881_v31, %v5358_v20  ;;  %v5379_v31 = vld [vmem:[#allocation14_spill] sm:$0xff] }
 0x387   : > { %v3286_v35 = vpop.eup %3285 }
 0x388   : > { %5375 = vst [vmem:[#allocation10_spill] sm:$0xff] %v4939_v11  ;;  %2550 = vmatprep.mubr.f32.mxu1 %v4939_v11  ;;  %v2040_v1 = vmax.f32 %v4942_v47, %v4939_v11  ;;  %v1885_v41 = vmul.f32 %v3286_v35, %v5376_v21  ;;  %v1884_v54 = vmul.f32 %v3286_v35, %v5377_v2  ;;  %v5380_v21 = vld [vmem:[#allocation13_spill] sm:$0xff] }
 0x389   : > { %2551 = vmatmul.mubr.f32.gmra.mxu1 %v4942_v47 }
 0x38a   : > { %2041 = vmax.xlane.f32.xlu0 %v2040_v1  ;;  %v4951_v27 = vmul.f32 %v1885_v41, %v5357_v42  ;;  %v4954_v13 = vmul.f32 %v1884_v54, %v5358_v20 }
 0x38b   : > { %v3288_v5 = vpop.eup %3287 }
 0x38c   : > { %5378 = vst [vmem:[#allocation9_spill] sm:$0xff] %v4951_v27  ;;  %2555 = vmatprep.mubr.f32.mxu1 %v4951_v27  ;;  %v2043_v26 = vmax.f32 %v4954_v13, %v4951_v27  ;;  %v1888_v11 = vmul.f32 %v3288_v5, %v5379_v31  ;;  %v1887_v46 = vmul.f32 %v3288_v5, %v5380_v21  ;;  %v5381_v31 = vld [vmem:[#allocation15_spill] sm:$0xff] }
 0x38d   : > { %2556 = vmatmul.mubr.f32.gmra.mxu1 %v4954_v13 }
 0x38e   : > { %2044 = vmax.xlane.f32.xlu1 %v2043_v26  ;;  %v4963_v35 = vmul.f32 %v1888_v11, %v5357_v42  ;;  %v4966_v41 = vmul.f32 %v1887_v46, %v5358_v20 }
 0x38f   : > { %v3290_v54 = vpop.eup %3289 }
 0x390   : > { %2560 = vmatprep.mubr.f32.mxu1 %v4963_v35  ;;  %v2046_v1 = vmax.f32 %v4966_v41, %v4963_v35  ;;  %v1891_v2 = vmul.f32 %v3290_v54, %v4596_v60  ;;  %v1890_v27 = vmul.f32 %v3290_v54, %v5381_v31  ;;  %v5382_v60 = vlaneseq }
 0x391   : > { %2561 = vmatmul.mubr.f32.gmra.mxu1 %v4966_v41 }
 0x392   : > { %2047 = vmax.xlane.f32.xlu0 %v2046_v1  ;;  %v4975_v5 = vmul.f32 %v1891_v2, %v5357_v42  ;;  %v4978_v11 = vmul.f32 %v1890_v27, %v5358_v20  ;;  %v2053_v26 = vand.u32 127, %v5382_v60 }
 0x394   : > { %2565 = vmatprep.mubr.f32.mxu1 %v4975_v5  ;;  %v2049_v46 = vmax.f32 %v4978_v11, %v4975_v5  ;;  %v2054_v21 = vadd.s32 128, %v2053_v26  ;;  %v4985_v54 = vcvt.s32.f32 %v2053_v26 }
 0x395   : > { %2566 = vmatmul.mubr.f32.gmra.mxu1 %v4978_v11 }
 0x396   : > { %2050 = vmax.xlane.f32.xlu1 %v2049_v46  ;;  %v4987_v1 = vcvt.s32.f32 %v2054_v21 }
 0x3a3   : > { %v1958_v42 = vpop.xlane.xlu0 %1957 }
 0x3a4   : > { %vm2057_vm0 = vcmp.eq.f32.partialorder %v4606_v56, %v1958_v42  ;;  %vm2058_vm5 = vcmp.eq.f32.partialorder %v4603_v25, %v1958_v42 }
 0x3a5   : > { %v2121_v20 = vsel %vm2057_vm0, %v4985_v54, 256.0  ;;  %v2122_v27 = vsel %vm2058_vm5, %v4987_v1, 256.0 }
 0x3a6   : > { %v2185_v2 = vmin.f32 %v2121_v20, %v2122_v27 }
 0x3a7   : > { %v1961_v31 = vpop.xlane.xlu1 %1960 }
 0x3a8   : > { %vm2059_vm6 = vcmp.eq.f32.partialorder %v4618_v37, %v1961_v31  ;;  %vm2060_vm7 = vcmp.eq.f32.partialorder %v4615_v36, %v1961_v31  ;;  %2186 = vmin.xlane.f32.xlu0 %v2185_v2 }
 0x3a9   : > { %v2123_v46 = vsel %vm2059_vm6, %v4985_v54, 256.0  ;;  %v2124_v60 = vsel %vm2060_vm7, %v4987_v1, 256.0 }
 0x3aa   : > { %v2188_v26 = vmin.f32 %v2123_v46, %v2124_v60 }
 0x3ab   : > { %v1964_v21 = vpop.xlane.xlu0 %1963 }
 0x3ac   : > { %vm2061_vm8 = vcmp.eq.f32.partialorder %v4630_v39, %v1964_v21  ;;  %vm2062_vm9 = vcmp.eq.f32.partialorder %v4627_v23, %v1964_v21  ;;  %2189 = vmin.xlane.f32.xlu1 %v2188_v26 }
 0x3ad   : > { %v2125_v25 = vsel %vm2061_vm8, %v4985_v54, 256.0  ;;  %v2126_v56 = vsel %vm2062_vm9, %v4987_v1, 256.0 }
 0x3ae   : > { %v2191_v42 = vmin.f32 %v2125_v25, %v2126_v56 }
 0x3af   : > { %v1967_v37 = vpop.xlane.xlu1 %1966 }
 0x3b0   : > { %vm2063_vm10 = vcmp.eq.f32.partialorder %v4642_v18, %v1967_v37  ;;  %vm2064_vm11 = vcmp.eq.f32.partialorder %v4639_v40, %v1967_v37  ;;  %2192 = vmin.xlane.f32.xlu0 %v2191_v42 }
 0x3b1   : > { %v2127_v36 = vsel %vm2063_vm10, %v4985_v54, 256.0  ;;  %v2128_v20 = vsel %vm2064_vm11, %v4987_v1, 256.0 }
 0x3b2   : > { %v2194_v27 = vmin.f32 %v2127_v36, %v2128_v20 }
 0x3b3   : > { %v1970_v39 = vpop.xlane.xlu0 %1969 }
 0x3b4   : > { %vm2065_vm12 = vcmp.eq.f32.partialorder %v4654_v48, %v1970_v39  ;;  %vm2066_vm13 = vcmp.eq.f32.partialorder %v4651_v22, %v1970_v39  ;;  %2195 = vmin.xlane.f32.xlu1 %v2194_v27 }
 0x3b5   : > { %v2129_v23 = vsel %vm2065_vm12, %v4985_v54, 256.0  ;;  %v2130_v2 = vsel %vm2066_vm13, %v4987_v1, 256.0 }
 0x3b6   : > { %v2197_v31 = vmin.f32 %v2129_v23, %v2130_v2 }
 0x3b7   : > { %v1973_v18 = vpop.xlane.xlu1 %1972 }
 0x3b8   : > { %vm2067_vm14 = vcmp.eq.f32.partialorder %v4666_v4, %v1973_v18  ;;  %vm2068_vm15 = vcmp.eq.f32.partialorder %v4663_v29, %v1973_v18  ;;  %2198 = vmin.xlane.f32.xlu0 %v2197_v31 }
 0x3b9   : > { %v2131_v40 = vsel %vm2067_vm14, %v4985_v54, 256.0  ;;  %v2132_v46 = vsel %vm2068_vm15, %v4987_v1, 256.0  ;;  %vm2571_vm14 = vcmask 523264  }
 0x3ba   : > { %v2200_v60 = vmin.f32 %v2131_v40, %v2132_v46 }
 0x3bb   : > { %v1976_v48 = vpop.xlane.xlu0 %1975 }
 0x3bc   : > { %vm2069_vm1 = vcmp.eq.f32.partialorder %v4678_v12, %v1976_v48  ;;  %vm2070_vm2 = vcmp.eq.f32.partialorder %v4675_v7, %v1976_v48  ;;  %2201 = vmin.xlane.f32.xlu1 %v2200_v60 }
 0x3bd   : > { %v2133_v22 = vsel %vm2069_vm1, %v4985_v54, 256.0  ;;  %v2134_v26 = vsel %vm2070_vm2, %v4987_v1, 256.0 }
 0x3be   : > { %v2203_v21 = vmin.f32 %v2133_v22, %v2134_v26 }
 0x3bf   : > { %v1979_v4 = vpop.xlane.xlu1 %1978 }
 0x3c0   : > { %vm2071_vm3 = vcmp.eq.f32.partialorder %v4690_v8, %v1979_v4  ;;  %vm2072_vm4 = vcmp.eq.f32.partialorder %v4687_v34, %v1979_v4  ;;  %2204 = vmin.xlane.f32.xlu0 %v2203_v21 }
 0x3c1   : > { %v2135_v29 = vsel %vm2071_vm3, %v4985_v54, 256.0  ;;  %v2136_v25 = vsel %vm2072_vm4, %v4987_v1, 256.0 }
 0x3c2   : > { %v2206_v56 = vmin.f32 %v2135_v29, %v2136_v25 }
 0x3c3   : > { %v1982_v12 = vpop.xlane.xlu0 %1981 }
 0x3c4   : > { %vm2073_vm0 = vcmp.eq.f32.partialorder %v4702_v24, %v1982_v12  ;;  %vm2074_vm5 = vcmp.eq.f32.partialorder %v4699_v10, %v1982_v12  ;;  %2207 = vmin.xlane.f32.xlu1 %v2206_v56 }
 0x3c5   : > { %v2137_v7 = vsel %vm2073_vm0, %v4985_v54, 256.0  ;;  %v2138_v42 = vsel %vm2074_vm5, %v4987_v1, 256.0 }
 0x3c6   : > { %v2209_v37 = vmin.f32 %v2137_v7, %v2138_v42 }
 0x3c7   : > { %v1985_v8 = vpop.xlane.xlu1 %1984 }
 0x3c8   : > { %vm2075_vm6 = vcmp.eq.f32.partialorder %v4714_v45, %v1985_v8  ;;  %vm2076_vm7 = vcmp.eq.f32.partialorder %v4711_v55, %v1985_v8  ;;  %2210 = vmin.xlane.f32.xlu0 %v2209_v37 }
 0x3c9   : > { %v2139_v34 = vsel %vm2075_vm6, %v4985_v54, 256.0  ;;  %v2140_v36 = vsel %vm2076_vm7, %v4987_v1, 256.0 }
 0x3ca   : > { %v2212_v20 = vmin.f32 %v2139_v34, %v2140_v36 }
 0x3cb   : > { %v1988_v24 = vpop.xlane.xlu0 %1987 }
 0x3cc   : > { %vm2077_vm8 = vcmp.eq.f32.partialorder %v4726_v52, %v1988_v24  ;;  %vm2078_vm9 = vcmp.eq.f32.partialorder %v4723_v57, %v1988_v24  ;;  %2213 = vmin.xlane.f32.xlu1 %v2212_v20 }
 0x3cd   : > { %v2141_v10 = vsel %vm2077_vm8, %v4985_v54, 256.0  ;;  %v2142_v27 = vsel %vm2078_vm9, %v4987_v1, 256.0 }
 0x3ce   : > { %v2215_v39 = vmin.f32 %v2141_v10, %v2142_v27 }
 0x3cf   : > { %v1991_v45 = vpop.xlane.xlu1 %1990 }
 0x3d0   : > { %vm2079_vm10 = vcmp.eq.f32.partialorder %v4738_v19, %v1991_v45  ;;  %vm2080_vm11 = vcmp.eq.f32.partialorder %v4735_v50, %v1991_v45  ;;  %2216 = vmin.xlane.f32.xlu0 %v2215_v39  ;;  %v5383_v45 = vld [vmem:[#allocation3_spill] sm:$0xff] }
 0x3d1   : > { %v2143_v55 = vsel %vm2079_vm10, %v4985_v54, 256.0  ;;  %v2144_v23 = vsel %vm2080_vm11, %v4987_v1, 256.0 }
 0x3d2   : > { %v2218_v52 = vmin.f32 %v2143_v55, %v2144_v23 }
 0x3d3   : > { %v1994_v2 = vpop.xlane.xlu0 %1993 }
 0x3d4   : > { %vm2081_vm12 = vcmp.eq.f32.partialorder %v4750_v3, %v1994_v2  ;;  %vm2082_vm13 = vcmp.eq.f32.partialorder %v4747_v14, %v1994_v2  ;;  %2219 = vmin.xlane.f32.xlu1 %v2218_v52 }
 0x3d5   : > { %v2145_v57 = vsel %vm2081_vm12, %v4985_v54, 256.0  ;;  %v2146_v31 = vsel %vm2082_vm13, %v4987_v1, 256.0 }
 0x3d6   : > { %v2221_v18 = vmin.f32 %v2145_v57, %v2146_v31 }
 0x3d7   : > { %v1997_v19 = vpop.xlane.xlu1 %1996 }
 0x3d8   : > { %vm2083_vm15 = vcmp.eq.f32.partialorder %v4762_v16, %v1997_v19  ;;  %vm2084_vm1 = vcmp.eq.f32.partialorder %v4759_v49, %v1997_v19  ;;  %2222 = vmin.xlane.f32.xlu0 %v2221_v18 }
 0x3d9   : > { %v2147_v50 = vsel %vm2083_vm15, %v4985_v54, 256.0  ;;  %v2148_v14 = vsel %vm2084_vm1, %v4987_v1, 256.0  ;;  %v2412_v3 = vpop.f32.mrf.mxu1 }
 0x3da   : > { %v2224_v40 = vmin.f32 %v2147_v50, %v2148_v14  ;;  %2572 = vst.msk [vmem:[%s5045_s9] sm:$0xff] %vm2571_vm14, %v2412_v3  ;;  %v5384_v14 = vld [vmem:[#allocation2_spill] sm:$0xff] }
 0x3db   : > { %v2414_v46 = vpop.f32.mrf.mxu1  ;;  %v2000_v60 = vpop.xlane.xlu0 %1999 }
 0x3dc   : > { %vm2085_vm2 = vcmp.eq.f32.partialorder %v4774_v6, %v2000_v60  ;;  %vm2086_vm3 = vcmp.eq.f32.partialorder %v4771_v28, %v2000_v60  ;;  %2225 = vmin.xlane.f32.xlu1 %v2224_v40 }
 0x3dd   : > { %v2149_v49 = vsel %vm2085_vm2, %v4985_v54, 256.0  ;;  %v2150_v16 = vsel %vm2086_vm3, %v4987_v1, 256.0  ;;  %v2417_v48 = vpop.f32.mrf.mxu1 }
 0x3de   : > { %v2227_v22 = vmin.f32 %v2149_v49, %v2150_v16  ;;  %2573 = vst.msk [vmem:[%s5045_s9 + $0x8] sm:$0xff] %vm2571_vm14, %v2417_v48 }
 0x3df   : > { %v2419_v26 = vpop.f32.mrf.mxu1  ;;  %v2003_v21 = vpop.xlane.xlu1 %2002 }
 0x3e0   : > { %vm2087_vm4 = vcmp.eq.f32.partialorder %v4786_v44, %v2003_v21  ;;  %vm2088_vm0 = vcmp.eq.f32.partialorder %v4783_v62, %v2003_v21  ;;  %2228 = vmin.xlane.f32.xlu0 %v2227_v22  ;;  %v5385_v21 = vld [vmem:[#allocation4_spill] sm:$0xff] }
 0x3e1   : > { %v2151_v28 = vsel %vm2087_vm4, %v4985_v54, 256.0  ;;  %v2152_v6 = vsel %vm2088_vm0, %v4987_v1, 256.0  ;;  %v2422_v4 = vpop.f32.mrf.mxu1 }
 0x3e2   : > { %v2230_v29 = vmin.f32 %v2151_v28, %v2152_v6  ;;  %2574 = vst.msk [vmem:[%s5045_s9 + $0x10] sm:$0xff] %vm2571_vm14, %v2422_v4  ;;  %v5386_v28 = vld [vmem:[#allocation5_spill] sm:$0xff] }
 0x3e3   : > { %v2424_v25 = vpop.f32.mrf.mxu1  ;;  %v2006_v56 = vpop.xlane.xlu0 %2005 }
 0x3e4   : > { %vm2089_vm5 = vcmp.eq.f32.partialorder %v4798_v43, %v2006_v56  ;;  %vm2090_vm6 = vcmp.eq.f32.partialorder %v4795_v59, %v2006_v56  ;;  %2231 = vmin.xlane.f32.xlu1 %v2230_v29 }
 0x3e5   : > { %v2153_v62 = vsel %vm2089_vm5, %v4985_v54, 256.0  ;;  %v2154_v44 = vsel %vm2090_vm6, %v4987_v1, 256.0  ;;  %v2427_v12 = vpop.f32.mrf.mxu1 }
 0x3e6   : > { %v2233_v7 = vmin.f32 %v2153_v62, %v2154_v44  ;;  %2575 = vst.msk [vmem:[%s5045_s9 + $0x18] sm:$0xff] %vm2571_vm14, %v2427_v12 }
 0x3e7   : > { %v2429_v42 = vpop.f32.mrf.mxu1  ;;  %v2009_v37 = vpop.xlane.xlu1 %2008 }
 0x3e8   : > { %vm2091_vm7 = vcmp.eq.f32.partialorder %v4810_v30, %v2009_v37  ;;  %vm2092_vm8 = vcmp.eq.f32.partialorder %v4807_v63, %v2009_v37  ;;  %2234 = vmin.xlane.f32.xlu0 %v2233_v7  ;;  %v5387_v37 = vld [vmem:[#allocation6_spill] sm:$0xff] }
 0x3e9   : > { %v2155_v59 = vsel %vm2091_vm7, %v4985_v54, 256.0  ;;  %v2156_v43 = vsel %vm2092_vm8, %v4987_v1, 256.0  ;;  %v2432_v8 = vpop.f32.mrf.mxu1 }
 0x3ea   : > { %v2236_v34 = vmin.f32 %v2155_v59, %v2156_v43  ;;  %2576 = vst.msk [vmem:[%s5045_s9 + $0x20] sm:$0xff] %vm2571_vm14, %v2432_v8 }
 0x3eb   : > { %v2434_v36 = vpop.f32.mrf.mxu1  ;;  %v2012_v20 = vpop.xlane.xlu0 %2011 }
 0x3ec   : > { %vm2093_vm9 = vcmp.eq.f32.partialorder %v4822_v61, %v2012_v20  ;;  %vm2094_vm10 = vcmp.eq.f32.partialorder %v4819_v9, %v2012_v20  ;;  %2237 = vmin.xlane.f32.xlu1 %v2236_v34  ;;  %v5388_v36 = vld [vmem:[#allocation7_spill] sm:$0xff]  ;;  %v5389_v20 = vld [vmem:[#allocation8_spill] sm:$0xff] }
 0x3ed   : > { %v2157_v63 = vsel %vm2093_vm9, %v4985_v54, 256.0  ;;  %v2158_v30 = vsel %vm2094_vm10, %v4987_v1, 256.0  ;;  %v2437_v24 = vpop.f32.mrf.mxu1 }
 0x3ee   : > { %v2239_v10 = vmin.f32 %v2157_v63, %v2158_v30  ;;  %2577 = vst.msk [vmem:[%s5045_s9 + $0x28] sm:$0xff] %vm2571_vm14, %v2437_v24 }
 0x3ef   : > { %v2439_v27 = vpop.f32.mrf.mxu1  ;;  %v2015_v39 = vpop.xlane.xlu1 %2014 }
 0x3f0   : > { %vm2095_vm11 = vcmp.eq.f32.partialorder %v4834_v15, %v2015_v39  ;;  %vm2096_vm12 = vcmp.eq.f32.partialorder %v5383_v45, %v2015_v39  ;;  %2240 = vmin.xlane.f32.xlu0 %v2239_v10  ;;  %v5390_v39 = vld [vmem:[#allocation17_spill] sm:$0xff]  ;;  %v5391_v45 = vld [vmem:[#allocation16_spill] sm:$0xff] }
 0x3f1   : > { %v2159_v9 = vsel %vm2095_vm11, %v4985_v54, 256.0  ;;  %v2160_v61 = vsel %vm2096_vm12, %v4987_v1, 256.0  ;;  %v2442_v55 = vpop.f32.mrf.mxu1 }
 0x3f2   : > { %v2242_v23 = vmin.f32 %v2159_v9, %v2160_v61  ;;  %2578 = vst.msk [vmem:[%s5045_s9 + $0x30] sm:$0xff] %vm2571_vm14, %v2442_v55 }
 0x3f3   : > { %v2444_v52 = vpop.f32.mrf.mxu1  ;;  %v2018_v2 = vpop.xlane.xlu0 %2017 }
 0x3f4   : > { %vm2097_vm13 = vcmp.eq.f32.partialorder %v4846_v51, %v2018_v2  ;;  %vm2098_vm15 = vcmp.eq.f32.partialorder %v4843_v53, %v2018_v2  ;;  %2243 = vmin.xlane.f32.xlu1 %v2242_v23 }
 0x3f5   : > { %v2161_v15 = vsel %vm2097_vm13, %v4985_v54, 256.0  ;;  %v2162_v57 = vsel %vm2098_vm15, %v4987_v1, 256.0  ;;  %v2447_v31 = vpop.f32.mrf.mxu1 }
 0x3f6   : > { %v2245_v18 = vmin.f32 %v2161_v15, %v2162_v57  ;;  %2579 = vst.msk [vmem:[%s5045_s9 + $0x38] sm:$0xff] %vm2571_vm14, %v2447_v31  ;;  %v5392_v15 = vld [vmem:[#allocation10_spill] sm:$0xff] }
 0x3f7   : > { %v2449_v19 = vpop.f32.mrf.mxu1  ;;  %v2021_v50 = vpop.xlane.xlu1 %2020 }
 0x3f8   : > { %vm2099_vm1 = vcmp.eq.f32.partialorder %v4858_v58, %v2021_v50  ;;  %vm2100_vm2 = vcmp.eq.f32.partialorder %v5384_v14, %v2021_v50  ;;  %2246 = vmin.xlane.f32.xlu0 %v2245_v18 }
 0x3f9   : > { %v2163_v53 = vsel %vm2099_vm1, %v4985_v54, 256.0  ;;  %v2164_v51 = vsel %vm2100_vm2, %v4987_v1, 256.0  ;;  %v2452_v3 = vpop.f32.mrf.mxu1 }
 0x3fa   : > { %v2248_v40 = vmin.f32 %v2163_v53, %v2164_v51  ;;  %2580 = vst.msk [vmem:[%s5045_s9 + $0x40] sm:$0xff] %vm2571_vm14, %v2452_v3  ;;  %v5393_v53 = vld [vmem:[#allocation9_spill] sm:$0xff] }
 0x3fb   : > { %v2454_v46 = vpop.f32.mrf.mxu1  ;;  %v2024_v60 = vpop.xlane.xlu0 %2023 }
 0x3fc   : > { %vm2101_vm3 = vcmp.eq.f32.partialorder %v4870_v38, %v2024_v60  ;;  %vm2102_vm4 = vcmp.eq.f32.partialorder %v4867_v33, %v2024_v60  ;;  %2249 = vmin.xlane.f32.xlu1 %v2248_v40 }
 0x3fd   : > { %v2165_v58 = vsel %vm2101_vm3, %v4985_v54, 256.0  ;;  %v2166_v49 = vsel %vm2102_vm4, %v4987_v1, 256.0  ;;  %v2457_v16 = vpop.f32.mrf.mxu1 }
 0x3fe   : > { %v2251_v48 = vmin.f32 %v2165_v58, %v2166_v49  ;;  %2581 = vst.msk [vmem:[%s5045_s9 + $0x48] sm:$0xff] %vm2571_vm14, %v2457_v16 }
 0x3ff   : > { %v2459_v22 = vpop.f32.mrf.mxu1  ;;  %v2027_v26 = vpop.xlane.xlu1 %2026 }
 0x400   : > { %vm2103_vm0 = vcmp.eq.f32.partialorder %v5385_v21, %v2027_v26  ;;  %vm2104_vm5 = vcmp.eq.f32.partialorder %v5386_v28, %v2027_v26  ;;  %2252 = vmin.xlane.f32.xlu0 %v2251_v48 }
 0x401   : > { %v2167_v33 = vsel %vm2103_vm0, %v4985_v54, 256.0  ;;  %v2168_v38 = vsel %vm2104_vm5, %v4987_v1, 256.0  ;;  %v2462_v6 = vpop.f32.mrf.mxu1 }
 0x402   : > { %v2254_v4 = vmin.f32 %v2167_v33, %v2168_v38  ;;  %2582 = vst.msk [vmem:[%s5045_s9 + $0x50] sm:$0xff] %vm2571_vm14, %v2462_v6 }
 0x403   : > { %v2464_v29 = vpop.f32.mrf.mxu1  ;;  %v2030_v25 = vpop.xlane.xlu0 %2029 }
 0x404   : > { %vm2105_vm6 = vcmp.eq.f32.partialorder %v4894_v32, %v2030_v25  ;;  %vm2106_vm7 = vcmp.eq.f32.partialorder %v4891_v17, %v2030_v25  ;;  %2255 = vmin.xlane.f32.xlu1 %v2254_v4 }
 0x405   : > { %v2169_v56 = vsel %vm2105_vm6, %v4985_v54, 256.0  ;;  %v2170_v62 = vsel %vm2106_vm7, %v4987_v1, 256.0  ;;  %v2467_v44 = vpop.f32.mrf.mxu1  ;;  %vm2313_vm7 = vcmask 7168  }
 0x406   : > { %v2257_v12 = vmin.f32 %v2169_v56, %v2170_v62  ;;  %2583 = vst.msk [vmem:[%s5045_s9 + $0x58] sm:$0xff] %vm2571_vm14, %v2467_v44 }
 0x407   : > { %v2033_v7 = vpop.xlane.xlu1 %2032  ;;  %v2469_v42 = vpop.f32.mrf.mxu1 }
 0x408   : > { %vm2107_vm8 = vcmp.eq.f32.partialorder %v4906_v0, %v2033_v7  ;;  %vm2108_vm9 = vcmp.eq.f32.partialorder %v5387_v37, %v2033_v7  ;;  %2258 = vmin.xlane.f32.xlu0 %v2257_v12 }
 0x409   : > { %v2171_v17 = vsel %vm2107_vm8, %v4985_v54, 256.0  ;;  %v2172_v32 = vsel %vm2108_vm9, %v4987_v1, 256.0  ;;  %v2472_v59 = vpop.f32.mrf.mxu1 }
 0x40a   : > { %v2260_v43 = vmin.f32 %v2171_v17, %v2172_v32  ;;  %2584 = vst.msk [vmem:[%s5045_s9 + $0x60] sm:$0xff] %vm2571_vm14, %v2472_v59 }
 0x40b   : > { %v2474_v8 = vpop.f32.mrf.mxu1  ;;  %v2036_v34 = vpop.xlane.xlu0 %2035 }
 0x40c   : > { %vm2109_vm10 = vcmp.eq.f32.partialorder %v5388_v36, %v2036_v34  ;;  %vm2110_vm11 = vcmp.eq.f32.partialorder %v5389_v20, %v2036_v34  ;;  %2261 = vmin.xlane.f32.xlu1 %v2260_v43 }
 0x40d   : > { %v2173_v0 = vsel %vm2109_vm10, %v4985_v54, 256.0  ;;  %v2174_v63 = vsel %vm2110_vm11, %v4987_v1, 256.0  ;;  %v2477_v30 = vpop.f32.mrf.mxu1 }
 0x40e   : > { %v2263_v24 = vmin.f32 %v2173_v0, %v2174_v63  ;;  %2585 = vst.msk [vmem:[%s5045_s9 + $0x68] sm:$0xff] %vm2571_vm14, %v2477_v30 }
 0x40f   : > { %v2039_v10 = vpop.xlane.xlu1 %2038  ;;  %v2479_v27 = vpop.f32.mrf.mxu1 }
 0x410   : > { %vm2111_vm12 = vcmp.eq.f32.partialorder %v5390_v39, %v2039_v10  ;;  %vm2112_vm13 = vcmp.eq.f32.partialorder %v5391_v45, %v2039_v10  ;;  %2264 = vmin.xlane.f32.xlu0 %v2263_v24 }
 0x411   : > { %v2175_v9 = vsel %vm2111_vm12, %v4985_v54, 256.0  ;;  %v2176_v61 = vsel %vm2112_vm13, %v4987_v1, 256.0  ;;  %v2482_v55 = vpop.f32.mrf.mxu1 }
 0x412   : > { %v2266_v23 = vmin.f32 %v2175_v9, %v2176_v61  ;;  %2586 = vst.msk [vmem:[%s5045_s9 + $0x70] sm:$0xff] %vm2571_vm14, %v2482_v55 }
 0x413   : > { %v2484_v52 = vpop.f32.mrf.mxu1  ;;  %v2042_v2 = vpop.xlane.xlu0 %2041 }
 0x414   : > { %vm2113_vm15 = vcmp.eq.f32.partialorder %v4942_v47, %v2042_v2  ;;  %vm2114_vm1 = vcmp.eq.f32.partialorder %v5392_v15, %v2042_v2  ;;  %2267 = vmin.xlane.f32.xlu1 %v2266_v23 }
 0x415   : > { %v2177_v57 = vsel %vm2113_vm15, %v4985_v54, 256.0  ;;  %v2178_v31 = vsel %vm2114_vm1, %v4987_v1, 256.0  ;;  %v2487_v18 = vpop.f32.mrf.mxu1 }
 0x416   : > { %v2269_v19 = vmin.f32 %v2177_v57, %v2178_v31  ;;  %2587 = vst.msk [vmem:[%s5045_s9 + $0x78] sm:$0xff] %vm2571_vm14, %v2487_v18 }
 0x417   : > { %v2045_v50 = vpop.xlane.xlu1 %2044  ;;  %v2489_v14 = vpop.f32.mrf.mxu1 }
 0x418   : > { %vm2115_vm2 = vcmp.eq.f32.partialorder %v4954_v13, %v2045_v50  ;;  %vm2116_vm3 = vcmp.eq.f32.partialorder %v5393_v53, %v2045_v50  ;;  %2270 = vmin.xlane.f32.xlu0 %v2269_v19 }
 0x419   : > { %v2179_v47 = vsel %vm2115_vm2, %v4985_v54, 256.0  ;;  %v2180_v51 = vsel %vm2116_vm3, %v4987_v1, 256.0  ;;  %v2492_v3 = vpop.f32.mrf.mxu1 }
 0x41a   : > { %v2272_v40 = vmin.f32 %v2179_v47, %v2180_v51  ;;  %2588 = vst.msk [vmem:[%s5045_s9 + $0x80] sm:$0xff] %vm2571_vm14, %v2492_v3 }
 0x41b   : > { %v2494_v46 = vpop.f32.mrf.mxu1  ;;  %v2048_v60 = vpop.xlane.xlu0 %2047 }
 0x41c   : > { %vm2117_vm4 = vcmp.eq.f32.partialorder %v4966_v41, %v2048_v60  ;;  %vm2118_vm0 = vcmp.eq.f32.partialorder %v4963_v35, %v2048_v60  ;;  %2273 = vmin.xlane.f32.xlu1 %v2272_v40 }
 0x41d   : > { %v2181_v13 = vsel %vm2117_vm4, %v4985_v54, 256.0  ;;  %v2182_v58 = vsel %vm2118_vm0, %v4987_v1, 256.0  ;;  %v2497_v49 = vpop.f32.mrf.mxu1 }
 0x41e   : > { %v2275_v16 = vmin.f32 %v2181_v13, %v2182_v58  ;;  %2589 = vst.msk [vmem:[%s5045_s9 + $0x88] sm:$0xff] %vm2571_vm14, %v2497_v49 }
 0x41f   : > { %v2051_v48 = vpop.xlane.xlu1 %2050  ;;  %v2499_v22 = vpop.f32.mrf.mxu1 }
 0x420   : > { %vm2119_vm5 = vcmp.eq.f32.partialorder %v4978_v11, %v2051_v48  ;;  %vm2120_vm6 = vcmp.eq.f32.partialorder %v4975_v5, %v2051_v48  ;;  %2276 = vmin.xlane.f32.xlu0 %v2275_v16 }
 0x421   : > { %v2183_v35 = vsel %vm2119_vm5, %v4985_v54, 256.0  ;;  %v2184_v41 = vsel %vm2120_vm6, %v4987_v1, 256.0  ;;  %v2502_v26 = vpop.f32.mrf.mxu1 }
 0x422   : > { %v2278_v21 = vmin.f32 %v2183_v35, %v2184_v41  ;;  %2590 = vst.msk [vmem:[%s5045_s9 + $0x90] sm:$0xff] %vm2571_vm14, %v2502_v26 }
 0x423   : > { %v2504_v28 = vpop.f32.mrf.mxu1 }
 0x424   : > { %2279 = vmin.xlane.f32.xlu1 %v2278_v21 }
 0x425   : > { %v2507_v33 = vpop.f32.mrf.mxu1 }
 0x426   : > { %2591 = vst.msk [vmem:[%s5045_s9 + $0x98] sm:$0xff] %vm2571_vm14, %v2507_v33 }
 0x427   : > { %v2509_v11 = vpop.f32.mrf.mxu1 }
 0x429   : > { %v2512_v38 = vpop.f32.mrf.mxu1 }
 0x42a   : > { %2592 = vst.msk [vmem:[%s5045_s9 + $0xa0] sm:$0xff] %vm2571_vm14, %v2512_v38 }
 0x42b   : > { %v2514_v5 = vpop.f32.mrf.mxu1 }
 0x42d   : > { %v2517_v54 = vpop.f32.mrf.mxu1 }
 0x42e   : > { %2593 = vst.msk [vmem:[%s5045_s9 + $0xa8] sm:$0xff] %vm2571_vm14, %v2517_v54 }
 0x42f   : > { %v2519_v1 = vpop.f32.mrf.mxu1 }
 0x431   : > { %v2522_v6 = vpop.f32.mrf.mxu1  ;;  %v2187_v4 = vpop.xlane.xlu0 %2186 }
 0x432   : > { %2594 = vst.msk [vmem:[%s5045_s9 + $0xb0] sm:$0xff] %vm2571_vm14, %v2522_v6  ;;  %v2898_v29 = vtrunc.f32 %v2187_v4 }
 0x433   : > { %v2524_v25 = vpop.f32.mrf.mxu1 }
 0x434   : > { %v2899_v56 = vcvt.f32.s32 %v2898_v29 }
 0x435   : > { %v2190_v62 = vpop.xlane.xlu1 %2189  ;;  %v2527_v44 = vpop.f32.mrf.mxu1 }
 0x436   : > { %2314 = vst.msk [vmem:[%s5173_s12] sm:$0xff] %vm2313_vm7, %v2899_v56  ;;  %v2900_v12 = vtrunc.f32 %v2190_v62 }
 0x437   : > { %2595 = vst.msk [vmem:[%s5045_s9 + $0xb8] sm:$0xff] %vm2571_vm14, %v2527_v44  ;;  %v2529_v7 = vpop.f32.mrf.mxu1 }
 0x438   : > { %v2901_v42 = vcvt.f32.s32 %v2900_v12 }
 0x439   : > { %v2532_v37 = vpop.f32.mrf.mxu1  ;;  %v2193_v17 = vpop.xlane.xlu0 %2192 }
 0x43a   : > { %2315 = vst.msk [vmem:[%s5173_s12 + $0x8] sm:$0xff] %vm2313_vm7, %v2901_v42  ;;  %v2902_v32 = vtrunc.f32 %v2193_v17 }
 0x43b   : > { %2596 = vst.msk [vmem:[%s5045_s9 + $0xc0] sm:$0xff] %vm2571_vm14, %v2532_v37  ;;  %v2534_v59 = vpop.f32.mrf.mxu1 }
 0x43c   : > { %v2903_v43 = vcvt.f32.s32 %v2902_v32 }
 0x43d   : > { %v2196_v8 = vpop.xlane.xlu1 %2195  ;;  %v2537_v34 = vpop.f32.mrf.mxu1 }
 0x43e   : > { %2316 = vst.msk [vmem:[%s5173_s12 + $0x10] sm:$0xff] %vm2313_vm7, %v2903_v43  ;;  %v2904_v36 = vtrunc.f32 %v2196_v8 }
 0x43f   : > { %2597 = vst.msk [vmem:[%s5045_s9 + $0xc8] sm:$0xff] %vm2571_vm14, %v2537_v34  ;;  %v2539_v20 = vpop.f32.mrf.mxu1 }
 0x440   : > { %v2905_v0 = vcvt.f32.s32 %v2904_v36 }
 0x441   : > { %v2542_v63 = vpop.f32.mrf.mxu1  ;;  %v2199_v30 = vpop.xlane.xlu0 %2198 }
 0x442   : > { %2317 = vst.msk [vmem:[%s5173_s12 + $0x18] sm:$0xff] %vm2313_vm7, %v2905_v0  ;;  %v2906_v24 = vtrunc.f32 %v2199_v30 }
 0x443   : > { %2598 = vst.msk [vmem:[%s5045_s9 + $0xd0] sm:$0xff] %vm2571_vm14, %v2542_v63  ;;  %v2544_v10 = vpop.f32.mrf.mxu1 }
 0x444   : > { %v2907_v27 = vcvt.f32.s32 %v2906_v24 }
 0x445   : > { %v2202_v39 = vpop.xlane.xlu1 %2201  ;;  %v2547_v45 = vpop.f32.mrf.mxu1 }
 0x446   : > { %2318 = vst.msk [vmem:[%s5173_s12 + $0x20] sm:$0xff] %vm2313_vm7, %v2907_v27  ;;  %v2908_v9 = vtrunc.f32 %v2202_v39 }
 0x447   : > { %2599 = vst.msk [vmem:[%s5045_s9 + $0xd8] sm:$0xff] %vm2571_vm14, %v2547_v45  ;;  %v2549_v61 = vpop.f32.mrf.mxu1 }
 0x448   : > { %v2909_v55 = vcvt.f32.s32 %v2908_v9 }
 0x449   : > { %v2552_v23 = vpop.f32.mrf.mxu1  ;;  %v2205_v52 = vpop.xlane.xlu0 %2204 }
 0x44a   : > { %2319 = vst.msk [vmem:[%s5173_s12 + $0x28] sm:$0xff] %vm2313_vm7, %v2909_v55  ;;  %v2910_v2 = vtrunc.f32 %v2205_v52 }
 0x44b   : > { %2600 = vst.msk [vmem:[%s5045_s9 + $0xe0] sm:$0xff] %vm2571_vm14, %v2552_v23  ;;  %v2554_v15 = vpop.f32.mrf.mxu1 }
 0x44c   : > { %v2911_v57 = vcvt.f32.s32 %v2910_v2 }
 0x44d   : > { %v2208_v31 = vpop.xlane.xlu1 %2207  ;;  %v2557_v18 = vpop.f32.mrf.mxu1 }
 0x44e   : > { %2320 = vst.msk [vmem:[%s5173_s12 + $0x30] sm:$0xff] %vm2313_vm7, %v2911_v57  ;;  %v2912_v19 = vtrunc.f32 %v2208_v31 }
 0x44f   : > { %2601 = vst.msk [vmem:[%s5045_s9 + $0xe8] sm:$0xff] %vm2571_vm14, %v2557_v18  ;;  %v2559_v50 = vpop.f32.mrf.mxu1 }
 0x450   : > { %v2913_v14 = vcvt.f32.s32 %v2912_v19 }
 0x451   : > { %v2562_v53 = vpop.f32.mrf.mxu1  ;;  %v2211_v47 = vpop.xlane.xlu0 %2210 }
 0x452   : > { %2321 = vst.msk [vmem:[%s5173_s12 + $0x38] sm:$0xff] %vm2313_vm7, %v2913_v14  ;;  %v2914_v51 = vtrunc.f32 %v2211_v47 }
 0x453   : > { %2602 = vst.msk [vmem:[%s5045_s9 + $0xf0] sm:$0xff] %vm2571_vm14, %v2562_v53  ;;  %v2564_v3 = vpop.f32.mrf.mxu1 }
 0x454   : > { %v2915_v40 = vcvt.f32.s32 %v2914_v51 }
 0x455   : > { %v2214_v46 = vpop.xlane.xlu1 %2213  ;;  %v2567_v60 = vpop.f32.mrf.mxu1 }
 0x456   : > { %2322 = vst.msk [vmem:[%s5173_s12 + $0x40] sm:$0xff] %vm2313_vm7, %v2915_v40  ;;  %v2916_v13 = vtrunc.f32 %v2214_v46 }
 0x457   : > { %2603 = vst.msk [vmem:[%s5045_s9 + $0xf8] sm:$0xff] %vm2571_vm14, %v2567_v60  ;;  %v2569_v58 = vpop.f32.mrf.mxu1 }
 0x458   : > { %v2917_v49 = vcvt.f32.s32 %v2916_v13 }
 0x459   : > { %v2217_v16 = vpop.xlane.xlu0 %2216 }
 0x45a   : > { %2323 = vst.msk [vmem:[%s5173_s12 + $0x48] sm:$0xff] %vm2313_vm7, %v2917_v49  ;;  %v2918_v48 = vtrunc.f32 %v2217_v16 }
 0x45c   : > { %v2919_v22 = vcvt.f32.s32 %v2918_v48 }
 0x45d   : > { %v2220_v35 = vpop.xlane.xlu1 %2219 }
 0x45e   : > { %2324 = vst.msk [vmem:[%s5173_s12 + $0x50] sm:$0xff] %vm2313_vm7, %v2919_v22  ;;  %v2920_v41 = vtrunc.f32 %v2220_v35 }
 0x460   : > { %v2921_v26 = vcvt.f32.s32 %v2920_v41 }
 0x461   : > { %v2223_v21 = vpop.xlane.xlu0 %2222 }
 0x462   : > { %2325 = vst.msk [vmem:[%s5173_s12 + $0x58] sm:$0xff] %vm2313_vm7, %v2921_v26  ;;  %v2922_v28 = vtrunc.f32 %v2223_v21 }
 0x464   : > { %v2923_v33 = vcvt.f32.s32 %v2922_v28 }
 0x465   : > { %v2226_v11 = vpop.xlane.xlu1 %2225 }
 0x466   : > { %2326 = vst.msk [vmem:[%s5173_s12 + $0x60] sm:$0xff] %vm2313_vm7, %v2923_v33  ;;  %v2924_v38 = vtrunc.f32 %v2226_v11 }
 0x468   : > { %v2925_v5 = vcvt.f32.s32 %v2924_v38 }
 0x469   : > { %v2229_v54 = vpop.xlane.xlu0 %2228 }
 0x46a   : > { %2327 = vst.msk [vmem:[%s5173_s12 + $0x68] sm:$0xff] %vm2313_vm7, %v2925_v5  ;;  %v2926_v1 = vtrunc.f32 %v2229_v54 }
 0x46c   : > { %v2927_v6 = vcvt.f32.s32 %v2926_v1 }
 0x46d   : > { %v2232_v4 = vpop.xlane.xlu1 %2231 }
 0x46e   : > { %2328 = vst.msk [vmem:[%s5173_s12 + $0x70] sm:$0xff] %vm2313_vm7, %v2927_v6  ;;  %v2928_v29 = vtrunc.f32 %v2232_v4 }
 0x470   : > { %v2929_v25 = vcvt.f32.s32 %v2928_v29 }
 0x471   : > { %v2235_v56 = vpop.xlane.xlu0 %2234 }
 0x472   : > { %2329 = vst.msk [vmem:[%s5173_s12 + $0x78] sm:$0xff] %vm2313_vm7, %v2929_v25  ;;  %v2930_v62 = vtrunc.f32 %v2235_v56 }
 0x474   : > { %v2931_v44 = vcvt.f32.s32 %v2930_v62 }
 0x475   : > { %v2238_v12 = vpop.xlane.xlu1 %2237 }
 0x476   : > { %2330 = vst.msk [vmem:[%s5173_s12 + $0x80] sm:$0xff] %vm2313_vm7, %v2931_v44  ;;  %v2932_v7 = vtrunc.f32 %v2238_v12 }
 0x478   : > { %v2933_v42 = vcvt.f32.s32 %v2932_v7 }
 0x479   : > { %v2241_v37 = vpop.xlane.xlu0 %2240 }
 0x47a   : > { %2331 = vst.msk [vmem:[%s5173_s12 + $0x88] sm:$0xff] %vm2313_vm7, %v2933_v42  ;;  %v2934_v17 = vtrunc.f32 %v2241_v37 }
 0x47c   : > { %v2935_v32 = vcvt.f32.s32 %v2934_v17 }
 0x47d   : > { %v2244_v59 = vpop.xlane.xlu1 %2243 }
 0x47e   : > { %2332 = vst.msk [vmem:[%s5173_s12 + $0x90] sm:$0xff] %vm2313_vm7, %v2935_v32  ;;  %v2936_v43 = vtrunc.f32 %v2244_v59 }
 0x480   : > { %v2937_v8 = vcvt.f32.s32 %v2936_v43 }
 0x481   : > { %v2247_v34 = vpop.xlane.xlu0 %2246 }
 0x482   : > { %2333 = vst.msk [vmem:[%s5173_s12 + $0x98] sm:$0xff] %vm2313_vm7, %v2937_v8  ;;  %v2938_v36 = vtrunc.f32 %v2247_v34 }
 0x484   : > { %v2939_v20 = vcvt.f32.s32 %v2938_v36 }
 0x485   : > { %v2250_v0 = vpop.xlane.xlu1 %2249 }
 0x486   : > { %2334 = vst.msk [vmem:[%s5173_s12 + $0xa0] sm:$0xff] %vm2313_vm7, %v2939_v20  ;;  %v2940_v63 = vtrunc.f32 %v2250_v0 }
 0x488   : > { %v2941_v30 = vcvt.f32.s32 %v2940_v63 }
 0x489   : > { %v2253_v24 = vpop.xlane.xlu0 %2252 }
 0x48a   : > { %2335 = vst.msk [vmem:[%s5173_s12 + $0xa8] sm:$0xff] %vm2313_vm7, %v2941_v30  ;;  %v2942_v10 = vtrunc.f32 %v2253_v24 }
 0x48c   : > { %v2943_v27 = vcvt.f32.s32 %v2942_v10 }
 0x48d   : > { %v2256_v39 = vpop.xlane.xlu1 %2255 }
 0x48e   : > { %2336 = vst.msk [vmem:[%s5173_s12 + $0xb0] sm:$0xff] %vm2313_vm7, %v2943_v27  ;;  %v2944_v45 = vtrunc.f32 %v2256_v39 }
 0x490   : > { %v2945_v9 = vcvt.f32.s32 %v2944_v45 }
 0x491   : > { %v2259_v61 = vpop.xlane.xlu0 %2258 }
 0x492   : > { %2337 = vst.msk [vmem:[%s5173_s12 + $0xb8] sm:$0xff] %vm2313_vm7, %v2945_v9  ;;  %v2946_v55 = vtrunc.f32 %v2259_v61 }
 0x494   : > { %v2947_v23 = vcvt.f32.s32 %v2946_v55 }
 0x495   : > { %v2262_v52 = vpop.xlane.xlu1 %2261 }
 0x496   : > { %2338 = vst.msk [vmem:[%s5173_s12 + $0xc0] sm:$0xff] %vm2313_vm7, %v2947_v23  ;;  %v2948_v2 = vtrunc.f32 %v2262_v52 }
 0x498   : > { %v2949_v15 = vcvt.f32.s32 %v2948_v2 }
 0x499   : > { %v2265_v57 = vpop.xlane.xlu0 %2264 }
 0x49a   : > { %2339 = vst.msk [vmem:[%s5173_s12 + $0xc8] sm:$0xff] %vm2313_vm7, %v2949_v15  ;;  %v2950_v31 = vtrunc.f32 %v2265_v57 }
 0x49c   : > { %v2951_v18 = vcvt.f32.s32 %v2950_v31 }
 0x49d   : > { %v2268_v19 = vpop.xlane.xlu1 %2267 }
 0x49e   : > { %2340 = vst.msk [vmem:[%s5173_s12 + $0xd0] sm:$0xff] %vm2313_vm7, %v2951_v18  ;;  %v2952_v50 = vtrunc.f32 %v2268_v19 }
 0x4a0   : > { %v2953_v14 = vcvt.f32.s32 %v2952_v50 }
 0x4a1   : > { %v2271_v53 = vpop.xlane.xlu0 %2270 }
 0x4a2   : > { %2341 = vst.msk [vmem:[%s5173_s12 + $0xd8] sm:$0xff] %vm2313_vm7, %v2953_v14  ;;  %v2954_v47 = vtrunc.f32 %v2271_v53 }
 0x4a4   : > { %v2955_v51 = vcvt.f32.s32 %v2954_v47 }
 0x4a5   : > { %v2274_v3 = vpop.xlane.xlu1 %2273 }
 0x4a6   : > { %2342 = vst.msk [vmem:[%s5173_s12 + $0xe0] sm:$0xff] %vm2313_vm7, %v2955_v51  ;;  %v2956_v40 = vtrunc.f32 %v2274_v3 }
 0x4a8   : > { %v2957_v46 = vcvt.f32.s32 %v2956_v40 }
 0x4a9   : > { %v2277_v60 = vpop.xlane.xlu0 %2276 }
 0x4aa   : > { %2343 = vst.msk [vmem:[%s5173_s12 + $0xe8] sm:$0xff] %vm2313_vm7, %v2957_v46  ;;  %v2958_v13 = vtrunc.f32 %v2277_v60 }
 0x4ac   : > { %v2959_v58 = vcvt.f32.s32 %v2958_v13 }
 0x4ad   : > { %v2280_v49 = vpop.xlane.xlu1 %2279 }
 0x4ae   : > { %2344 = vst.msk [vmem:[%s5173_s12 + $0xf0] sm:$0xff] %vm2313_vm7, %v2959_v58  ;;  %v2960_v16 = vtrunc.f32 %v2280_v49 }
 0x4b0   : > { %v2961_v48 = vcvt.f32.s32 %v2960_v16 }
 0x4b2   : > { %2345 = vst.msk [vmem:[%s5173_s12 + $0xf8] sm:$0xff] %vm2313_vm7, %v2961_v48 }
 0x4b3 PF: > { %s16_s18 = sadd.s32 1, %s3297_s18  }
 0x4b4   : > { %p13_p4 = scmp.ge.s32.totalorder %s16_s18, 4  }
 0x4b6   :  { %15 = sbr.rel (!%p13_p4) target bundleno = 1 (0x1), region = 84 }

</bundles_post_ra>
